<compile_context>
chip_gen: v7x
topology: tpu7x:2x2x1
jax: 0.10.0
libtpu: 0.0.40
codegen_flags: <defaults>
</compile_context>

<pallas_src>
import functools

import jax
import jax.numpy as jnp
from jax.experimental import pallas as pl
from jax.experimental.pallas import tpu as pltpu


def _round_up(a, b):
    return (a + b - 1) // b * b


_TK_MAX = 2048   # tile the K (reduction) axis only beyond this


def _tile_config():
    """Per-generation (tm_max, vmem_limit_bytes)."""
    kind = ""
    try:
        kind = jax.devices()[0].device_kind.lower()
    except Exception:
        pass
    if "v5" in kind or "v6" in kind:
        # 128 MiB physical VMEM: bigger M tiles + raised scoped limit.
        return 1024, 64 * 1024 * 1024
    # v7x (64 MiB VMEM / core), CPU interpret, or unknown: stay conservative.
    return 512, None


# ---------------------------------------------------------------------------
# Pallas kernels
# ---------------------------------------------------------------------------
def _conv_mm_single_k_kernel(act, with_stats, x_ref, w_ref, b_ref, *out_refs):
    """One-shot (tm, K) @ (K, N) + bias + activation (n_k == 1 path).

    No accumulator scratch / zero-init: the MXU result goes straight through
    the f32 epilogue into the output block.  Optionally emits per-channel
    sum / sum-of-squares for a following BatchNorm (padded rows are corrected
    analytically by the caller, so no in-kernel row mask is needed).
    """
    if with_stats:
        o_ref, sum_ref, sq_ref = out_refs
    else:
        (o_ref,) = out_refs

    y = jnp.dot(x_ref[...], w_ref[...], preferred_element_type=jnp.float32)
    y = y + b_ref[...]                                  # f32 epilogue
    if act == "lrelu":
        y = jnp.where(y > 0, y, 0.2 * y)
    elif act == "sigmoid":
        y = 1.0 / (1.0 + jnp.exp(-y))
    o_ref[...] = y.astype(o_ref.dtype)

    if with_stats:
        npad = y.shape[1]
        s = jnp.sum(y, axis=0, keepdims=True)           # (1, npad), f32
        q = jnp.sum(y * y, axis=0, keepdims=True)
        sum_ref[...] = jnp.broadcast_to(s[None], (1, 8, npad))
        sq_ref[...] = jnp.broadcast_to(q[None], (1, 8, npad))


def _conv_mm_multi_k_kernel(act, x_ref, w_ref, b_ref, o_ref, acc_ref):
    """K-tiled matmul with f32 VMEM accumulator (layer 4, K = 4096)."""
    # Grid queries stay at the kernel top level (inside a pl.when body they
    # land in a lax.cond branch, which interpret/CPU lowering rejects).
    k_idx = pl.program_id(1)
    k_last = pl.num_programs(1) - 1

    @pl.when(k_idx == 0)
    def _():
        acc_ref[...] = jnp.zeros_like(acc_ref)

    acc_ref[...] += jnp.dot(x_ref[...], w_ref[...],
                            preferred_element_type=jnp.float32)

    @pl.when(k_idx == k_last)
    def _():
        y = acc_ref[...] + b_ref[...]
        if act == "lrelu":
            y = jnp.where(y > 0, y, 0.2 * y)
        elif act == "sigmoid":
            y = 1.0 / (1.0 + jnp.exp(-y))
        o_ref[...] = y.astype(o_ref.dtype)


# ---------------------------------------------------------------------------
# Pallas wrappers
# ---------------------------------------------------------------------------
def _conv_matmul(cols, wmat, bias, act, with_stats=False,
                 out_dtype=jnp.bfloat16):
    m, kk = cols.shape
    cout = wmat.shape[1]
    np_ = _round_up(cout, 128)

    tm_max, vmem_limit = _tile_config()

    mp16 = _round_up(m, 16)                 # bf16 sublane packing
    tm = min(tm_max, mp16)
    if mp16 > 256 and mp16 <= tm:
        # Split a single large M tile in two so both v7x TensorCores get work.
        tm = _round_up((mp16 + 1) // 2, 16)
    mp = _round_up(mp16, tm)
    n_m = mp // tm

    if kk > _TK_MAX:                        # tile K only when it is large
        tk = _TK_MAX
        kp = _round_up(kk, tk)
    else:                                   # unpadded (layer 1: K = 48)
        tk, kp = kk, kk
    n_k = kp // tk
    assert not (with_stats and n_k > 1), "stats path assumes a single K tile"

    cols_p = cols.astype(jnp.bfloat16)      # no-op: cols is built in bf16
    if (mp, kp) != (m, kk):
        cols_p = jnp.pad(cols_p, ((0, mp - m), (0, kp - kk)))
    w_p = wmat.astype(jnp.bfloat16)
    if (kp, np_) != (kk, cout):
        w_p = jnp.pad(w_p, ((0, kp - kk), (0, np_ - cout)))
    b_p = bias.reshape(1, -1).astype(jnp.float32)
    if np_ != cout:
        b_p = jnp.pad(b_p, ((0, 0), (0, np_ - cout)))

    # Allow XLA to fuse the im2col producer into the cols input DMA.
    fusion = [True, False, False]

    if n_k == 1:
        out_shape = [jax.ShapeDtypeStruct((mp, np_), out_dtype)]
        out_specs = [pl.BlockSpec((tm, np_), lambda i: (i, 0))]
        if with_stats:
            out_shape += [jax.ShapeDtypeStruct((n_m, 8, np_), jnp.float32)] * 2
            out_specs += [pl.BlockSpec((1, 8, np_), lambda i: (i, 0, 0))] * 2
        return pl.pallas_call(
            functools.partial(_conv_mm_single_k_kernel, act, with_stats),
            out_shape=tuple(out_shape),
            grid=(n_m,),
            in_specs=[
                pl.BlockSpec((tm, kp), lambda i: (i, 0)),
                pl.BlockSpec((kp, np_), lambda i: (0, 0)),
                pl.BlockSpec((1, np_), lambda i: (0, 0)),
            ],
            out_specs=tuple(out_specs),
            compiler_params=pltpu.CompilerParams(
                dimension_semantics=("parallel",),
                allow_input_fusion=fusion,
                vmem_limit_bytes=vmem_limit),
        )(cols_p, w_p, b_p)

    return pl.pallas_call(
        functools.partial(_conv_mm_multi_k_kernel, act),
        out_shape=(jax.ShapeDtypeStruct((mp, np_), out_dtype),),
        grid=(n_m, n_k),
        in_specs=[
            pl.BlockSpec((tm, tk), lambda i, k: (i, k)),
            pl.BlockSpec((tk, np_), lambda i, k: (k, 0)),
            pl.BlockSpec((1, np_), lambda i, k: (0, 0)),
        ],
        out_specs=(pl.BlockSpec((tm, np_), lambda i, k: (i, 0)),),
        scratch_shapes=[pltpu.VMEM((tm, np_), jnp.float32)],
        compiler_params=pltpu.CompilerParams(
            dimension_semantics=("parallel", "arbitrary"),
            allow_input_fusion=fusion,
            vmem_limit_bytes=vmem_limit),
    )(cols_p, w_p, b_p)


# ---------------------------------------------------------------------------
# Conv layers = im2col (JAX glue, bf16) + Pallas kernels
# ---------------------------------------------------------------------------
def _im2col(x_nhwc, k, stride, pad):
    n, h, w, c = x_nhwc.shape
    xp = jnp.pad(x_nhwc, ((0, 0), (pad, pad), (pad, pad), (0, 0)))
    ho = (h + 2 * pad - k) // stride + 1
    wo = (w + 2 * pad - k) // stride + 1
    patches = []
    for i in range(k):
        for j in range(k):
            patches.append(
                xp[:, i:i + ho * stride:stride, j:j + wo * stride:stride, :])
    # [N, Ho, Wo, k*k, C] -> [N*Ho*Wo, k*k*C]  (order: kh, kw, Cin)
    cols = jnp.stack(patches, axis=-2).reshape(n * ho * wo, k * k * c)
    return cols, (n, ho, wo)


def conv2d_pallas(x_nhwc, w_hwio, bias, stride, pad, act,
                  out_dtype=jnp.bfloat16):
    k = w_hwio.shape[0]
    cout = w_hwio.shape[-1]
    cols, (n, ho, wo) = _im2col(x_nhwc.astype(jnp.bfloat16), k, stride, pad)
    m, kk = cols.shape
    y_pad = _conv_matmul(cols, w_hwio.reshape(kk, cout), bias, act,
                         out_dtype=out_dtype)[0]
    return y_pad[:m, :cout].reshape(n, ho, wo, cout)


def conv2d_bn_lrelu_pallas(x_nhwc, w_hwio, bias, gamma, beta,
                           stride, pad, eps=1e-5):
    """Conv (BN stats fused into the epilogue) -> BatchNorm -> LeakyReLU.

    The BN apply + LeakyReLU runs as plain-JAX elementwise on the bf16 conv
    output; XLA fuses it into the next layer's im2col producer, so there is
    no standalone affine Pallas pass and no extra feature-map round trip.
    """
    k = w_hwio.shape[0]
    cout = w_hwio.shape[-1]
    cols, (n, ho, wo) = _im2col(x_nhwc.astype(jnp.bfloat16), k, stride, pad)
    m, kk = cols.shape
    y_pad, s_pad, q_pad = _conv_matmul(cols, w_hwio.reshape(kk, cout), bias,
                                       act="none", with_stats=True,
                                       out_dtype=jnp.bfloat16)
    mp = y_pad.shape[0]
    n_extra = mp - m
    # Padded im2col rows are all-zero, so their f32 epilogue value is exactly
    # `bias`: subtract that contribution analytically (no in-kernel mask).
    ch_sum = jnp.sum(s_pad[:, 0, :cout], axis=0) - n_extra * bias
    ch_sq = jnp.sum(q_pad[:, 0, :cout], axis=0) - n_extra * bias * bias
    mean = ch_sum / m
    # NOTE: E[x^2]-E[x]^2 in f32; acceptable at these activation scales.
    var = ch_sq / m - mean * mean
    scale = gamma * jax.lax.rsqrt(var + eps)
    shift = beta - mean * scale
    y = y_pad[:m, :cout].astype(jnp.float32).reshape(n, ho, wo, cout)
    z = y * scale.reshape(1, 1, 1, -1) + shift.reshape(1, 1, 1, -1)
    return jnp.where(z > 0, z, 0.2 * z)


# ---------------------------------------------------------------------------
# Full PatchDiscriminator forward
# ---------------------------------------------------------------------------
def patch_discriminator_forward(x_nchw, params):
    x = jnp.transpose(x_nchw, (0, 2, 3, 1))                 # NCHW -> NHWC
    x = conv2d_pallas(x, params["w1"], params["b1"], 2, 1, act="lrelu")
    x = conv2d_bn_lrelu_pallas(x, params["w2"], params["b2"],
                               params["g2"], params["be2"], 2, 1)
    x = conv2d_bn_lrelu_pallas(x, params["w3"], params["b3"],
                               params["g3"], params["be3"], 2, 1)
    x = conv2d_pallas(x, params["w4"], params["b4"], 1, 1, act="sigmoid",
                      out_dtype=jnp.float32)                 # final probs in f32
    return jnp.transpose(x, (0, 3, 1, 2))                   # NHWC -> NCHW


# ---------------------------------------------------------------------------
# Pure-JAX reference (mirrors the kernel's bf16 operand / storage precision)
# ---------------------------------------------------------------------------
def _ref_conv(x, w, b, stride, pad):
    y = jax.lax.conv_general_dilated(
        x.astype(jnp.bfloat16), w.astype(jnp.bfloat16),
        (stride, stride), [(pad, pad), (pad, pad)],
        dimension_numbers=("NHWC", "HWIO", "NHWC"),
        preferred_element_type=jnp.float32)
    return y + b.reshape(1, 1, 1, -1)


def _bf16_round(x):
    return x.astype(jnp.bfloat16).astype(jnp.float32)


def reference_forward(x_nchw, p, eps=1e-5):
    x = jnp.transpose(x_nchw, (0, 2, 3, 1))
    h = _ref_conv(x, p["w1"], p["b1"], 2, 1)
    h = _bf16_round(jnp.where(h > 0, h, 0.2 * h))        # layer-1 out stored bf16
    for w, b, g, be in ((p["w2"], p["b2"], p["g2"], p["be2"]),
                        (p["w3"], p["b3"], p["g3"], p["be3"])):
        y = _ref_conv(h, w, b, 2, 1)
        mean = jnp.mean(y, axis=(0, 1, 2))
        var = jnp.mean(y * y, axis=(0, 1, 2)) - mean * mean
        scale = g * jax.lax.rsqrt(var + eps)
        shift = be - mean * scale
        y = _bf16_round(y)                               # conv out stored bf16
        z = y * scale.reshape(1, 1, 1, -1) + shift.reshape(1, 1, 1, -1)
        h = jnp.where(z > 0, z, 0.2 * z)
    y = jax.nn.sigmoid(_ref_conv(h, p["w4"], p["b4"], 1, 1))
    return jnp.transpose(y, (0, 3, 1, 2))


# ---------------------------------------------------------------------------
def make_params(key, in_channels=3):
    ks = jax.random.split(key, 12)

    def w(k, kh, kw, ci, co, scale):
        return (scale * jax.random.normal(k, (kh, kw, ci, co))).astype(jnp.float32)

    return {
        "w1": w(ks[0], 4, 4, in_channels, 64, 0.1),
        "b1": (0.05 * jax.random.normal(ks[1], (64,))).astype(jnp.float32),
        "w2": w(ks[2], 4, 4, 64, 128, 0.05),
        "b2": (0.05 * jax.random.normal(ks[3], (128,))).astype(jnp.float32),
        "g2": (1.0 + 0.1 * jax.random.normal(ks[4], (128,))).astype(jnp.float32),
        "be2": (0.1 * jax.random.normal(ks[5], (128,))).astype(jnp.float32),
        "w3": w(ks[6], 4, 4, 128, 256, 0.03),
        "b3": (0.05 * jax.random.normal(ks[7], (256,))).astype(jnp.float32),
        "g3": (1.0 + 0.1 * jax.random.normal(ks[8], (256,))).astype(jnp.float32),
        "be3": (0.1 * jax.random.normal(ks[9], (256,))).astype(jnp.float32),
        "w4": w(ks[10], 4, 4, 256, 1, 0.03),
        "b4": (0.05 * jax.random.normal(ks[11], (1,))).astype(jnp.float32),
    }


if __name__ == "__main__":
    key = jax.random.PRNGKey(0)
    k_x, k_p = jax.random.split(key)

    # Small shapes consistent with the module: batch=2, in_channels=3, 16x16.
    x = jax.random.normal(k_x, (2, 3, 16, 16), dtype=jnp.float32)  # NCHW
    params = make_params(k_p, in_channels=3)

    fwd = jax.jit(patch_discriminator_forward)
    out = jax.block_until_ready(fwd(x, params))
    assert out.shape == (2, 1, 1, 1), out.shape

    ref = jax.block_until_ready(reference_forward(x, params))
    assert jnp.allclose(out, ref, atol=2e-2, rtol=2e-2), (out, ref)

    print("KERNEL_OK")
</pallas_src>

<mosaic_0001>
module attributes {stable_mosaic.version = 11 : i64} {
  func.func @_conv_mm_single_k_kernel(%arg0: i32, %arg1: memref<128x48xbf16, #tpu.memory_space<vmem>>, %arg2: memref<48x128xbf16, #tpu.memory_space<vmem>>, %arg3: memref<1x128xf32, #tpu.memory_space<vmem>>, %arg4: memref<128x128xbf16, #tpu.memory_space<vmem>>) attributes {dimension_semantics = [#tpu.dimension_semantics<parallel>], iteration_bounds = array<i64: 1>, scalar_prefetch = 0 : i64, scratch_operands = 0 : i64, tpu.core_type = #tpu.core_type<tc>, window_params = [{transform_indices = @transform_0, window_bounds = array<i64: 128, 48>}, {pipeline_mode = #tpu.pipeline_mode<synchronous>, transform_indices = @transform_1, window_bounds = array<i64: 48, 128>}, {pipeline_mode = #tpu.pipeline_mode<synchronous>, transform_indices = @transform_2, window_bounds = array<i64: 1, 128>}, {transform_indices = @transform_3, window_bounds = array<i64: 128, 128>}]} {
    %c0 = arith.constant 0 : index
    %c0_0 = arith.constant 0 : index
    %0 = vector.load %arg1[%c0, %c0_0] : memref<128x48xbf16, #tpu.memory_space<vmem>>, vector<128x48xbf16>
    %c0_1 = arith.constant 0 : index
    %c0_2 = arith.constant 0 : index
    %1 = vector.load %arg2[%c0_1, %c0_2] : memref<48x128xbf16, #tpu.memory_space<vmem>>, vector<48x128xbf16>
    %cst = arith.constant dense<0.000000e+00> : vector<128x128xf32>
    %2 = tpu.matmul %0, %1, %cst {dimension_numbers = #tpu.dot_dimension_numbers<[1], [0], [0], [1], [0, 0, 1, 1], [], []>} : vector<128x48xbf16>, vector<48x128xbf16>, vector<128x128xf32> -> vector<128x128xf32>
    %c0_3 = arith.constant 0 : index
    %c0_4 = arith.constant 0 : index
    %3 = vector.load %arg3[%c0_3, %c0_4] : memref<1x128xf32, #tpu.memory_space<vmem>>, vector<1x128xf32>
    %4 = vector.broadcast %3 : vector<1x128xf32> to vector<128x128xf32>
    %5 = arith.addf %2, %4 : vector<128x128xf32>
    %cst_5 = arith.constant 0.000000e+00 : f32
    %6 = vector.broadcast %cst_5 : f32 to vector<128x128xf32>
    %7 = arith.cmpf ogt, %5, %6 : vector<128x128xf32>
    %cst_6 = arith.constant 2.000000e-01 : f32
    %8 = vector.broadcast %cst_6 : f32 to vector<128x128xf32>
    %9 = arith.mulf %8, %5 : vector<128x128xf32>
    %10 = arith.select %7, %5, %9 : vector<128x128xi1>, vector<128x128xf32>
    %11 = arith.truncf %10 : vector<128x128xf32> to vector<128x128xbf16>
    %c0_7 = arith.constant 0 : index
    %c0_8 = arith.constant 0 : index
    %12 = vector.load %arg4[%c0_7, %c0_8] : memref<128x128xbf16, #tpu.memory_space<vmem>>, vector<128x128xbf16>
    tpu.vector_store %arg4[%c0_7, %c0_8], %11 {strides = array<i32>} : memref<128x128xbf16, #tpu.memory_space<vmem>>, vector<128x128xbf16>,
    return
  }
  func.func @transform_0(%arg0: i32) -> (i32, i32) {
    %c0_i32 = arith.constant 0 : i32
    %c0_i32_0 = arith.constant 0 : i32
    return %arg0, %c0_i32 : i32, i32
  }
  func.func @transform_1(%arg0: i32) -> (i32, i32) {
    %c0_i32 = arith.constant 0 : i32
    %c0_i32_0 = arith.constant 0 : i32
    %c0_i32_1 = arith.constant 0 : i32
    return %c0_i32, %c0_i32_0 : i32, i32
  }
  func.func @transform_2(%arg0: i32) -> (i32, i32) {
    %c0_i32 = arith.constant 0 : i32
    %c0_i32_0 = arith.constant 0 : i32
    %c0_i32_1 = arith.constant 0 : i32
    return %c0_i32, %c0_i32_0 : i32, i32
  }
  func.func @transform_3(%arg0: i32) -> (i32, i32) {
    %c0_i32 = arith.constant 0 : i32
    %c0_i32_0 = arith.constant 0 : i32
    return %arg0, %c0_i32 : i32, i32
  }
}

module attributes {stable_mosaic.version = 11 : i64} {
  func.func @_conv_mm_single_k_kernel(%arg0: i32, %arg1: memref<32x1024xbf16, #tpu.memory_space<vmem>>, %arg2: memref<1024x128xbf16, #tpu.memory_space<vmem>>, %arg3: memref<1x128xf32, #tpu.memory_space<vmem>>, %arg4: memref<32x128xbf16, #tpu.memory_space<vmem>>, %arg5: memref<1x8x128xf32, #tpu.memory_space<vmem>>, %arg6: memref<1x8x128xf32, #tpu.memory_space<vmem>>) attributes {dimension_semantics = [#tpu.dimension_semantics<parallel>], iteration_bounds = array<i64: 1>, scalar_prefetch = 0 : i64, scratch_operands = 0 : i64, tpu.core_type = #tpu.core_type<tc>, window_params = [{transform_indices = @transform_0, window_bounds = array<i64: 32, 1024>}, {pipeline_mode = #tpu.pipeline_mode<synchronous>, transform_indices = @transform_1, window_bounds = array<i64: 1024, 128>}, {pipeline_mode = #tpu.pipeline_mode<synchronous>, transform_indices = @transform_2, window_bounds = array<i64: 1, 128>}, {transform_indices = @transform_3, window_bounds = array<i64: 32, 128>}, {transform_indices = @transform_4, window_bounds = array<i64: 1, 8, 128>}, {transform_indices = @transform_5, window_bounds = array<i64: 1, 8, 128>}]} {
    %c0 = arith.constant 0 : index
    %c0_0 = arith.constant 0 : index
    %0 = vector.load %arg1[%c0, %c0_0] : memref<32x1024xbf16, #tpu.memory_space<vmem>>, vector<32x1024xbf16>
    %c0_1 = arith.constant 0 : index
    %c0_2 = arith.constant 0 : index
    %1 = vector.load %arg2[%c0_1, %c0_2] : memref<1024x128xbf16, #tpu.memory_space<vmem>>, vector<1024x128xbf16>
    %cst = arith.constant dense<0.000000e+00> : vector<32x128xf32>
    %2 = tpu.matmul %0, %1, %cst {dimension_numbers = #tpu.dot_dimension_numbers<[1], [0], [0], [1], [0, 0, 1, 1], [], []>} : vector<32x1024xbf16>, vector<1024x128xbf16>, vector<32x128xf32> -> vector<32x128xf32>
    %c0_3 = arith.constant 0 : index
    %c0_4 = arith.constant 0 : index
    %3 = vector.load %arg3[%c0_3, %c0_4] : memref<1x128xf32, #tpu.memory_space<vmem>>, vector<1x128xf32>
    %4 = vector.broadcast %3 : vector<1x128xf32> to vector<32x128xf32>
    %5 = arith.addf %2, %4 : vector<32x128xf32>
    %6 = arith.truncf %5 : vector<32x128xf32> to vector<32x128xbf16>
    %c0_5 = arith.constant 0 : index
    %c0_6 = arith.constant 0 : index
    %7 = vector.load %arg4[%c0_5, %c0_6] : memref<32x128xbf16, #tpu.memory_space<vmem>>, vector<32x128xbf16>
    tpu.vector_store %arg4[%c0_5, %c0_6], %6 {strides = array<i32>} : memref<32x128xbf16, #tpu.memory_space<vmem>>, vector<32x128xbf16>,
    %cst_7 = arith.constant dense<0.000000e+00> : vector<128xf32>
    %8 = vector.multi_reduction <add>, %5, %cst_7 [0] : vector<32x128xf32> to vector<128xf32>
    %9 = vector.shape_cast %8 : vector<128xf32> to vector<1x128xf32>
    %10 = arith.mulf %5, %5 : vector<32x128xf32>
    %cst_8 = arith.constant dense<0.000000e+00> : vector<128xf32>
    %11 = vector.multi_reduction <add>, %10, %cst_8 [0] : vector<32x128xf32> to vector<128xf32>
    %12 = vector.shape_cast %11 : vector<128xf32> to vector<1x128xf32>
    %13 = vector.shape_cast %9 : vector<1x128xf32> to vector<1x1x128xf32>
    %14 = vector.shape_cast %13 : vector<1x1x128xf32> to vector<1x1x128xf32>
    %15 = vector.broadcast %14 : vector<1x1x128xf32> to vector<1x8x128xf32>
    %c0_9 = arith.constant 0 : index
    %c0_10 = arith.constant 0 : index
    %c0_11 = arith.constant 0 : index
    %16 = vector.load %arg5[%c0_9, %c0_10, %c0_11] : memref<1x8x128xf32, #tpu.memory_space<vmem>>, vector<1x8x128xf32>
    tpu.vector_store %arg5[%c0_9, %c0_10, %c0_11], %15 {strides = array<i32>} : memref<1x8x128xf32, #tpu.memory_space<vmem>>, vector<1x8x128xf32>,
    %17 = vector.shape_cast %12 : vector<1x128xf32> to vector<1x1x128xf32>
    %18 = vector.shape_cast %17 : vector<1x1x128xf32> to vector<1x1x128xf32>
    %19 = vector.broadcast %18 : vector<1x1x128xf32> to vector<1x8x128xf32>
    %c0_12 = arith.constant 0 : index
    %c0_13 = arith.constant 0 : index
    %c0_14 = arith.constant 0 : index
    %20 = vector.load %arg6[%c0_12, %c0_13, %c0_14] : memref<1x8x128xf32, #tpu.memory_space<vmem>>, vector<1x8x128xf32>
    tpu.vector_store %arg6[%c0_12, %c0_13, %c0_14], %19 {strides = array<i32>} : memref<1x8x128xf32, #tpu.memory_space<vmem>>, vector<1x8x128xf32>,
    return
  }
  func.func @transform_0(%arg0: i32) -> (i32, i32) {
    %c0_i32 = arith.constant 0 : i32
    %c0_i32_0 = arith.constant 0 : i32
    return %arg0, %c0_i32 : i32, i32
  }
  func.func @transform_1(%arg0: i32) -> (i32, i32) {
    %c0_i32 = arith.constant 0 : i32
    %c0_i32_0 = arith.constant 0 : i32
    %c0_i32_1 = arith.constant 0 : i32
    return %c0_i32, %c0_i32_0 : i32, i32
  }
  func.func @transform_2(%arg0: i32) -> (i32, i32) {
    %c0_i32 = arith.constant 0 : i32
    %c0_i32_0 = arith.constant 0 : i32
    %c0_i32_1 = arith.constant 0 : i32
    return %c0_i32, %c0_i32_0 : i32, i32
  }
  func.func @transform_3(%arg0: i32) -> (i32, i32) {
    %c0_i32 = arith.constant 0 : i32
    %c0_i32_0 = arith.constant 0 : i32
    return %arg0, %c0_i32 : i32, i32
  }
  func.func @transform_4(%arg0: i32) -> (i32, i32, i32) {
    %c0_i32 = arith.constant 0 : i32
    %c0_i32_0 = arith.constant 0 : i32
    %c0_i32_1 = arith.constant 0 : i32
    return %arg0, %c0_i32, %c0_i32_0 : i32, i32, i32
  }
  func.func @transform_5(%arg0: i32) -> (i32, i32, i32) {
    %c0_i32 = arith.constant 0 : i32
    %c0_i32_0 = arith.constant 0 : i32
    %c0_i32_1 = arith.constant 0 : i32
    return %arg0, %c0_i32, %c0_i32_0 : i32, i32, i32
  }
}

module attributes {stable_mosaic.version = 11 : i64} {
  func.func @_conv_mm_single_k_kernel(%arg0: i32, %arg1: memref<16x2048xbf16, #tpu.memory_space<vmem>>, %arg2: memref<2048x256xbf16, #tpu.memory_space<vmem>>, %arg3: memref<1x256xf32, #tpu.memory_space<vmem>>, %arg4: memref<16x256xbf16, #tpu.memory_space<vmem>>, %arg5: memref<1x8x256xf32, #tpu.memory_space<vmem>>, %arg6: memref<1x8x256xf32, #tpu.memory_space<vmem>>) attributes {dimension_semantics = [#tpu.dimension_semantics<parallel>], iteration_bounds = array<i64: 1>, scalar_prefetch = 0 : i64, scratch_operands = 0 : i64, tpu.core_type = #tpu.core_type<tc>, window_params = [{transform_indices = @transform_0, window_bounds = array<i64: 16, 2048>}, {pipeline_mode = #tpu.pipeline_mode<synchronous>, transform_indices = @transform_1, window_bounds = array<i64: 2048, 256>}, {pipeline_mode = #tpu.pipeline_mode<synchronous>, transform_indices = @transform_2, window_bounds = array<i64: 1, 256>}, {transform_indices = @transform_3, window_bounds = array<i64: 16, 256>}, {transform_indices = @transform_4, window_bounds = array<i64: 1, 8, 256>}, {transform_indices = @transform_5, window_bounds = array<i64: 1, 8, 256>}]} {
    %c0 = arith.constant 0 : index
    %c0_0 = arith.constant 0 : index
    %0 = vector.load %arg1[%c0, %c0_0] : memref<16x2048xbf16, #tpu.memory_space<vmem>>, vector<16x2048xbf16>
    %c0_1 = arith.constant 0 : index
    %c0_2 = arith.constant 0 : index
    %1 = vector.load %arg2[%c0_1, %c0_2] : memref<2048x256xbf16, #tpu.memory_space<vmem>>, vector<2048x256xbf16>
    %cst = arith.constant dense<0.000000e+00> : vector<16x256xf32>
    %2 = tpu.matmul %0, %1, %cst {dimension_numbers = #tpu.dot_dimension_numbers<[1], [0], [0], [1], [0, 0, 1, 1], [], []>} : vector<16x2048xbf16>, vector<2048x256xbf16>, vector<16x256xf32> -> vector<16x256xf32>
    %c0_3 = arith.constant 0 : index
    %c0_4 = arith.constant 0 : index
    %3 = vector.load %arg3[%c0_3, %c0_4] : memref<1x256xf32, #tpu.memory_space<vmem>>, vector<1x256xf32>
    %4 = vector.broadcast %3 : vector<1x256xf32> to vector<16x256xf32>
    %5 = arith.addf %2, %4 : vector<16x256xf32>
    %6 = arith.truncf %5 : vector<16x256xf32> to vector<16x256xbf16>
    %c0_5 = arith.constant 0 : index
    %c0_6 = arith.constant 0 : index
    %7 = vector.load %arg4[%c0_5, %c0_6] : memref<16x256xbf16, #tpu.memory_space<vmem>>, vector<16x256xbf16>
    tpu.vector_store %arg4[%c0_5, %c0_6], %6 {strides = array<i32>} : memref<16x256xbf16, #tpu.memory_space<vmem>>, vector<16x256xbf16>,
    %cst_7 = arith.constant dense<0.000000e+00> : vector<256xf32>
    %8 = vector.multi_reduction <add>, %5, %cst_7 [0] : vector<16x256xf32> to vector<256xf32>
    %9 = vector.shape_cast %8 : vector<256xf32> to vector<1x256xf32>
    %10 = arith.mulf %5, %5 : vector<16x256xf32>
    %cst_8 = arith.constant dense<0.000000e+00> : vector<256xf32>
    %11 = vector.multi_reduction <add>, %10, %cst_8 [0] : vector<16x256xf32> to vector<256xf32>
    %12 = vector.shape_cast %11 : vector<256xf32> to vector<1x256xf32>
    %13 = vector.shape_cast %9 : vector<1x256xf32> to vector<1x1x256xf32>
    %14 = vector.shape_cast %13 : vector<1x1x256xf32> to vector<1x1x256xf32>
    %15 = vector.broadcast %14 : vector<1x1x256xf32> to vector<1x8x256xf32>
    %c0_9 = arith.constant 0 : index
    %c0_10 = arith.constant 0 : index
    %c0_11 = arith.constant 0 : index
    %16 = vector.load %arg5[%c0_9, %c0_10, %c0_11] : memref<1x8x256xf32, #tpu.memory_space<vmem>>, vector<1x8x256xf32>
    tpu.vector_store %arg5[%c0_9, %c0_10, %c0_11], %15 {strides = array<i32>} : memref<1x8x256xf32, #tpu.memory_space<vmem>>, vector<1x8x256xf32>,
    %17 = vector.shape_cast %12 : vector<1x256xf32> to vector<1x1x256xf32>
    %18 = vector.shape_cast %17 : vector<1x1x256xf32> to vector<1x1x256xf32>
    %19 = vector.broadcast %18 : vector<1x1x256xf32> to vector<1x8x256xf32>
    %c0_12 = arith.constant 0 : index
    %c0_13 = arith.constant 0 : index
    %c0_14 = arith.constant 0 : index
    %20 = vector.load %arg6[%c0_12, %c0_13, %c0_14] : memref<1x8x256xf32, #tpu.memory_space<vmem>>, vector<1x8x256xf32>
    tpu.vector_store %arg6[%c0_12, %c0_13, %c0_14], %19 {strides = array<i32>} : memref<1x8x256xf32, #tpu.memory_space<vmem>>, vector<1x8x256xf32>,
    return
  }
  func.func @transform_0(%arg0: i32) -> (i32, i32) {
    %c0_i32 = arith.constant 0 : i32
    %c0_i32_0 = arith.constant 0 : i32
    return %arg0, %c0_i32 : i32, i32
  }
  func.func @transform_1(%arg0: i32) -> (i32, i32) {
    %c0_i32 = arith.constant 0 : i32
    %c0_i32_0 = arith.constant 0 : i32
    %c0_i32_1 = arith.constant 0 : i32
    return %c0_i32, %c0_i32_0 : i32, i32
  }
  func.func @transform_2(%arg0: i32) -> (i32, i32) {
    %c0_i32 = arith.constant 0 : i32
    %c0_i32_0 = arith.constant 0 : i32
    %c0_i32_1 = arith.constant 0 : i32
    return %c0_i32, %c0_i32_0 : i32, i32
  }
  func.func @transform_3(%arg0: i32) -> (i32, i32) {
    %c0_i32 = arith.constant 0 : i32
    %c0_i32_0 = arith.constant 0 : i32
    return %arg0, %c0_i32 : i32, i32
  }
  func.func @transform_4(%arg0: i32) -> (i32, i32, i32) {
    %c0_i32 = arith.constant 0 : i32
    %c0_i32_0 = arith.constant 0 : i32
    %c0_i32_1 = arith.constant 0 : i32
    return %arg0, %c0_i32, %c0_i32_0 : i32, i32, i32
  }
  func.func @transform_5(%arg0: i32) -> (i32, i32, i32) {
    %c0_i32 = arith.constant 0 : i32
    %c0_i32_0 = arith.constant 0 : i32
    %c0_i32_1 = arith.constant 0 : i32
    return %arg0, %c0_i32, %c0_i32_0 : i32, i32, i32
  }
}

module attributes {stable_mosaic.version = 11 : i64} {
  func.func @_conv_mm_multi_k_kernel(%arg0: i32, %arg1: i32, %arg2: memref<16x2048xbf16, #tpu.memory_space<vmem>>, %arg3: memref<2048x128xbf16, #tpu.memory_space<vmem>>, %arg4: memref<1x128xf32, #tpu.memory_space<vmem>>, %arg5: memref<16x128xf32, #tpu.memory_space<vmem>>, %arg6: memref<16x128xf32, #tpu.memory_space<vmem>>) attributes {dimension_semantics = [#tpu.dimension_semantics<parallel>, #tpu.dimension_semantics<arbitrary>], iteration_bounds = array<i64: 1, 2>, scalar_prefetch = 0 : i64, scratch_operands = 1 : i64, tpu.core_type = #tpu.core_type<tc>, window_params = [{transform_indices = @transform_0, window_bounds = array<i64: 16, 2048>}, {transform_indices = @transform_1, window_bounds = array<i64: 2048, 128>}, {pipeline_mode = #tpu.pipeline_mode<synchronous>, transform_indices = @transform_2, window_bounds = array<i64: 1, 128>}, {transform_indices = @transform_3, window_bounds = array<i64: 16, 128>}]} {
    %c0_i32 = arith.constant 0 : i32
    %0 = arith.cmpi eq, %arg1, %c0_i32 : i32
    %1 = arith.extui %0 : i1 to i32
    %c0_i32_0 = arith.constant 0 : i32
    %2 = arith.cmpi ne, %1, %c0_i32_0 : i32
    scf.if %2 {
      %cst_9 = arith.constant 0.000000e+00 : f32
      %12 = vector.broadcast %cst_9 : f32 to vector<16x128xf32>
      %c0_10 = arith.constant 0 : index
      %c0_11 = arith.constant 0 : index
      %13 = vector.load %arg6[%c0_10, %c0_11] : memref<16x128xf32, #tpu.memory_space<vmem>>, vector<16x128xf32>
      tpu.vector_store %arg6[%c0_10, %c0_11], %12 {strides = array<i32>} : memref<16x128xf32, #tpu.memory_space<vmem>>, vector<16x128xf32>,
    } else {
    }
    %c0 = arith.constant 0 : index
    %c0_1 = arith.constant 0 : index
    %3 = vector.load %arg6[%c0, %c0_1] : memref<16x128xf32, #tpu.memory_space<vmem>>, vector<16x128xf32>
    %c0_2 = arith.constant 0 : index
    %c0_3 = arith.constant 0 : index
    %4 = vector.load %arg2[%c0_2, %c0_3] : memref<16x2048xbf16, #tpu.memory_space<vmem>>, vector<16x2048xbf16>
    %c0_4 = arith.constant 0 : index
    %c0_5 = arith.constant 0 : index
    %5 = vector.load %arg3[%c0_4, %c0_5] : memref<2048x128xbf16, #tpu.memory_space<vmem>>, vector<2048x128xbf16>
    %cst = arith.constant dense<0.000000e+00> : vector<16x128xf32>
    %6 = tpu.matmul %4, %5, %cst {dimension_numbers = #tpu.dot_dimension_numbers<[1], [0], [0], [1], [0, 0, 1, 1], [], []>} : vector<16x2048xbf16>, vector<2048x128xbf16>, vector<16x128xf32> -> vector<16x128xf32>
    %7 = arith.addf %3, %6 : vector<16x128xf32>
    %c0_6 = arith.constant 0 : index
    %c0_7 = arith.constant 0 : index
    %8 = vector.load %arg6[%c0_6, %c0_7] : memref<16x128xf32, #tpu.memory_space<vmem>>, vector<16x128xf32>
    tpu.vector_store %arg6[%c0_6, %c0_7], %7 {strides = array<i32>} : memref<16x128xf32, #tpu.memory_space<vmem>>, vector<16x128xf32>,
    %c1_i32 = arith.constant 1 : i32
    %9 = arith.cmpi eq, %arg1, %c1_i32 : i32
    %10 = arith.extui %9 : i1 to i32
    %c0_i32_8 = arith.constant 0 : i32
    %11 = arith.cmpi ne, %10, %c0_i32_8 : i32
    scf.if %11 {
      %c0_9 = arith.constant 0 : index
      %c0_10 = arith.constant 0 : index
      %12 = vector.load %arg6[%c0_9, %c0_10] : memref<16x128xf32, #tpu.memory_space<vmem>>, vector<16x128xf32>
      %c0_11 = arith.constant 0 : index
      %c0_12 = arith.constant 0 : index
      %13 = vector.load %arg4[%c0_11, %c0_12] : memref<1x128xf32, #tpu.memory_space<vmem>>, vector<1x128xf32>
      %14 = vector.broadcast %13 : vector<1x128xf32> to vector<16x128xf32>
      %15 = arith.addf %12, %14 : vector<16x128xf32>
      %cst_13 = arith.constant 0.000000e+00 : f32
      %16 = vector.broadcast %cst_13 : f32 to vector<16x128xf32>
      %17 = arith.subf %16, %15 : vector<16x128xf32>
      %18 = math.exp %17 : vector<16x128xf32>
      %cst_14 = arith.constant 1.000000e+00 : f32
      %19 = vector.broadcast %cst_14 : f32 to vector<16x128xf32>
      %20 = arith.addf %19, %18 : vector<16x128xf32>
      %cst_15 = arith.constant 1.000000e+00 : f32
      %21 = vector.broadcast %cst_15 : f32 to vector<16x128xf32>
      %22 = arith.divf %21, %20 : vector<16x128xf32>
      %c0_16 = arith.constant 0 : index
      %c0_17 = arith.constant 0 : index
      %23 = vector.load %arg5[%c0_16, %c0_17] : memref<16x128xf32, #tpu.memory_space<vmem>>, vector<16x128xf32>
      tpu.vector_store %arg5[%c0_16, %c0_17], %22 {strides = array<i32>} : memref<16x128xf32, #tpu.memory_space<vmem>>, vector<16x128xf32>,
    } else {
    }
    return
  }
  func.func @transform_0(%arg0: i32, %arg1: i32) -> (i32, i32) {
    %c0_i32 = arith.constant 0 : i32
    return %arg0, %arg1 : i32, i32
  }
  func.func @transform_1(%arg0: i32, %arg1: i32) -> (i32, i32) {
    %c0_i32 = arith.constant 0 : i32
    %c0_i32_0 = arith.constant 0 : i32
    return %arg1, %c0_i32 : i32, i32
  }
  func.func @transform_2(%arg0: i32, %arg1: i32) -> (i32, i32) {
    %c0_i32 = arith.constant 0 : i32
    %c0_i32_0 = arith.constant 0 : i32
    %c0_i32_1 = arith.constant 0 : i32
    return %c0_i32, %c0_i32_0 : i32, i32
  }
  func.func @transform_3(%arg0: i32, %arg1: i32) -> (i32, i32) {
    %c0_i32 = arith.constant 0 : i32
    %c0_i32_0 = arith.constant 0 : i32
    return %arg0, %c0_i32 : i32, i32
  }
}

</mosaic_0001>

<bundles_post_ra>
// kernel: patch_discriminator_forward.6
= control target key start
LH: loop header
LB: loop body
LE: loop exit
PB: predicated region body
PF: predicated region fallthrough
CT: control target
= control target key end

     0   :  { %vm102_vm0 = vcmask 392192   ;;  %s615_s1 = inlined_call_operand.vmem [shape: bf16[48,128], index: 1, kind: input, shape index: {}]   ;;  %s616_s0 = inlined_call_operand.vmem [shape: bf16[128,48], index: 0, kind: input, shape index: {}]   ;;  %s617_s2 = inlined_call_operand.vmem [shape: f32[1,128], index: 2, kind: input, shape index: {}]   ;;  %s618_s3 = inlined_call_operand.vmem [shape: bf16[128,128], index: 3, kind: output, shape index: {}]  }
   0x1   :  { %v494_v0 = vld [vmem:[%s615_s1] sm:$0xff]   ;;  %v495_v1 = vld [vmem:[%s615_s1 + $0x8] sm:$0xff]   ;;  %v496_v2 = vld [vmem:[%s615_s1 + $0x10] sm:$0xff]  }
   0x2   :  { %466 = vmatprep.subr.bf16.mxu0 %v494_v0  ;;  %488 = vmatprep.subr.bf16.mxu1 %v494_v0  ;;  %v497_v3 = vld [vmem:[%s616_s0] sm:$0xff]   ;;  %v499_v5 = vld [vmem:[%s616_s0 + $0x8] sm:$0xff]   ;;  %v501_v7 = vld [vmem:[%s616_s0 + $0x10] sm:$0xff]  }
   0x3   :  { %467 = vmatpush3.bf16.msra.mxu0 %v494_v0  ;;  %491 = vmatpush3.bf16.msra.mxu1 %v494_v0  ;;  %v498_v4 = vld [vmem:[%s616_s0 + $0x20] sm:$0xff]   ;;  %v500_v6 = vld [vmem:[%s616_s0 + $0x28] sm:$0xff]   ;;  %v502_v8 = vld [vmem:[%s616_s0 + $0x30] sm:$0xff]  }
   0x4   :  { %468 = vmatprep.subr.bf16.mxu0 %v495_v1  ;;  %489 = vmatprep.subr.bf16.mxu1 %v495_v1  ;;  %v503_v9 = vld [vmem:[%s616_s0 + $0x18] sm:$0xff]   ;;  %v569_v11 = vld [vmem:[%s617_s2] ss:$0 sm:$0xff] }
   0x5   :  { %472 = vmatprep.mubr.msk.bf16.mxu0 %vm102_vm0, %v497_v3  ;;  %480 = vmatprep.mubr.msk.bf16.mxu1 %vm102_vm0, %v498_v4  ;;  %v504_v10 = vld [vmem:[%s616_s0 + $0x38] sm:$0xff]  }
   0x7   :  { %469 = vmatpush3.bf16.msra.mxu0 %v495_v1  ;;  %492 = vmatpush3.bf16.msra.mxu1 %v495_v1 }
   0x8   :  { %470 = vmatprep.subr.bf16.mxu0 %v496_v2  ;;  %490 = vmatprep.subr.bf16.mxu1 %v496_v2 }
   0xb   :  { %471 = vmatpush3.bf16.msra.mxu0 %v496_v2  ;;  %493 = vmatpush3.bf16.msra.mxu1 %v496_v2 }
   0xe   :  { %473 = vmatmul.mubr.msk.bf16.vlgmr.msra.gmra.mrb[0].mxu0 %vm102_vm0, %v499_v5  ;;  %481 = vmatmul.mubr.msk.bf16.vlgmr.msra.gmra.mrb[0].mxu1 %vm102_vm0, %v500_v6 }
   0xf   :  { %476 = vmatprep.mubr.msk.bf16.mxu0 %vm102_vm0, %v501_v7  ;;  %484 = vmatprep.mubr.msk.bf16.mxu1 %vm102_vm0, %v502_v8 }
  0x16   :  { %477 = vmatmul.mubr.msk.bf16.gmra.mrb[4].mxu0 %vm102_vm0, %v503_v9  ;;  %485 = vmatmul.mubr.msk.bf16.gmra.mrb[4].mxu1 %vm102_vm0, %v504_v10 }
  0xe1   :  { %v474_v12 = vpop.f32.mrb[0].mxu0  ;;  %v482_v13 = vpop.f32.mrb[0].mxu1 }
  0xe2   :  { %v170_v14 = vadd.f32 %v474_v12, %v569_v11  ;;  %v202_v15 = vadd.f32 %v482_v13, %v569_v11  ;;  %v161_v16 = vpop.f32.mrb[1].mxu0  ;;  %v193_v17 = vpop.f32.mrb[1].mxu1 }
  0xe3   :  { %v162_v18 = vadd.f32 %v569_v11, %v161_v16  ;;  %v194_v19 = vadd.f32 %v569_v11, %v193_v17  ;;  %v475_v20 = vpop.f32.mrb[2].mxu0  ;;  %v483_v21 = vpop.f32.mrb[2].mxu1 }
  0xe4   :  { %vm226_vm1 = vcmp.gt.f32.partialorder %v170_v14, 0.0  ;;  %v242_v22 = vmul.f32 0.2, %v170_v14  ;;  %vm234_vm2 = vcmp.gt.f32.partialorder %v202_v15, 0.0  ;;  %v250_v23 = vmul.f32 0.2, %v202_v15 }
  0xe5   :  { %vm224_vm3 = vcmp.gt.f32.partialorder %v162_v18, 0.0  ;;  %v240_v24 = vmul.f32 0.2, %v162_v18  ;;  %vm232_vm4 = vcmp.gt.f32.partialorder %v194_v19, 0.0  ;;  %v248_v25 = vmul.f32 0.2, %v194_v19 }
  0xe6   :  { %v173_v26 = vadd.f32 %v475_v20, %v569_v11  ;;  %v205_v27 = vadd.f32 %v483_v21, %v569_v11  ;;  %v164_v28 = vpop.f32.mrb[3].mxu0  ;;  %v196_v29 = vpop.f32.mrb[3].mxu1  ;;  %v258_v30 = vsel %vm226_vm1, %v170_v14, %v242_v22  ;;  %v266_v31 = vsel %vm234_vm2, %v202_v15, %v250_v23 }
  0xe7   :  { %v165_v32 = vadd.f32 %v569_v11, %v164_v28  ;;  %v197_v33 = vadd.f32 %v569_v11, %v196_v29  ;;  %v256_v38 = vsel %vm224_vm3, %v162_v18, %v240_v24  ;;  %v264_v39 = vsel %vm232_vm4, %v194_v19, %v248_v25 }
  0xe8   :  { %vm227_vm5 = vcmp.gt.f32.partialorder %v173_v26, 0.0  ;;  %v243_v34 = vmul.f32 0.2, %v173_v26  ;;  %vm235_vm6 = vcmp.gt.f32.partialorder %v205_v27, 0.0  ;;  %v251_v35 = vmul.f32 0.2, %v205_v27 }
  0xe9   :  { %vm225_vm7 = vcmp.gt.f32.partialorder %v165_v32, 0.0  ;;  %v241_v36 = vmul.f32 0.2, %v165_v32  ;;  %vm233_vm8 = vcmp.gt.f32.partialorder %v197_v33, 0.0  ;;  %v249_v37 = vmul.f32 0.2, %v197_v33 }
  0xea   :  { %v259_v40 = vsel %vm227_vm5, %v173_v26, %v243_v34  ;;  %v267_v41 = vsel %vm235_vm6, %v205_v27, %v251_v35  ;;  %v478_v42 = vpop.f32.mrb[4].mxu0  ;;  %v486_v43 = vpop.f32.mrb[4].mxu1 }
  0xeb   :  { %v416_v44 = vpack.c.bf16 %v259_v40, %v258_v30  ;;  %v436_v45 = vpack.c.bf16 %v267_v41, %v266_v31  ;;  %v257_v46 = vsel %vm225_vm7, %v165_v32, %v241_v36  ;;  %v265_v47 = vsel %vm233_vm8, %v197_v33, %v249_v37  ;;  %v177_v48 = vpop.f32.mrb[5].mxu0  ;;  %v209_v49 = vpop.f32.mrb[5].mxu1 }
  0xec   :  { %v411_v50 = vpack.c.bf16 %v257_v46, %v256_v38  ;;  %v431_v51 = vpack.c.bf16 %v265_v47, %v264_v39  ;;  %v186_v52 = vadd.f32 %v478_v42, %v569_v11  ;;  %v218_v53 = vadd.f32 %v486_v43, %v569_v11  ;;  %v479_v54 = vpop.f32.mrb[6].mxu0  ;;  %v487_v55 = vpop.f32.mrb[6].mxu1 }
  0xed   :  { %448 = vst [vmem:[%s618_s3 + $0x8] sm:$0xff] %v416_v44   ;;  %452 = vst [vmem:[%s618_s3 + $0x28] sm:$0xff] %v436_v45   ;;  %v178_v56 = vadd.f32 %v569_v11, %v177_v48  ;;  %v210_v57 = vadd.f32 %v569_v11, %v209_v49  ;;  %v189_v58 = vadd.f32 %v479_v54, %v569_v11  ;;  %v180_v60 = vpop.f32.mrb[7].mxu0  ;;  %v212_v61 = vpop.f32.mrb[7].mxu1 }
  0xee   :  { %v221_v59 = vadd.f32 %v487_v55, %v569_v11  ;;  %412 = vst [vmem:[%s618_s3] sm:$0xff] %v411_v50   ;;  %451 = vst [vmem:[%s618_s3 + $0x20] sm:$0xff] %v431_v51   ;;  %v246_v62 = vmul.f32 0.2, %v186_v52  ;;  %vm230_vm9 = vcmp.gt.f32.partialorder %v186_v52, 0.0  ;;  %v254_v63 = vmul.f32 0.2, %v218_v53 }
  0xef   :  { %vm238_vm10 = vcmp.gt.f32.partialorder %v218_v53, 0.0  ;;  %vm228_vm11 = vcmp.gt.f32.partialorder %v178_v56, 0.0  ;;  %vm231_vm12 = vcmp.gt.f32.partialorder %v189_v58, 0.0  ;;  %v247_v0 = vmul.f32 0.2, %v189_v58 }
  0xf0   :  { %v244_v1 = vmul.f32 0.2, %v178_v56  ;;  %vm236_vm13 = vcmp.gt.f32.partialorder %v210_v57, 0.0  ;;  %vm239_vm14 = vcmp.gt.f32.partialorder %v221_v59, 0.0  ;;  %v255_v2 = vmul.f32 0.2, %v221_v59 }
  0xf1   :  { %v262_v3 = vsel %vm230_vm9, %v186_v52, %v246_v62  ;;  %v263_v4 = vsel %vm231_vm12, %v189_v58, %v247_v0  ;;  %v181_v5 = vadd.f32 %v569_v11, %v180_v60  ;;  %v213_v6 = vadd.f32 %v569_v11, %v212_v61 }
  0xf2   :  { %v270_v7 = vsel %vm238_vm10, %v218_v53, %v254_v63  ;;  %v252_v8 = vmul.f32 0.2, %v210_v57  ;;  %v426_v9 = vpack.c.bf16 %v263_v4, %v262_v3  ;;  %v271_v10 = vsel %vm239_vm14, %v221_v59, %v255_v2 }
  0xf3   :  { %v446_v12 = vpack.c.bf16 %v271_v10, %v270_v7  ;;  %vm229_vm15 = vcmp.gt.f32.partialorder %v181_v5, 0.0  ;;  %v245_v13 = vmul.f32 0.2, %v181_v5  ;;  %vm237_vm0 = vcmp.gt.f32.partialorder %v213_v6, 0.0 }
  0xf4   :  { %450 = vst [vmem:[%s618_s3 + $0x18] sm:$0xff] %v426_v9   ;;  %v253_v14 = vmul.f32 0.2, %v213_v6  ;;  %v260_v15 = vsel %vm228_vm11, %v178_v56, %v244_v1  ;;  %v268_v16 = vsel %vm236_vm13, %v210_v57, %v252_v8 }
  0xf5   :  { %454 = vst [vmem:[%s618_s3 + $0x38] sm:$0xff] %v446_v12   ;;  %v261_v11 = vsel %vm229_vm15, %v181_v5, %v245_v13 }
  0xf6   :  { %v421_v17 = vpack.c.bf16 %v261_v11, %v260_v15  ;;  %v269_v18 = vsel %vm237_vm0, %v213_v6, %v253_v14 }
  0xf7   :  { %v441_v19 = vpack.c.bf16 %v269_v18, %v268_v16 }
  0xf8   :  { %449 = vst [vmem:[%s618_s3 + $0x10] sm:$0xff] %v421_v17  }
  0xf9   :  { %453 = vst [vmem:[%s618_s3 + $0x30] sm:$0xff] %v441_v19  }

// kernel: patch_discriminator_forward.7
= control target key start
LH: loop header
LB: loop body
LE: loop exit
PB: predicated region body
PF: predicated region fallthrough
CT: control target
= control target key end

     0   :  { %s1446_s1 = inlined_call_operand.vmem [shape: bf16[1024,128], index: 1, kind: input, shape index: {}]   ;;  %s1447_s0 = inlined_call_operand.vmem [shape: bf16[32,1024], index: 0, kind: input, shape index: {}]   ;;  %s1448_s2 = inlined_call_operand.vmem [shape: f32[1,128], index: 2, kind: input, shape index: {}]   ;;  %s1449_s3 = inlined_call_operand.vmem [shape: bf16[32,128], index: 3, kind: output, shape index: {0}]   ;;  %s1450_s4 = inlined_call_operand.vmem [shape: f32[1,8,128], index: 4, kind: output, shape index: {1}]   ;;  %s1451_s5 = inlined_call_operand.vmem [shape: f32[1,8,128], index: 5, kind: output, shape index: {2}]  }
   0x1   :  { %v1097_v0 = vld [vmem:[%s1446_s1 + $0x40] sm:$0xff]   ;;  %v1101_v4 = vld [vmem:[%s1446_s1 + $0x48] sm:$0xff]   ;;  %v1105_v8 = vld [vmem:[%s1446_s1 + $0x50] sm:$0xff]  }
   0x2   :  { %v1098_v1 = vld [vmem:[%s1446_s1 + $0xc0] sm:$0xff]   ;;  %985 = vmatprep.subr.bf16.mxu0 %v1097_v0  ;;  %v1102_v5 = vld [vmem:[%s1446_s1 + $0xc8] sm:$0xff]   ;;  %v1106_v9 = vld [vmem:[%s1446_s1 + $0xd0] sm:$0xff]  }
   0x3   :  { %v1099_v2 = vld [vmem:[%s1446_s1] sm:$0xff]   ;;  %1013 = vmatprep.subr.bf16.mxu1 %v1098_v1  ;;  %v1103_v6 = vld [vmem:[%s1446_s1 + $0x8] sm:$0xff]   ;;  %v1107_v10 = vld [vmem:[%s1446_s1 + $0x10] sm:$0xff]  }
   0x4   :  { %v1100_v3 = vld [vmem:[%s1446_s1 + $0x80] sm:$0xff]   ;;  %986 = vmatpush3.bf16.msra.mxu0 %v1099_v2  ;;  %v1104_v7 = vld [vmem:[%s1446_s1 + $0x88] sm:$0xff]   ;;  %v1108_v11 = vld [vmem:[%s1446_s1 + $0x90] sm:$0xff]  }
   0x5   :  { %1014 = vmatpush3.bf16.msra.mxu1 %v1100_v3  ;;  %987 = vmatprep.subr.bf16.mxu0 %v1101_v4  ;;  %v1109_v12 = vld [vmem:[%s1446_s1 + $0x58] sm:$0xff]   ;;  %v1113_v16 = vld [vmem:[%s1446_s1 + $0x60] sm:$0xff]   ;;  %v1117_v20 = vld [vmem:[%s1446_s1 + $0x68] sm:$0xff]  }
   0x6   :  { %1015 = vmatprep.subr.bf16.mxu1 %v1102_v5  ;;  %v1110_v13 = vld [vmem:[%s1446_s1 + $0xd8] sm:$0xff]   ;;  %v1114_v17 = vld [vmem:[%s1446_s1 + $0xe0] sm:$0xff]   ;;  %v1118_v21 = vld [vmem:[%s1446_s1 + $0xe8] sm:$0xff]  }
   0x7   :  { %v1111_v14 = vld [vmem:[%s1446_s1 + $0x18] sm:$0xff]   ;;  %v1115_v18 = vld [vmem:[%s1446_s1 + $0x20] sm:$0xff]   ;;  %v1119_v22 = vld [vmem:[%s1446_s1 + $0x28] sm:$0xff]  }
   0x8   :  { %988 = vmatpush3.bf16.msra.mxu0 %v1103_v6  ;;  %v1112_v15 = vld [vmem:[%s1446_s1 + $0x98] sm:$0xff]   ;;  %v1116_v19 = vld [vmem:[%s1446_s1 + $0xa0] sm:$0xff]   ;;  %v1120_v23 = vld [vmem:[%s1446_s1 + $0xa8] sm:$0xff]  }
   0x9   :  { %1016 = vmatpush3.bf16.msra.mxu1 %v1104_v7  ;;  %989 = vmatprep.subr.bf16.mxu0 %v1105_v8  ;;  %v1121_v24 = vld [vmem:[%s1446_s1 + $0x70] sm:$0xff]   ;;  %v1125_v28 = vld [vmem:[%s1446_s1 + $0x78] sm:$0xff]   ;;  %v18_v32 = vld [vmem:[%s1447_s0] sm:$0xff] }
   0xa   :  { %1017 = vmatprep.subr.bf16.mxu1 %v1106_v9  ;;  %v1122_v25 = vld [vmem:[%s1446_s1 + $0xf0] sm:$0xff]   ;;  %v1126_v29 = vld [vmem:[%s1446_s1 + $0xf8] sm:$0xff]   ;;  %v22_v33 = vld [vmem:[%s1447_s0 + $0x20] sm:$0xff] }
   0xb   :  { %v1123_v26 = vld [vmem:[%s1446_s1 + $0x30] sm:$0xff]   ;;  %v1127_v30 = vld [vmem:[%s1446_s1 + $0x38] sm:$0xff]   ;;  %v19_v34 = vld [vmem:[%s1447_s0 + $0x8] sm:$0xff]  ;;  %v886_v35 = vcombine.low %v18_v32, %v22_v33  ;;  %v887_v36 = vcombine.high %v18_v32, %v22_v33 }
   0xc   :  { %990 = vmatpush3.bf16.msra.mxu0 %v1107_v10  ;;  %v1124_v27 = vld [vmem:[%s1446_s1 + $0xb0] sm:$0xff]   ;;  %v1128_v31 = vld [vmem:[%s1446_s1 + $0xb8] sm:$0xff]   ;;  %v23_v37 = vld [vmem:[%s1447_s0 + $0x28] sm:$0xff] }
   0xd   :  { %1018 = vmatpush3.bf16.msra.mxu1 %v1108_v11  ;;  %991 = vmatprep.subr.bf16.mxu0 %v1109_v12  ;;  %v888_v38 = vcombine.low %v19_v34, %v23_v37  ;;  %v889_v39 = vcombine.high %v19_v34, %v23_v37  ;;  %v1129_v40 = vld [vmem:[%s1446_s1 + $0x140] sm:$0xff]   ;;  %v1133_v44 = vld [vmem:[%s1446_s1 + $0x148] sm:$0xff]   ;;  %v1137_v48 = vld [vmem:[%s1446_s1 + $0x150] sm:$0xff]  }
   0xe   :  { %1019 = vmatprep.subr.bf16.mxu1 %v1110_v13  ;;  %665 = vmatprep.mubr.bf16.mxu0 %v887_v36  ;;  %v1130_v41 = vld [vmem:[%s1446_s1 + $0x1c0] sm:$0xff]   ;;  %v1134_v45 = vld [vmem:[%s1446_s1 + $0x1c8] sm:$0xff]   ;;  %v1138_v49 = vld [vmem:[%s1446_s1 + $0x1d0] sm:$0xff]  }
   0xf   :  { %714 = vmatprep.mubr.bf16.mxu1 %v889_v39  ;;  %v1131_v42 = vld [vmem:[%s1446_s1 + $0x100] sm:$0xff]   ;;  %v1135_v46 = vld [vmem:[%s1446_s1 + $0x108] sm:$0xff]   ;;  %v1139_v50 = vld [vmem:[%s1446_s1 + $0x110] sm:$0xff]  }
  0x10   :  { %992 = vmatpush3.bf16.msra.mxu0 %v1111_v14  ;;  %v1132_v43 = vld [vmem:[%s1446_s1 + $0x180] sm:$0xff]   ;;  %v1136_v47 = vld [vmem:[%s1446_s1 + $0x188] sm:$0xff]   ;;  %v1140_v51 = vld [vmem:[%s1446_s1 + $0x190] sm:$0xff]  }
  0x11   :  { %1020 = vmatpush3.bf16.msra.mxu1 %v1112_v15  ;;  %993 = vmatprep.subr.bf16.mxu0 %v1113_v16  ;;  %v1141_v52 = vld [vmem:[%s1446_s1 + $0x158] sm:$0xff]   ;;  %v1145_v56 = vld [vmem:[%s1446_s1 + $0x160] sm:$0xff]   ;;  %v1149_v63 = vld [vmem:[%s1446_s1 + $0x168] sm:$0xff]  }
  0x12   :  { %1021 = vmatprep.subr.bf16.mxu1 %v1114_v17  ;;  %v1142_v53 = vld [vmem:[%s1446_s1 + $0x1d8] sm:$0xff]   ;;  %v1146_v57 = vld [vmem:[%s1446_s1 + $0x1e0] sm:$0xff]   ;;  %v1150_v1 = vld [vmem:[%s1446_s1 + $0x1e8] sm:$0xff]  }
  0x13   :  { %v1143_v54 = vld [vmem:[%s1446_s1 + $0x118] sm:$0xff]   ;;  %v1147_v58 = vld [vmem:[%s1446_s1 + $0x120] sm:$0xff]   ;;  %v1151_v2 = vld [vmem:[%s1446_s1 + $0x128] sm:$0xff]  }
  0x14   :  { %994 = vmatpush3.bf16.msra.mxu0 %v1115_v18  ;;  %v1144_v55 = vld [vmem:[%s1446_s1 + $0x198] sm:$0xff]   ;;  %v1148_v59 = vld [vmem:[%s1446_s1 + $0x1a0] sm:$0xff]   ;;  %v1152_v3 = vld [vmem:[%s1446_s1 + $0x1a8] sm:$0xff]  }
  0x15   :  { %1022 = vmatpush3.bf16.msra.mxu1 %v1116_v19  ;;  %995 = vmatprep.subr.bf16.mxu0 %v1117_v20  ;;  %v26_v60 = vld [vmem:[%s1447_s0 + $0x40] sm:$0xff]  ;;  %v27_v4 = vld [vmem:[%s1447_s0 + $0x48] sm:$0xff]  ;;  %v1153_v8 = vld [vmem:[%s1446_s1 + $0x170] sm:$0xff]  }
  0x16   :  { %1023 = vmatprep.subr.bf16.mxu1 %v1118_v21  ;;  %v30_v61 = vld [vmem:[%s1447_s0 + $0x60] sm:$0xff]  ;;  %v31_v5 = vld [vmem:[%s1447_s0 + $0x68] sm:$0xff]  ;;  %v1154_v9 = vld [vmem:[%s1446_s1 + $0x1f0] sm:$0xff]  }
  0x17   :  { %v895_v62 = vcombine.high %v26_v60, %v30_v61  ;;  %v894_v0 = vcombine.low %v26_v60, %v30_v61  ;;  %v897_v6 = vcombine.high %v27_v4, %v31_v5  ;;  %v896_v7 = vcombine.low %v27_v4, %v31_v5  ;;  %v1155_v10 = vld [vmem:[%s1446_s1 + $0x130] sm:$0xff]   ;;  %v1157_v12 = vld [vmem:[%s1446_s1 + $0x178] sm:$0xff]   ;;  %v885_v34 = vld [vmem:[%s1448_s2] ss:$0 sm:$0xff] }
  0x18   :  { %996 = vmatpush3.bf16.msra.mxu0 %v1119_v22  ;;  %v1156_v11 = vld [vmem:[%s1446_s1 + $0x1b0] sm:$0xff]   ;;  %v1158_v13 = vld [vmem:[%s1446_s1 + $0x1f8] sm:$0xff]  }
  0x19   :  { %1024 = vmatpush3.bf16.msra.mxu1 %v1120_v23  ;;  %997 = vmatprep.subr.bf16.mxu0 %v1121_v24  ;;  %v1159_v14 = vld [vmem:[%s1446_s1 + $0x138] sm:$0xff]   ;;  %v20_v16 = vld [vmem:[%s1447_s0 + $0x10] sm:$0xff] }
  0x1a   :  { %1025 = vmatprep.subr.bf16.mxu1 %v1122_v25  ;;  %v1160_v15 = vld [vmem:[%s1446_s1 + $0x1b8] sm:$0xff]   ;;  %v24_v17 = vld [vmem:[%s1447_s0 + $0x30] sm:$0xff] }
  0x1b   :  { %v21_v18 = vld [vmem:[%s1447_s0 + $0x18] sm:$0xff]  ;;  %v890_v20 = vcombine.low %v20_v16, %v24_v17  ;;  %v891_v21 = vcombine.high %v20_v16, %v24_v17  ;;  %v28_v24 = vld [vmem:[%s1447_s0 + $0x50] sm:$0xff] }
  0x1c   :  { %998 = vmatpush3.bf16.msra.mxu0 %v1123_v26  ;;  %v25_v19 = vld [vmem:[%s1447_s0 + $0x38] sm:$0xff]  ;;  %v32_v25 = vld [vmem:[%s1447_s0 + $0x70] sm:$0xff] }
  0x1d   :  { %1026 = vmatpush3.bf16.msra.mxu1 %v1124_v27  ;;  %999 = vmatprep.subr.bf16.mxu0 %v1125_v28  ;;  %v892_v22 = vcombine.low %v21_v18, %v25_v19  ;;  %v893_v23 = vcombine.high %v21_v18, %v25_v19  ;;  %v29_v26 = vld [vmem:[%s1447_s0 + $0x58] sm:$0xff]  ;;  %v899_v27 = vcombine.high %v28_v24, %v32_v25 }
  0x1e   :  { %1027 = vmatprep.subr.bf16.mxu1 %v1126_v29  ;;  %v33_v28 = vld [vmem:[%s1447_s0 + $0x78] sm:$0xff] }
  0x1f   :  { %v901_v29 = vcombine.high %v29_v26, %v33_v28 }
  0x20   :  { %1000 = vmatpush3.bf16.msra.mxu0 %v1127_v30  ;;  %v898_v30 = vcombine.low %v28_v24, %v32_v25 }
  0x21   :  { %1028 = vmatpush3.bf16.msra.mxu1 %v1128_v31  ;;  %1041 = vmatprep.subr.bf16.mxu0 %v1129_v40  ;;  %v900_v31 = vcombine.low %v29_v26, %v33_v28 }
  0x22   :  { %1069 = vmatprep.subr.bf16.mxu1 %v1130_v41 }
  0x23   :  { %666 = vmatmul.mubr.bf16.vlgmr.msra.gmra.mrb[0].mxu0 %v886_v35 }
  0x24   :  { %715 = vmatmul.mubr.bf16.vlgmr.msra.gmra.mrb[0].mxu1 %v888_v38  ;;  %1042 = vmatpush3.bf16.msra.mxu0 %v1131_v42 }
  0x25   :  { %1070 = vmatpush3.bf16.msra.mxu1 %v1132_v43  ;;  %1043 = vmatprep.subr.bf16.mxu0 %v1133_v44 }
  0x26   :  { %1071 = vmatprep.subr.bf16.mxu1 %v1134_v45  ;;  %673 = vmatprep.mubr.bf16.mxu0 %v895_v62 }
  0x27   :  { %722 = vmatprep.mubr.bf16.mxu1 %v897_v6 }
  0x28   :  { %1044 = vmatpush3.bf16.msra.mxu0 %v1135_v46 }
  0x29   :  { %1072 = vmatpush3.bf16.msra.mxu1 %v1136_v47  ;;  %1045 = vmatprep.subr.bf16.mxu0 %v1137_v48 }
  0x2a   :  { %1073 = vmatprep.subr.bf16.mxu1 %v1138_v49 }
  0x2b   :  { %674 = vmatmul.mubr.bf16.gmra.mrb[4].mxu0 %v894_v0 }
  0x2c   :  { %1046 = vmatpush3.bf16.msra.mxu0 %v1139_v50  ;;  %723 = vmatmul.mubr.bf16.gmra.mrb[4].mxu1 %v896_v7 }
  0x2d   :  { %1074 = vmatpush3.bf16.msra.mxu1 %v1140_v51  ;;  %1047 = vmatprep.subr.bf16.mxu0 %v1141_v52 }
  0x2e   :  { %1075 = vmatprep.subr.bf16.mxu1 %v1142_v53  ;;  %763 = vmatprep.mubr.bf16.mxu0 %v891_v21 }
  0x2f   :  { %812 = vmatprep.mubr.bf16.mxu1 %v893_v23 }
  0x30   :  { %1048 = vmatpush3.bf16.msra.mxu0 %v1143_v54 }
  0x31   :  { %1076 = vmatpush3.bf16.msra.mxu1 %v1144_v55  ;;  %1049 = vmatprep.subr.bf16.mxu0 %v1145_v56 }
  0x32   :  { %1077 = vmatprep.subr.bf16.mxu1 %v1146_v57 }
  0x34   :  { %1050 = vmatpush3.bf16.msra.mxu0 %v1147_v58 }
  0x35   :  { %1078 = vmatpush3.bf16.msra.mxu1 %v1148_v59  ;;  %1051 = vmatprep.subr.bf16.mxu0 %v1149_v63 }
  0x36   :  { %1079 = vmatprep.subr.bf16.mxu1 %v1150_v1 }
  0x38   :  { %1052 = vmatpush3.bf16.msra.mxu0 %v1151_v2 }
  0x39   :  { %1080 = vmatpush3.bf16.msra.mxu1 %v1152_v3  ;;  %1053 = vmatprep.subr.bf16.mxu0 %v1153_v8 }
  0x3a   :  { %1081 = vmatprep.subr.bf16.mxu1 %v1154_v9 }
  0x3c   :  { %1054 = vmatpush3.bf16.msra.mxu0 %v1155_v10 }
  0x3d   :  { %1082 = vmatpush3.bf16.msra.mxu1 %v1156_v11  ;;  %1055 = vmatprep.subr.bf16.mxu0 %v1157_v12 }
  0x3e   :  { %1083 = vmatprep.subr.bf16.mxu1 %v1158_v13 }
  0x40   :  { %1056 = vmatpush3.bf16.msra.mxu0 %v1159_v14 }
  0x41   :  { %1084 = vmatpush3.bf16.msra.mxu1 %v1160_v15 }
  0x43   :  { %764 = vmatmul.mubr.bf16.vlgmr.msra.gmra.mrb[8].mxu0 %v890_v20 }
  0x44   :  { %813 = vmatmul.mubr.bf16.vlgmr.msra.gmra.mrb[8].mxu1 %v892_v22  ;;  %771 = vmatprep.mubr.bf16.mxu0 %v899_v27 }
  0x45   :  { %820 = vmatprep.mubr.bf16.mxu1 %v901_v29 }
  0x4b   :  { %772 = vmatmul.mubr.bf16.gmra.mrb[12].mxu0 %v898_v30 }
  0x4c   :  { %821 = vmatmul.mubr.bf16.gmra.mrb[12].mxu1 %v900_v31 }
  0xf6   :  { %v1001_v32 = vpop.f32.mrb[0].mxu0 }
  0xf7   :  { %v1029_v33 = vpop.f32.mrb[0].mxu1  ;;  %v1002_v35 = vpop.f32.mrb[1].mxu0 }
  0xf8   :  { %v1003_v36 = vadd.f32 %v1002_v35, %v1001_v32  ;;  %v1030_v37 = vpop.f32.mrb[1].mxu1  ;;  %v1004_v38 = vpop.f32.mrb[2].mxu0 }
  0xf9   :  { %v1031_v39 = vadd.f32 %v1030_v37, %v1029_v33  ;;  %v1032_v40 = vpop.f32.mrb[2].mxu1  ;;  %v1005_v41 = vpop.f32.mrb[3].mxu0 }
  0xfa   :  { %v668_v42 = vadd.f32 %v1003_v36, %v885_v34  ;;  %v1006_v43 = vadd.f32 %v1005_v41, %v1004_v38  ;;  %v1033_v44 = vpop.f32.mrb[3].mxu1 }
  0xfb   :  { %v1034_v45 = vadd.f32 %v1033_v44, %v1032_v40 }
  0xfc   :  { %v717_v46 = vadd.f32 %v1031_v39, %v668_v42  ;;  %v671_v47 = vadd.f32 %v1006_v43, %v885_v34 }
  0xfe   :  { %v720_v48 = vadd.f32 %v1034_v45, %v671_v47  ;;  %v1007_v49 = vpop.f32.mrb[4].mxu0 }
  0xff   :  { %v1008_v50 = vpop.f32.mrb[5].mxu0  ;;  %v1035_v56 = vpop.f32.mrb[4].mxu1 }
 0x100   :  { %v1009_v51 = vadd.f32 %v1008_v50, %v1007_v49  ;;  %v1010_v52 = vpop.f32.mrb[6].mxu0  ;;  %v1036_v57 = vpop.f32.mrb[5].mxu1 }
 0x101   :  { %v1011_v53 = vpop.f32.mrb[7].mxu0  ;;  %v1037_v59 = vadd.f32 %v1036_v57, %v1035_v56  ;;  %v1038_v60 = vpop.f32.mrb[6].mxu1 }
 0x102   :  { %v1012_v54 = vadd.f32 %v1011_v53, %v1010_v52  ;;  %v676_v55 = vadd.f32 %v1009_v51, %v885_v34  ;;  %v1039_v61 = vpop.f32.mrb[7].mxu1 }
 0x103   :  { %v1040_v63 = vadd.f32 %v1039_v61, %v1038_v60 }
 0x104   :  { %v679_v58 = vadd.f32 %v1012_v54, %v885_v34  ;;  %v725_v62 = vadd.f32 %v1037_v59, %v676_v55 }
 0x106   :  { %v728_v0 = vadd.f32 %v1040_v63, %v679_v58 }
 0x116   :  { %v1057_v1 = vpop.f32.mrb[8].mxu0 }
 0x117   :  { %v1085_v2 = vpop.f32.mrb[8].mxu1  ;;  %v1058_v3 = vpop.f32.mrb[9].mxu0 }
 0x118   :  { %v1086_v4 = vpop.f32.mrb[9].mxu1  ;;  %v1059_v5 = vadd.f32 %v1058_v3, %v1057_v1  ;;  %v1060_v7 = vpop.f32.mrb[10].mxu0 }
 0x119   :  { %v1087_v6 = vadd.f32 %v1086_v4, %v1085_v2  ;;  %v1088_v8 = vpop.f32.mrb[10].mxu1  ;;  %v1061_v9 = vpop.f32.mrb[11].mxu0 }
 0x11a   :  { %v1089_v10 = vpop.f32.mrb[11].mxu1  ;;  %v766_v11 = vadd.f32 %v1059_v5, %v717_v46  ;;  %v1062_v12 = vadd.f32 %v1061_v9, %v1060_v7 }
 0x11b   :  { %v1090_v13 = vadd.f32 %v1089_v10, %v1088_v8 }
 0x11c   :  { %v815_v14 = vadd.f32 %v1087_v6, %v766_v11  ;;  %v769_v15 = vadd.f32 %v1062_v12, %v720_v48 }
 0x11e   :  { %v818_v16 = vadd.f32 %v1090_v13, %v769_v15  ;;  %v1063_v17 = vpop.f32.mrb[12].mxu0  ;;  %v858_v19 = vmul.f32 %v815_v14, %v815_v14 }
 0x11f   :  { %v1091_v18 = vpop.f32.mrb[12].mxu1  ;;  %v1064_v20 = vpop.f32.mrb[13].mxu0 }
 0x120   :  { %v1092_v21 = vpop.f32.mrb[13].mxu1  ;;  %v977_v22 = vpack.c.bf16 %v818_v16, %v815_v14  ;;  %v849_v23 = vadd.f32 %v818_v16, %v815_v14  ;;  %v859_v24 = vmul.f32 %v818_v16, %v818_v16  ;;  %v1065_v25 = vadd.f32 %v1064_v20, %v1063_v17  ;;  %v1066_v26 = vpop.f32.mrb[14].mxu0 }
 0x121   :  { %v1094_v27 = vpop.f32.mrb[14].mxu1  ;;  %v1093_v28 = vadd.f32 %v1092_v21, %v1091_v18  ;;  %v1067_v29 = vpop.f32.mrb[15].mxu0 }
 0x122   :  { %v1095_v30 = vpop.f32.mrb[15].mxu1  ;;  %978 = vst [vmem:[%s1449_s3] sm:$0xff] %v977_v22   ;;  %v862_v31 = vadd.f32 %v859_v24, %v858_v19  ;;  %v774_v32 = vadd.f32 %v1065_v25, %v725_v62  ;;  %v1068_v33 = vadd.f32 %v1067_v29, %v1066_v26 }
 0x123   :  { %v1096_v34 = vadd.f32 %v1095_v30, %v1094_v27 }
 0x124   :  { %v823_v35 = vadd.f32 %v1093_v28, %v774_v32  ;;  %v777_v36 = vadd.f32 %v1068_v33, %v728_v0 }
 0x126   :  { %v850_v37 = vadd.f32 %v849_v23, %v823_v35  ;;  %v860_v38 = vmul.f32 %v823_v35, %v823_v35  ;;  %v826_v39 = vadd.f32 %v1096_v34, %v777_v36 }
 0x128   :  { %v863_v40 = vadd.f32 %v862_v31, %v860_v38  ;;  %v982_v41 = vpack.c.bf16 %v826_v39, %v823_v35  ;;  %v851_v42 = vadd.f32 %v850_v37, %v826_v39  ;;  %v861_v43 = vmul.f32 %v826_v39, %v826_v39 }
 0x12a   :  { %984 = vst [vmem:[%s1449_s3 + $0x8] sm:$0xff] %v982_v41   ;;  %v852_v44 = vrot.slane %v851_v42, 4  ;;  %v864_v45 = vadd.f32 %v863_v40, %v861_v43 }
 0x12c   :  { %v853_v46 = vadd.f32 %v852_v44, %v851_v42  ;;  %v865_v47 = vrot.slane %v864_v45, 4 }
 0x12e   :  { %v854_v48 = vrot.slane %v853_v46, 2  ;;  %v866_v49 = vadd.f32 %v865_v47, %v864_v45 }
 0x130   :  { %v855_v50 = vadd.f32 %v854_v48, %v853_v46  ;;  %v867_v51 = vrot.slane %v866_v49, 2 }
 0x132   :  { %v856_v52 = vrot.slane %v855_v50, 1  ;;  %v868_v53 = vadd.f32 %v867_v51, %v866_v49 }
 0x134   :  { %v857_v54 = vadd.f32 %v856_v52, %v855_v50  ;;  %v869_v55 = vrot.slane %v868_v53, 1 }
 0x136   :  { %v870_v56 = vadd.f32 %v869_v55, %v868_v53  ;;  %871 = vst [vmem:[%s1450_s4] sm:$0xff] %v857_v54 }
 0x138   :  { %872 = vst [vmem:[%s1451_s5] sm:$0xff] %v870_v56 }

// kernel: patch_discriminator_forward.9
= control target key start
LH: loop header
LB: loop body
LE: loop exit
PB: predicated region body
PF: predicated region fallthrough
CT: control target
= control target key end

     0   :  { %s4102_s0 = inlined_call_operand.vmem [shape: bf16[2048,256], index: 0, kind: input, shape index: {}]   ;;  %s4103_s1 = inlined_call_operand.vmem [shape: f32[1,256], index: 1, kind: input, shape index: {}]   ;;  %s4104_s2 = inlined_call_operand.vmem [shape: bf16[8,2048], index: 2, kind: input, shape index: {}]   ;;  %s4105_s3 = inlined_call_operand.<no memory space> [shape: bf16[], index: 3, kind: input, shape index: {}]   ;;  %s4106_s4 = inlined_call_operand.vmem [shape: bf16[16,256], index: 4, kind: output, shape index: {0}]   ;;  %s4107_s5 = inlined_call_operand.vmem [shape: f32[1,8,256], index: 5, kind: output, shape index: {1}]   ;;  %s4108_s6 = inlined_call_operand.vmem [shape: f32[1,8,256], index: 6, kind: output, shape index: {2}]  }
   0x1   :  { %v12_v0 = vstv %s4105_s3 }
   0x2   :  { %v13_v1 = vunpack.i.l.bf16 %v12_v0 }
   0x3   :  { %v2812_v2 = vld [vmem:[%s4102_s0 + $0x4] ss:$8 sps:$4 sm:$0xff]   ;;  %v2816_v5 = vld [vmem:[%s4102_s0] ss:$8 sps:$4 sm:$0xff]   ;;  %v2818_v7 = vld [vmem:[%s4102_s0 + $0x14] ss:$8 sps:$4 sm:$0xff]  }
   0x4   :  { %v3245_v3 = vpack.c.bf16 %v13_v1, %v13_v1  ;;  %v2814_v4 = vld [vmem:[%s4102_s0 + $0x404] ss:$8 sps:$4 sm:$0xff]   ;;  %2001 = vmatprep.subr.bf16.mxu1 %v2812_v2  ;;  %v2817_v6 = vld [vmem:[%s4102_s0 + $0x400] ss:$8 sps:$4 sm:$0xff]   ;;  %v2820_v8 = vld [vmem:[%s4102_s0 + $0x414] ss:$8 sps:$4 sm:$0xff]  }
   0x5   :  { %2173 = vmatprep.subr.bf16.mxu0 %v2814_v4  ;;  %2002 = vmatpush1.bf16.msra.mxu1 %v2816_v5  ;;  %v2822_v9 = vld [vmem:[%s4102_s0 + $0x10] ss:$8 sps:$4 sm:$0xff]   ;;  %v2824_v11 = vld [vmem:[%s4102_s0 + $0x24] ss:$8 sps:$4 sm:$0xff]   ;;  %v2828_v13 = vld [vmem:[%s4102_s0 + $0x20] ss:$8 sps:$4 sm:$0xff]  }
   0x6   :  { %2737 = vst [vmem:[#allocation7 + $0x40] sm:$0xff] %v3245_v3   ;;  %2752 = vst [vmem:[#allocation7 + $0x58] sm:$0xff] %v3245_v3   ;;  %2174 = vmatpush1.bf16.msra.mxu0 %v2817_v6  ;;  %2003 = vmatprep.subr.bf16.mxu1 %v2818_v7  ;;  %v2823_v10 = vld [vmem:[%s4102_s0 + $0x410] ss:$8 sps:$4 sm:$0xff]   ;;  %v2826_v12 = vld [vmem:[%s4102_s0 + $0x424] ss:$8 sps:$4 sm:$0xff]  }
   0x7   :  { %2772 = vst [vmem:[#allocation7 + $0x78] sm:$0xff] %v3245_v3   ;;  %2175 = vmatprep.subr.bf16.mxu0 %v2820_v8  ;;  %v2829_v14 = vld [vmem:[%s4102_s0 + $0x420] ss:$8 sps:$4 sm:$0xff]   ;;  %v2830_v15 = vld [vmem:[%s4102_s0 + $0x34] ss:$8 sps:$4 sm:$0xff]  }
   0x8   :  { %v2832_v16 = vld [vmem:[%s4102_s0 + $0x434] ss:$8 sps:$4 sm:$0xff]   ;;  %v2834_v17 = vld [vmem:[%s4102_s0 + $0x30] ss:$8 sps:$4 sm:$0xff]   ;;  %v2836_v19 = vld [vmem:[%s4102_s0 + $0x44] ss:$8 sps:$4 sm:$0xff]  }
   0x9   :  { %2004 = vmatpush1.bf16.msra.mxu1 %v2822_v9  ;;  %v2835_v18 = vld [vmem:[%s4102_s0 + $0x430] ss:$8 sps:$4 sm:$0xff]   ;;  %v2838_v20 = vld [vmem:[%s4102_s0 + $0x444] ss:$8 sps:$4 sm:$0xff]   ;;  %v2840_v21 = vld [vmem:[%s4102_s0 + $0x40] ss:$8 sps:$4 sm:$0xff]  }
   0xa   :  { %2176 = vmatpush1.bf16.msra.mxu0 %v2823_v10  ;;  %2005 = vmatprep.subr.bf16.mxu1 %v2824_v11  ;;  %v2841_v22 = vld [vmem:[%s4102_s0 + $0x440] ss:$8 sps:$4 sm:$0xff]   ;;  %v2842_v23 = vld [vmem:[%s4102_s0 + $0x54] ss:$8 sps:$4 sm:$0xff]   ;;  %v2846_v25 = vld [vmem:[%s4102_s0 + $0x50] ss:$8 sps:$4 sm:$0xff]  }
   0xb   :  { %2177 = vmatprep.subr.bf16.mxu0 %v2826_v12  ;;  %v2844_v24 = vld [vmem:[%s4102_s0 + $0x454] ss:$8 sps:$4 sm:$0xff]   ;;  %v2847_v26 = vld [vmem:[%s4102_s0 + $0x450] ss:$8 sps:$4 sm:$0xff]   ;;  %v2848_v27 = vld [vmem:[%s4102_s0 + $0x64] ss:$8 sps:$4 sm:$0xff]  }
   0xc   :  { %v2850_v28 = vld [vmem:[%s4102_s0 + $0x464] ss:$8 sps:$4 sm:$0xff]   ;;  %v2852_v29 = vld [vmem:[%s4102_s0 + $0x60] ss:$8 sps:$4 sm:$0xff]   ;;  %v2854_v31 = vld [vmem:[%s4102_s0 + $0x74] ss:$8 sps:$4 sm:$0xff]  }
   0xd   :  { %2006 = vmatpush1.bf16.msra.mxu1 %v2828_v13  ;;  %v2853_v30 = vld [vmem:[%s4102_s0 + $0x460] ss:$8 sps:$4 sm:$0xff]   ;;  %v2856_v32 = vld [vmem:[%s4102_s0 + $0x474] ss:$8 sps:$4 sm:$0xff]   ;;  %v2858_v33 = vld [vmem:[%s4102_s0 + $0x70] ss:$8 sps:$4 sm:$0xff]  }
   0xe   :  { %2178 = vmatpush1.bf16.msra.mxu0 %v2829_v14  ;;  %2007 = vmatprep.subr.bf16.mxu1 %v2830_v15  ;;  %v2859_v34 = vld [vmem:[%s4102_s0 + $0x470] ss:$8 sps:$4 sm:$0xff]   ;;  %v2860_v35 = vld [vmem:[%s4102_s0 + $0x84] ss:$8 sps:$4 sm:$0xff]   ;;  %v2864_v37 = vld [vmem:[%s4102_s0 + $0x80] ss:$8 sps:$4 sm:$0xff]  }
   0xf   :  { %2179 = vmatprep.subr.bf16.mxu0 %v2832_v16  ;;  %v2862_v36 = vld [vmem:[%s4102_s0 + $0x484] ss:$8 sps:$4 sm:$0xff]   ;;  %v2865_v38 = vld [vmem:[%s4102_s0 + $0x480] ss:$8 sps:$4 sm:$0xff]   ;;  %v2866_v39 = vld [vmem:[%s4102_s0 + $0x94] ss:$8 sps:$4 sm:$0xff]  }
  0x10   :  { %v2868_v40 = vld [vmem:[%s4102_s0 + $0x494] ss:$8 sps:$4 sm:$0xff]   ;;  %v2870_v41 = vld [vmem:[%s4102_s0 + $0x90] ss:$8 sps:$4 sm:$0xff]   ;;  %v2872_v43 = vld [vmem:[%s4102_s0 + $0xa4] ss:$8 sps:$4 sm:$0xff]  }
  0x11   :  { %2008 = vmatpush1.bf16.msra.mxu1 %v2834_v17  ;;  %v2871_v42 = vld [vmem:[%s4102_s0 + $0x490] ss:$8 sps:$4 sm:$0xff]   ;;  %v2874_v44 = vld [vmem:[%s4102_s0 + $0x4a4] ss:$8 sps:$4 sm:$0xff]   ;;  %v2876_v45 = vld [vmem:[%s4102_s0 + $0xa0] ss:$8 sps:$4 sm:$0xff]  }
  0x12   :  { %2180 = vmatpush1.bf16.msra.mxu0 %v2835_v18  ;;  %2009 = vmatprep.subr.bf16.mxu1 %v2836_v19  ;;  %v2877_v46 = vld [vmem:[%s4102_s0 + $0x4a0] ss:$8 sps:$4 sm:$0xff]   ;;  %v2878_v47 = vld [vmem:[%s4102_s0 + $0xb4] ss:$8 sps:$4 sm:$0xff]   ;;  %v2882_v49 = vld [vmem:[%s4102_s0 + $0xb0] ss:$8 sps:$4 sm:$0xff]  }
  0x13   :  { %2181 = vmatprep.subr.bf16.mxu0 %v2838_v20  ;;  %v2880_v48 = vld [vmem:[%s4102_s0 + $0x4b4] ss:$8 sps:$4 sm:$0xff]   ;;  %v2883_v50 = vld [vmem:[%s4102_s0 + $0x4b0] ss:$8 sps:$4 sm:$0xff]   ;;  %v32_v51 = vld [vmem:[%s4104_s2] sm:$0xff]  }
  0x14   :  { %v2884_v52 = vld [vmem:[%s4102_s0 + $0xc4] ss:$8 sps:$4 sm:$0xff]   ;;  %37 = vst [vmem:[#allocation7] sm:$0xff] %v32_v51   ;;  %v2888_v55 = vld [vmem:[%s4102_s0 + $0xc0] ss:$8 sps:$4 sm:$0xff]  }
  0x15   :  { %2010 = vmatpush1.bf16.msra.mxu1 %v2840_v21  ;;  %v2886_v53 = vld [vmem:[%s4102_s0 + $0x4c4] ss:$8 sps:$4 sm:$0xff]   ;;  %v2889_v56 = vld [vmem:[%s4102_s0 + $0x4c0] ss:$8 sps:$4 sm:$0xff]   ;;  %v2890_v58 = vld [vmem:[%s4102_s0 + $0xd4] ss:$8 sps:$4 sm:$0xff]  }
  0x16   :  { %2182 = vmatpush1.bf16.msra.mxu0 %v2841_v22  ;;  %2011 = vmatprep.subr.bf16.mxu1 %v2842_v23  ;;  %v2911_v54 = vld [vmem:[%s4104_s2 + $0x20] sm:$0xff]   ;;  %v2892_v59 = vld [vmem:[%s4102_s0 + $0x4d4] ss:$8 sps:$4 sm:$0xff]   ;;  %v2894_v61 = vld [vmem:[%s4102_s0 + $0xd0] ss:$8 sps:$4 sm:$0xff]  }
  0x17   :  { %2183 = vmatprep.subr.bf16.mxu0 %v2844_v24  ;;  %v2431_v57 = vcombine.high %v2911_v54, %v3245_v3  ;;  %v2895_v63 = vld [vmem:[%s4102_s0 + $0x4d0] ss:$8 sps:$4 sm:$0xff]   ;;  %v2896_v0 = vld [vmem:[%s4102_s0 + $0xe4] ss:$8 sps:$4 sm:$0xff]   ;;  %v2900_v2 = vld [vmem:[%s4102_s0 + $0xe0] ss:$8 sps:$4 sm:$0xff]   ;;  %v2430_v13 = vcombine.low %v2911_v54, %v3245_v3 }
  0x18   :  { %v2898_v1 = vld [vmem:[%s4102_s0 + $0x4e4] ss:$8 sps:$4 sm:$0xff]   ;;  %v2901_v4 = vld [vmem:[%s4102_s0 + $0x4e0] ss:$8 sps:$4 sm:$0xff]   ;;  %v2902_v5 = vld [vmem:[%s4102_s0 + $0xf4] ss:$8 sps:$4 sm:$0xff]  }
  0x19   :  { %2012 = vmatpush1.bf16.msra.mxu1 %v2846_v25  ;;  %2205 = vmatprep.mubr.bf16.mxu0 %v2431_v57  ;;  %v2904_v6 = vld [vmem:[%s4102_s0 + $0x4f4] ss:$8 sps:$4 sm:$0xff]   ;;  %v2906_v7 = vld [vmem:[%s4102_s0 + $0xf0] ss:$8 sps:$4 sm:$0xff]   ;;  %v2910_v9 = vld [vmem:[%s4102_s0 + $0x104] ss:$8 sps:$4 sm:$0xff]  }
  0x1a   :  { %2184 = vmatpush1.bf16.msra.mxu0 %v2847_v26  ;;  %2013 = vmatprep.subr.bf16.mxu1 %v2848_v27  ;;  %v2907_v8 = vld [vmem:[%s4102_s0 + $0x4f0] ss:$8 sps:$4 sm:$0xff]   ;;  %v2914_v10 = vld [vmem:[%s4102_s0 + $0x504] ss:$8 sps:$4 sm:$0xff]   ;;  %v2908_v12 = vld [vmem:[%s4102_s0 + $0x100] ss:$8 sps:$4 sm:$0xff]  }
  0x1b   :  { %2185 = vmatprep.subr.bf16.mxu0 %v2850_v28  ;;  %v357_v60 = vld [vmem:[#allocation7] sm:$0xff]  ;;  %v2917_v15 = vld [vmem:[%s4102_s0 + $0x114] ss:$8 sps:$4 sm:$0xff]   ;;  %v2915_v17 = vld [vmem:[%s4102_s0 + $0x110] ss:$8 sps:$4 sm:$0xff]  }
  0x1c   :  { %v2423_v62 = vcombine.high %v357_v60, %v3245_v3  ;;  %v2422_v11 = vcombine.low %v357_v60, %v3245_v3  ;;  %v2912_v14 = vld [vmem:[%s4102_s0 + $0x500] ss:$8 sps:$4 sm:$0xff]   ;;  %v2920_v16 = vld [vmem:[%s4102_s0 + $0x514] ss:$8 sps:$4 sm:$0xff]   ;;  %v2918_v18 = vld [vmem:[%s4102_s0 + $0x510] ss:$8 sps:$4 sm:$0xff]  }
  0x1d   :  { %2014 = vmatpush1.bf16.msra.mxu1 %v2852_v29  ;;  %v2923_v19 = vld [vmem:[%s4102_s0 + $0x124] ss:$8 sps:$4 sm:$0xff]   ;;  %v2921_v21 = vld [vmem:[%s4102_s0 + $0x120] ss:$8 sps:$4 sm:$0xff]   ;;  %v2929_v23 = vld [vmem:[%s4102_s0 + $0x134] ss:$8 sps:$4 sm:$0xff]  }
  0x1e   :  { %2186 = vmatpush1.bf16.msra.mxu0 %v2853_v30  ;;  %2015 = vmatprep.subr.bf16.mxu1 %v2854_v31  ;;  %v2926_v20 = vld [vmem:[%s4102_s0 + $0x524] ss:$8 sps:$4 sm:$0xff]   ;;  %v2924_v22 = vld [vmem:[%s4102_s0 + $0x520] ss:$8 sps:$4 sm:$0xff]   ;;  %v2932_v24 = vld [vmem:[%s4102_s0 + $0x534] ss:$8 sps:$4 sm:$0xff]  }
  0x1f   :  { %2187 = vmatprep.subr.bf16.mxu0 %v2856_v32  ;;  %2033 = vmatprep.mubr.bf16.mxu1 %v2423_v62  ;;  %v2927_v25 = vld [vmem:[%s4102_s0 + $0x130] ss:$8 sps:$4 sm:$0xff]   ;;  %v2935_v27 = vld [vmem:[%s4102_s0 + $0x144] ss:$8 sps:$4 sm:$0xff]   ;;  %v2933_v29 = vld [vmem:[%s4102_s0 + $0x140] ss:$8 sps:$4 sm:$0xff]  }
  0x20   :  { %v2930_v26 = vld [vmem:[%s4102_s0 + $0x530] ss:$8 sps:$4 sm:$0xff]   ;;  %v2938_v28 = vld [vmem:[%s4102_s0 + $0x544] ss:$8 sps:$4 sm:$0xff]   ;;  %v2936_v30 = vld [vmem:[%s4102_s0 + $0x540] ss:$8 sps:$4 sm:$0xff]  }
  0x21   :  { %2016 = vmatpush1.bf16.msra.mxu1 %v2858_v33  ;;  %v2941_v31 = vld [vmem:[%s4102_s0 + $0x154] ss:$8 sps:$4 sm:$0xff]   ;;  %v2939_v33 = vld [vmem:[%s4102_s0 + $0x150] ss:$8 sps:$4 sm:$0xff]   ;;  %v2969_v57 = vld [vmem:[%s4102_s0 + $0x1a0] ss:$8 sps:$4 sm:$0xff]  }
  0x22   :  { %2188 = vmatpush1.bf16.msra.mxu0 %v2859_v34  ;;  %2017 = vmatprep.subr.bf16.mxu1 %v2860_v35  ;;  %v2944_v32 = vld [vmem:[%s4102_s0 + $0x554] ss:$8 sps:$4 sm:$0xff]   ;;  %v2942_v34 = vld [vmem:[%s4102_s0 + $0x550] ss:$8 sps:$4 sm:$0xff]   ;;  %v2947_v35 = vld [vmem:[%s4102_s0 + $0x164] ss:$8 sps:$4 sm:$0xff]  }
  0x23   :  { %2189 = vmatprep.subr.bf16.mxu0 %v2862_v36  ;;  %v2950_v36 = vld [vmem:[%s4102_s0 + $0x564] ss:$8 sps:$4 sm:$0xff]   ;;  %v2965_v51 = vld [vmem:[%s4102_s0 + $0x194] ss:$8 sps:$4 sm:$0xff]   ;;  %v2966_v54 = vld [vmem:[%s4102_s0 + $0x590] ss:$8 sps:$4 sm:$0xff]  }
  0x24   :  { %v2980_v60 = vld [vmem:[%s4102_s0 + $0x5b4] ss:$8 sps:$4 sm:$0xff]   ;;  %v2978_v62 = vld [vmem:[%s4102_s0 + $0x5b0] ss:$8 sps:$4 sm:$0xff]  }
  0x25   :  { %2018 = vmatpush1.bf16.msra.mxu1 %v2864_v37  ;;  %v2945_v37 = vld [vmem:[%s4102_s0 + $0x160] ss:$8 sps:$4 sm:$0xff]  }
  0x26   :  { %2190 = vmatpush1.bf16.msra.mxu0 %v2865_v38  ;;  %2019 = vmatprep.subr.bf16.mxu1 %v2866_v39  ;;  %v2948_v38 = vld [vmem:[%s4102_s0 + $0x560] ss:$8 sps:$4 sm:$0xff]  }
  0x27   :  { %2191 = vmatprep.subr.bf16.mxu0 %v2868_v40  ;;  %v3536_v39 = vld [vmem:[%s4104_s2 + $0x8] sm:$0xff]   ;;  %v2953_v40 = vld [vmem:[%s4102_s0 + $0x174] ss:$8 sps:$4 sm:$0xff]  }
  0x29   :  { %2020 = vmatpush1.bf16.msra.mxu1 %v2870_v41  ;;  %v2956_v41 = vld [vmem:[%s4102_s0 + $0x574] ss:$8 sps:$4 sm:$0xff]  }
  0x2a   :  { %2192 = vmatpush1.bf16.msra.mxu0 %v2871_v42  ;;  %2021 = vmatprep.subr.bf16.mxu1 %v2872_v43  ;;  %v2425_v42 = vcombine.high %v3536_v39, %v3245_v3  ;;  %v3549_v43 = vld [vmem:[%s4104_s2 + $0x28] sm:$0xff]  }
  0x2b   :  { %2193 = vmatprep.subr.bf16.mxu0 %v2874_v44  ;;  %v2951_v44 = vld [vmem:[%s4102_s0 + $0x170] ss:$8 sps:$4 sm:$0xff]  }
  0x2d   :  { %2022 = vmatpush1.bf16.msra.mxu1 %v2876_v45  ;;  %v2954_v45 = vld [vmem:[%s4102_s0 + $0x570] ss:$8 sps:$4 sm:$0xff]  }
  0x2e   :  { %2194 = vmatpush1.bf16.msra.mxu0 %v2877_v46  ;;  %2023 = vmatprep.subr.bf16.mxu1 %v2878_v47  ;;  %v2959_v46 = vld [vmem:[%s4102_s0 + $0x184] ss:$8 sps:$4 sm:$0xff]   ;;  %v2433_v47 = vcombine.high %v3549_v43, %v3245_v3 }
  0x2f   :  { %2195 = vmatprep.subr.bf16.mxu0 %v2880_v48  ;;  %v2962_v48 = vld [vmem:[%s4102_s0 + $0x584] ss:$8 sps:$4 sm:$0xff]  }
  0x31   :  { %2024 = vmatpush1.bf16.msra.mxu1 %v2882_v49  ;;  %v2957_v49 = vld [vmem:[%s4102_s0 + $0x180] ss:$8 sps:$4 sm:$0xff]  }
  0x32   :  { %2196 = vmatpush1.bf16.msra.mxu0 %v2883_v50  ;;  %2025 = vmatprep.subr.bf16.mxu1 %v2884_v52  ;;  %v2960_v50 = vld [vmem:[%s4102_s0 + $0x580] ss:$8 sps:$4 sm:$0xff]   ;;  %v2968_v52 = vld [vmem:[%s4102_s0 + $0x594] ss:$8 sps:$4 sm:$0xff]  }
  0x33   :  { %2197 = vmatprep.subr.bf16.mxu0 %v2886_v53  ;;  %v2963_v53 = vld [vmem:[%s4102_s0 + $0x190] ss:$8 sps:$4 sm:$0xff]  }
  0x35   :  { %2026 = vmatpush1.bf16.msra.mxu1 %v2888_v55  ;;  %v2971_v55 = vld [vmem:[%s4102_s0 + $0x1a4] ss:$8 sps:$4 sm:$0xff]  }
  0x36   :  { %2198 = vmatpush1.bf16.msra.mxu0 %v2889_v56  ;;  %2027 = vmatprep.subr.bf16.mxu1 %v2890_v58  ;;  %v2974_v56 = vld [vmem:[%s4102_s0 + $0x5a4] ss:$8 sps:$4 sm:$0xff]   ;;  %v2972_v58 = vld [vmem:[%s4102_s0 + $0x5a0] ss:$8 sps:$4 sm:$0xff]  }
  0x37   :  { %2199 = vmatprep.subr.bf16.mxu0 %v2892_v59  ;;  %v2977_v59 = vld [vmem:[%s4102_s0 + $0x1b4] ss:$8 sps:$4 sm:$0xff]  }
  0x39   :  { %2028 = vmatpush1.bf16.msra.mxu1 %v2894_v61  ;;  %v2975_v61 = vld [vmem:[%s4102_s0 + $0x1b0] ss:$8 sps:$4 sm:$0xff]  }
  0x3a   :  { %2200 = vmatpush1.bf16.msra.mxu0 %v2895_v63  ;;  %2029 = vmatprep.subr.bf16.mxu1 %v2896_v0  ;;  %v2983_v63 = vld [vmem:[%s4102_s0 + $0x1c4] ss:$8 sps:$4 sm:$0xff]  }
  0x3b   :  { %2201 = vmatprep.subr.bf16.mxu0 %v2898_v1  ;;  %v2986_v0 = vld [vmem:[%s4102_s0 + $0x5c4] ss:$8 sps:$4 sm:$0xff]   ;;  %v2981_v1 = vld [vmem:[%s4102_s0 + $0x1c0] ss:$8 sps:$4 sm:$0xff]  }
  0x3d   :  { %2030 = vmatpush1.bf16.msra.mxu1 %v2900_v2  ;;  %v2984_v2 = vld [vmem:[%s4102_s0 + $0x5c0] ss:$8 sps:$4 sm:$0xff]  }
  0x3e   :  { %2202 = vmatpush1.bf16.msra.mxu0 %v2901_v4  ;;  %2031 = vmatprep.subr.bf16.mxu1 %v2902_v5  ;;  %v2989_v4 = vld [vmem:[%s4102_s0 + $0x1d4] ss:$8 sps:$4 sm:$0xff]  }
  0x3f   :  { %2203 = vmatprep.subr.bf16.mxu0 %v2904_v6  ;;  %v2992_v5 = vld [vmem:[%s4102_s0 + $0x5d4] ss:$8 sps:$4 sm:$0xff]   ;;  %v2987_v6 = vld [vmem:[%s4102_s0 + $0x1d0] ss:$8 sps:$4 sm:$0xff]  }
  0x41   :  { %2032 = vmatpush1.bf16.msra.mxu1 %v2906_v7  ;;  %v2990_v7 = vld [vmem:[%s4102_s0 + $0x5d0] ss:$8 sps:$4 sm:$0xff]  }
  0x42   :  { %2204 = vmatpush1.bf16.msra.mxu0 %v2907_v8  ;;  %2044 = vmatprep.subr.bf16.mxu1 %v2910_v9  ;;  %v2995_v8 = vld [vmem:[%s4102_s0 + $0x1e4] ss:$8 sps:$4 sm:$0xff]  }
  0x43   :  { %2216 = vmatprep.subr.bf16.mxu0 %v2914_v10  ;;  %v2998_v9 = vld [vmem:[%s4102_s0 + $0x5e4] ss:$8 sps:$4 sm:$0xff]   ;;  %v2993_v10 = vld [vmem:[%s4102_s0 + $0x1e0] ss:$8 sps:$4 sm:$0xff]  }
  0x44   :  { %2034 = vmatmul.mubr.bf16.vlgmr.msra.gmra.mrb[0].mxu1 %v2422_v11  ;;  %v2996_v11 = vld [vmem:[%s4102_s0 + $0x5e0] ss:$8 sps:$4 sm:$0xff]  }
  0x45   :  { %2206 = vmatmul.mubr.bf16.vlgmr.msra.gmra.mrb[0].mxu0 %v2430_v13  ;;  %2045 = vmatpush1.bf16.msra.mxu1 %v2908_v12  ;;  %v3001_v12 = vld [vmem:[%s4102_s0 + $0x1f4] ss:$8 sps:$4 sm:$0xff]  }
  0x46   :  { %2217 = vmatpush1.bf16.msra.mxu0 %v2912_v14  ;;  %2046 = vmatprep.subr.bf16.mxu1 %v2917_v15  ;;  %v3004_v13 = vld [vmem:[%s4102_s0 + $0x5f4] ss:$8 sps:$4 sm:$0xff]   ;;  %v2999_v14 = vld [vmem:[%s4102_s0 + $0x1f0] ss:$8 sps:$4 sm:$0xff]  }
  0x47   :  { %2218 = vmatprep.subr.bf16.mxu0 %v2920_v16  ;;  %2076 = vmatprep.mubr.bf16.mxu1 %v2425_v42  ;;  %v3002_v15 = vld [vmem:[%s4102_s0 + $0x5f0] ss:$8 sps:$4 sm:$0xff]   ;;  %v3008_v16 = vld [vmem:[%s4102_s0 + $0x204] ss:$8 sps:$4 sm:$0xff]   ;;  %v3042_v42 = vld [vmem:[%s4102_s0 + $0x654] ss:$8 sps:$4 sm:$0xff]  }
  0x48   :  { %2248 = vmatprep.mubr.bf16.mxu0 %v2433_v47  ;;  %v3043_v47 = vld [vmem:[%s4102_s0 + $0x260] ss:$8 sps:$4 sm:$0xff]  }
  0x49   :  { %2047 = vmatpush1.bf16.msra.mxu1 %v2915_v17  ;;  %v3012_v17 = vld [vmem:[%s4102_s0 + $0x604] ss:$8 sps:$4 sm:$0xff]  }
  0x4a   :  { %2219 = vmatpush1.bf16.msra.mxu0 %v2918_v18  ;;  %2048 = vmatprep.subr.bf16.mxu1 %v2923_v19  ;;  %v2424_v18 = vcombine.low %v3536_v39, %v3245_v3  ;;  %v3006_v19 = vld [vmem:[%s4102_s0 + $0x200] ss:$8 sps:$4 sm:$0xff]  }
  0x4b   :  { %2220 = vmatprep.subr.bf16.mxu0 %v2926_v20  ;;  %v2432_v20 = vcombine.low %v3549_v43, %v3245_v3  ;;  %v3031_v39 = vld [vmem:[%s4102_s0 + $0x240] ss:$8 sps:$4 sm:$0xff]   ;;  %v3037_v43 = vld [vmem:[%s4102_s0 + $0x250] ss:$8 sps:$4 sm:$0xff]  }
  0x4d   :  { %2049 = vmatpush1.bf16.msra.mxu1 %v2921_v21  ;;  %v3010_v21 = vld [vmem:[%s4102_s0 + $0x600] ss:$8 sps:$4 sm:$0xff]  }
  0x4e   :  { %2221 = vmatpush1.bf16.msra.mxu0 %v2924_v22  ;;  %2050 = vmatprep.subr.bf16.mxu1 %v2929_v23  ;;  %v3015_v22 = vld [vmem:[%s4102_s0 + $0x214] ss:$8 sps:$4 sm:$0xff]  }
  0x4f   :  { %2222 = vmatprep.subr.bf16.mxu0 %v2932_v24  ;;  %v3018_v23 = vld [vmem:[%s4102_s0 + $0x614] ss:$8 sps:$4 sm:$0xff]   ;;  %v3013_v24 = vld [vmem:[%s4102_s0 + $0x210] ss:$8 sps:$4 sm:$0xff]  }
  0x51   :  { %2051 = vmatpush1.bf16.msra.mxu1 %v2927_v25  ;;  %v3016_v25 = vld [vmem:[%s4102_s0 + $0x610] ss:$8 sps:$4 sm:$0xff]  }
  0x52   :  { %2223 = vmatpush1.bf16.msra.mxu0 %v2930_v26  ;;  %2052 = vmatprep.subr.bf16.mxu1 %v2935_v27  ;;  %v3686_v26 = vld [vmem:[%s4104_s2 + $0x10] sm:$0xff]   ;;  %v3021_v27 = vld [vmem:[%s4102_s0 + $0x224] ss:$8 sps:$4 sm:$0xff]  }
  0x53   :  { %2224 = vmatprep.subr.bf16.mxu0 %v2938_v28  ;;  %v3024_v28 = vld [vmem:[%s4102_s0 + $0x624] ss:$8 sps:$4 sm:$0xff]  }
  0x55   :  { %2053 = vmatpush1.bf16.msra.mxu1 %v2933_v29  ;;  %v2427_v29 = vcombine.high %v3686_v26, %v3245_v3 }
  0x56   :  { %2225 = vmatpush1.bf16.msra.mxu0 %v2936_v30  ;;  %2054 = vmatprep.subr.bf16.mxu1 %v2941_v31  ;;  %v3699_v30 = vld [vmem:[%s4104_s2 + $0x30] sm:$0xff]   ;;  %v3019_v31 = vld [vmem:[%s4102_s0 + $0x220] ss:$8 sps:$4 sm:$0xff]  }
  0x57   :  { %2226 = vmatprep.subr.bf16.mxu0 %v2944_v32  ;;  %v3022_v32 = vld [vmem:[%s4102_s0 + $0x620] ss:$8 sps:$4 sm:$0xff]  }
  0x59   :  { %2055 = vmatpush1.bf16.msra.mxu1 %v2939_v33  ;;  %v2435_v33 = vcombine.high %v3699_v30, %v3245_v3  ;;  %v3028_v3 = vld [vmem:[%s4102_s0 + $0x630] ss:$8 sps:$4 sm:$0xff]  }
  0x5a   :  { %2227 = vmatpush1.bf16.msra.mxu0 %v2942_v34  ;;  %2056 = vmatprep.subr.bf16.mxu1 %v2947_v35  ;;  %v3027_v34 = vld [vmem:[%s4102_s0 + $0x234] ss:$8 sps:$4 sm:$0xff]  }
  0x5b   :  { %2228 = vmatprep.subr.bf16.mxu0 %v2950_v36  ;;  %v3030_v35 = vld [vmem:[%s4102_s0 + $0x634] ss:$8 sps:$4 sm:$0xff]   ;;  %v3025_v36 = vld [vmem:[%s4102_s0 + $0x230] ss:$8 sps:$4 sm:$0xff]  }
  0x5d   :  { %2057 = vmatpush1.bf16.msra.mxu1 %v2945_v37  ;;  %v3033_v37 = vld [vmem:[%s4102_s0 + $0x244] ss:$8 sps:$4 sm:$0xff]  }
  0x5e   :  { %2229 = vmatpush1.bf16.msra.mxu0 %v2948_v38  ;;  %2058 = vmatprep.subr.bf16.mxu1 %v2953_v40  ;;  %v3036_v38 = vld [vmem:[%s4102_s0 + $0x644] ss:$8 sps:$4 sm:$0xff]   ;;  %v3034_v40 = vld [vmem:[%s4102_s0 + $0x640] ss:$8 sps:$4 sm:$0xff]  }
  0x5f   :  { %2230 = vmatprep.subr.bf16.mxu0 %v2956_v41  ;;  %v3039_v41 = vld [vmem:[%s4102_s0 + $0x254] ss:$8 sps:$4 sm:$0xff]  }
  0x61   :  { %2059 = vmatpush1.bf16.msra.mxu1 %v2951_v44  ;;  %v3040_v44 = vld [vmem:[%s4102_s0 + $0x650] ss:$8 sps:$4 sm:$0xff]  }
  0x62   :  { %2231 = vmatpush1.bf16.msra.mxu0 %v2954_v45  ;;  %2060 = vmatprep.subr.bf16.mxu1 %v2959_v46  ;;  %v3045_v45 = vld [vmem:[%s4102_s0 + $0x264] ss:$8 sps:$4 sm:$0xff]  }
  0x63   :  { %2232 = vmatprep.subr.bf16.mxu0 %v2962_v48  ;;  %v3048_v46 = vld [vmem:[%s4102_s0 + $0x664] ss:$8 sps:$4 sm:$0xff]   ;;  %v3046_v48 = vld [vmem:[%s4102_s0 + $0x660] ss:$8 sps:$4 sm:$0xff]  }
  0x65   :  { %2061 = vmatpush1.bf16.msra.mxu1 %v2957_v49  ;;  %v3051_v49 = vld [vmem:[%s4102_s0 + $0x274] ss:$8 sps:$4 sm:$0xff]  }
  0x66   :  { %2233 = vmatpush1.bf16.msra.mxu0 %v2960_v50  ;;  %2062 = vmatprep.subr.bf16.mxu1 %v2965_v51  ;;  %v3054_v50 = vld [vmem:[%s4102_s0 + $0x674] ss:$8 sps:$4 sm:$0xff]   ;;  %v3049_v51 = vld [vmem:[%s4102_s0 + $0x270] ss:$8 sps:$4 sm:$0xff]  }
  0x67   :  { %2234 = vmatprep.subr.bf16.mxu0 %v2968_v52  ;;  %v3052_v52 = vld [vmem:[%s4102_s0 + $0x670] ss:$8 sps:$4 sm:$0xff]  }
  0x69   :  { %2063 = vmatpush1.bf16.msra.mxu1 %v2963_v53  ;;  %v3057_v53 = vld [vmem:[%s4102_s0 + $0x284] ss:$8 sps:$4 sm:$0xff]  }
  0x6a   :  { %2235 = vmatpush1.bf16.msra.mxu0 %v2966_v54  ;;  %2064 = vmatprep.subr.bf16.mxu1 %v2971_v55  ;;  %v3060_v54 = vld [vmem:[%s4102_s0 + $0x684] ss:$8 sps:$4 sm:$0xff]   ;;  %v3055_v55 = vld [vmem:[%s4102_s0 + $0x280] ss:$8 sps:$4 sm:$0xff]  }
  0x6b   :  { %2236 = vmatprep.subr.bf16.mxu0 %v2974_v56  ;;  %v3058_v56 = vld [vmem:[%s4102_s0 + $0x680] ss:$8 sps:$4 sm:$0xff]  }
  0x6d   :  { %2065 = vmatpush1.bf16.msra.mxu1 %v2969_v57  ;;  %v3063_v57 = vld [vmem:[%s4102_s0 + $0x294] ss:$8 sps:$4 sm:$0xff]  }
  0x6e   :  { %2237 = vmatpush1.bf16.msra.mxu0 %v2972_v58  ;;  %2066 = vmatprep.subr.bf16.mxu1 %v2977_v59  ;;  %v3066_v58 = vld [vmem:[%s4102_s0 + $0x694] ss:$8 sps:$4 sm:$0xff]   ;;  %v3061_v59 = vld [vmem:[%s4102_s0 + $0x290] ss:$8 sps:$4 sm:$0xff]  }
  0x6f   :  { %2238 = vmatprep.subr.bf16.mxu0 %v2980_v60  ;;  %v3064_v60 = vld [vmem:[%s4102_s0 + $0x690] ss:$8 sps:$4 sm:$0xff]  }
  0x71   :  { %2067 = vmatpush1.bf16.msra.mxu1 %v2975_v61  ;;  %v3069_v61 = vld [vmem:[%s4102_s0 + $0x2a4] ss:$8 sps:$4 sm:$0xff]  }
  0x72   :  { %2239 = vmatpush1.bf16.msra.mxu0 %v2978_v62  ;;  %2068 = vmatprep.subr.bf16.mxu1 %v2983_v63  ;;  %v3072_v62 = vld [vmem:[%s4102_s0 + $0x6a4] ss:$8 sps:$4 sm:$0xff]   ;;  %v3067_v63 = vld [vmem:[%s4102_s0 + $0x2a0] ss:$8 sps:$4 sm:$0xff]  }
  0x73   :  { %2240 = vmatprep.subr.bf16.mxu0 %v2986_v0  ;;  %v3070_v0 = vld [vmem:[%s4102_s0 + $0x6a0] ss:$8 sps:$4 sm:$0xff]  }
  0x75   :  { %2069 = vmatpush1.bf16.msra.mxu1 %v2981_v1  ;;  %v3075_v1 = vld [vmem:[%s4102_s0 + $0x2b4] ss:$8 sps:$4 sm:$0xff]  }
  0x76   :  { %2241 = vmatpush1.bf16.msra.mxu0 %v2984_v2  ;;  %2070 = vmatprep.subr.bf16.mxu1 %v2989_v4  ;;  %v3078_v2 = vld [vmem:[%s4102_s0 + $0x6b4] ss:$8 sps:$4 sm:$0xff]   ;;  %v3073_v4 = vld [vmem:[%s4102_s0 + $0x2b0] ss:$8 sps:$4 sm:$0xff]  }
  0x77   :  { %2242 = vmatprep.subr.bf16.mxu0 %v2992_v5  ;;  %v3076_v5 = vld [vmem:[%s4102_s0 + $0x6b0] ss:$8 sps:$4 sm:$0xff]  }
  0x79   :  { %2071 = vmatpush1.bf16.msra.mxu1 %v2987_v6  ;;  %v3081_v6 = vld [vmem:[%s4102_s0 + $0x2c4] ss:$8 sps:$4 sm:$0xff]  }
  0x7a   :  { %2243 = vmatpush1.bf16.msra.mxu0 %v2990_v7  ;;  %2072 = vmatprep.subr.bf16.mxu1 %v2995_v8  ;;  %v3084_v7 = vld [vmem:[%s4102_s0 + $0x6c4] ss:$8 sps:$4 sm:$0xff]   ;;  %v3079_v8 = vld [vmem:[%s4102_s0 + $0x2c0] ss:$8 sps:$4 sm:$0xff]  }
  0x7b   :  { %2244 = vmatprep.subr.bf16.mxu0 %v2998_v9  ;;  %v3082_v9 = vld [vmem:[%s4102_s0 + $0x6c0] ss:$8 sps:$4 sm:$0xff]  }
  0x7d   :  { %2073 = vmatpush1.bf16.msra.mxu1 %v2993_v10  ;;  %v3087_v10 = vld [vmem:[%s4102_s0 + $0x2d4] ss:$8 sps:$4 sm:$0xff]  }
  0x7e   :  { %2245 = vmatpush1.bf16.msra.mxu0 %v2996_v11  ;;  %2074 = vmatprep.subr.bf16.mxu1 %v3001_v12  ;;  %v3090_v11 = vld [vmem:[%s4102_s0 + $0x6d4] ss:$8 sps:$4 sm:$0xff]  }
  0x7f   :  { %2246 = vmatprep.subr.bf16.mxu0 %v3004_v13  ;;  %v3838_v12 = vld [vmem:[%s4104_s2 + $0x18] sm:$0xff]  }
  0x80   :  { %v3843_v13 = vld [vmem:[%s4104_s2 + $0x38] sm:$0xff]  }
  0x81   :  { %2075 = vmatpush1.bf16.msra.mxu1 %v2999_v14  ;;  %v3085_v14 = vld [vmem:[%s4102_s0 + $0x2d0] ss:$8 sps:$4 sm:$0xff]  }
  0x82   :  { %2247 = vmatpush1.bf16.msra.mxu0 %v3002_v15  ;;  %2087 = vmatprep.subr.bf16.mxu1 %v3008_v16  ;;  %v3088_v15 = vld [vmem:[%s4102_s0 + $0x6d0] ss:$8 sps:$4 sm:$0xff]   ;;  %v3093_v16 = vld [vmem:[%s4102_s0 + $0x2e4] ss:$8 sps:$4 sm:$0xff]  }
  0x83   :  { %2259 = vmatprep.subr.bf16.mxu0 %v3012_v17  ;;  %v3096_v17 = vld [vmem:[%s4102_s0 + $0x6e4] ss:$8 sps:$4 sm:$0xff]  }
  0x84   :  { %2077 = vmatmul.mubr.bf16.vlgmr.msra.gmra.mrb[0].mxu1 %v2424_v18  ;;  %v3091_v18 = vld [vmem:[%s4102_s0 + $0x2e0] ss:$8 sps:$4 sm:$0xff]  }
  0x85   :  { %2249 = vmatmul.mubr.bf16.vlgmr.msra.gmra.mrb[0].mxu0 %v2432_v20  ;;  %2088 = vmatpush1.bf16.msra.mxu1 %v3006_v19  ;;  %v3094_v19 = vld [vmem:[%s4102_s0 + $0x6e0] ss:$8 sps:$4 sm:$0xff]   ;;  %v3099_v20 = vld [vmem:[%s4102_s0 + $0x2f4] ss:$8 sps:$4 sm:$0xff]  }
  0x86   :  { %2260 = vmatpush1.bf16.msra.mxu0 %v3010_v21  ;;  %2089 = vmatprep.subr.bf16.mxu1 %v3015_v22  ;;  %v3102_v21 = vld [vmem:[%s4102_s0 + $0x6f4] ss:$8 sps:$4 sm:$0xff]   ;;  %v3097_v22 = vld [vmem:[%s4102_s0 + $0x2f0] ss:$8 sps:$4 sm:$0xff]  }
  0x87   :  { %2261 = vmatprep.subr.bf16.mxu0 %v3018_v23  ;;  %2119 = vmatprep.mubr.bf16.mxu1 %v2427_v29  ;;  %v3100_v23 = vld [vmem:[%s4102_s0 + $0x6f0] ss:$8 sps:$4 sm:$0xff]  }
  0x88   :  { %2291 = vmatprep.mubr.bf16.mxu0 %v2435_v33  ;;  %v3104_v33 = vld [vmem:[%s4102_s0 + $0x300] ss:$8 sps:$4 sm:$0xff]  }
  0x89   :  { %2090 = vmatpush1.bf16.msra.mxu1 %v3013_v24  ;;  %v3106_v24 = vld [vmem:[%s4102_s0 + $0x304] ss:$8 sps:$4 sm:$0xff]  }
  0x8a   :  { %2262 = vmatpush1.bf16.msra.mxu0 %v3016_v25  ;;  %2091 = vmatprep.subr.bf16.mxu1 %v3021_v27  ;;  %v3110_v25 = vld [vmem:[%s4102_s0 + $0x704] ss:$8 sps:$4 sm:$0xff]  }
  0x8b   :  { %2263 = vmatprep.subr.bf16.mxu0 %v3024_v28  ;;  %v3203_v27 = vld [vmem:[#allocation7 + $0x40] sm:$0xff] }
  0x8c   :  { %v2426_v28 = vcombine.low %v3686_v26, %v3203_v27  ;;  %v2434_v29 = vcombine.low %v3699_v30, %v3203_v27  ;;  %v3113_v26 = vld [vmem:[%s4102_s0 + $0x314] ss:$8 sps:$4 sm:$0xff]   ;;  %v3194_v27 = vld [vmem:[%s4102_s0 + $0x7e4] ss:$8 sps:$4 sm:$0xff]  }
  0x8d   :  { %2092 = vmatpush1.bf16.msra.mxu1 %v3019_v31  ;;  %v3883_v31 = vld [vmem:[#allocation7 + $0x58] sm:$0xff] }
  0x8e   :  { %2264 = vmatpush1.bf16.msra.mxu0 %v3022_v32  ;;  %2093 = vmatprep.subr.bf16.mxu1 %v3027_v34  ;;  %v3885_v32 = vld [vmem:[#allocation7 + $0x78] sm:$0xff]  ;;  %v3108_v34 = vld [vmem:[%s4102_s0 + $0x700] ss:$8 sps:$4 sm:$0xff]  }
  0x8f   :  { %2265 = vmatprep.subr.bf16.mxu0 %v3030_v35  ;;  %v3116_v30 = vld [vmem:[%s4102_s0 + $0x714] ss:$8 sps:$4 sm:$0xff]   ;;  %v2429_v35 = vcombine.high %v3838_v12, %v3883_v31 }
  0x91   :  { %2094 = vmatpush1.bf16.msra.mxu1 %v3025_v36  ;;  %v2437_v36 = vcombine.high %v3843_v13, %v3885_v32 }
  0x92   :  { %2266 = vmatpush1.bf16.msra.mxu0 %v3028_v3  ;;  %2095 = vmatprep.subr.bf16.mxu1 %v3033_v37  ;;  %v3111_v3 = vld [vmem:[%s4102_s0 + $0x310] ss:$8 sps:$4 sm:$0xff]  }
  0x93   :  { %2267 = vmatprep.subr.bf16.mxu0 %v3036_v38  ;;  %v3114_v37 = vld [vmem:[%s4102_s0 + $0x710] ss:$8 sps:$4 sm:$0xff]   ;;  %v3119_v38 = vld [vmem:[%s4102_s0 + $0x324] ss:$8 sps:$4 sm:$0xff]  }
  0x95   :  { %2096 = vmatpush1.bf16.msra.mxu1 %v3031_v39  ;;  %v3122_v39 = vld [vmem:[%s4102_s0 + $0x724] ss:$8 sps:$4 sm:$0xff]  }
  0x96   :  { %2268 = vmatpush1.bf16.msra.mxu0 %v3034_v40  ;;  %2097 = vmatprep.subr.bf16.mxu1 %v3039_v41  ;;  %v3117_v40 = vld [vmem:[%s4102_s0 + $0x320] ss:$8 sps:$4 sm:$0xff]  }
  0x97   :  { %2269 = vmatprep.subr.bf16.mxu0 %v3042_v42  ;;  %v3120_v41 = vld [vmem:[%s4102_s0 + $0x720] ss:$8 sps:$4 sm:$0xff]   ;;  %v3125_v42 = vld [vmem:[%s4102_s0 + $0x334] ss:$8 sps:$4 sm:$0xff]  }
  0x99   :  { %2098 = vmatpush1.bf16.msra.mxu1 %v3037_v43  ;;  %v3128_v43 = vld [vmem:[%s4102_s0 + $0x734] ss:$8 sps:$4 sm:$0xff]  }
  0x9a   :  { %2270 = vmatpush1.bf16.msra.mxu0 %v3040_v44  ;;  %2099 = vmatprep.subr.bf16.mxu1 %v3045_v45  ;;  %v3123_v44 = vld [vmem:[%s4102_s0 + $0x330] ss:$8 sps:$4 sm:$0xff]  }
  0x9b   :  { %2271 = vmatprep.subr.bf16.mxu0 %v3048_v46  ;;  %v3126_v45 = vld [vmem:[%s4102_s0 + $0x730] ss:$8 sps:$4 sm:$0xff]   ;;  %v3131_v46 = vld [vmem:[%s4102_s0 + $0x344] ss:$8 sps:$4 sm:$0xff]  }
  0x9d   :  { %2100 = vmatpush1.bf16.msra.mxu1 %v3043_v47  ;;  %v3134_v47 = vld [vmem:[%s4102_s0 + $0x744] ss:$8 sps:$4 sm:$0xff]  }
  0x9e   :  { %2272 = vmatpush1.bf16.msra.mxu0 %v3046_v48  ;;  %2101 = vmatprep.subr.bf16.mxu1 %v3051_v49  ;;  %v3129_v48 = vld [vmem:[%s4102_s0 + $0x340] ss:$8 sps:$4 sm:$0xff]  }
  0x9f   :  { %2273 = vmatprep.subr.bf16.mxu0 %v3054_v50  ;;  %v3132_v49 = vld [vmem:[%s4102_s0 + $0x740] ss:$8 sps:$4 sm:$0xff]   ;;  %v3137_v50 = vld [vmem:[%s4102_s0 + $0x354] ss:$8 sps:$4 sm:$0xff]  }
  0xa1   :  { %2102 = vmatpush1.bf16.msra.mxu1 %v3049_v51  ;;  %v3140_v51 = vld [vmem:[%s4102_s0 + $0x754] ss:$8 sps:$4 sm:$0xff]  }
  0xa2   :  { %2274 = vmatpush1.bf16.msra.mxu0 %v3052_v52  ;;  %2103 = vmatprep.subr.bf16.mxu1 %v3057_v53  ;;  %v3135_v52 = vld [vmem:[%s4102_s0 + $0x350] ss:$8 sps:$4 sm:$0xff]  }
  0xa3   :  { %2275 = vmatprep.subr.bf16.mxu0 %v3060_v54  ;;  %v3138_v53 = vld [vmem:[%s4102_s0 + $0x750] ss:$8 sps:$4 sm:$0xff]   ;;  %v3143_v54 = vld [vmem:[%s4102_s0 + $0x364] ss:$8 sps:$4 sm:$0xff]  }
  0xa5   :  { %2104 = vmatpush1.bf16.msra.mxu1 %v3055_v55  ;;  %v3146_v55 = vld [vmem:[%s4102_s0 + $0x764] ss:$8 sps:$4 sm:$0xff]  }
  0xa6   :  { %2276 = vmatpush1.bf16.msra.mxu0 %v3058_v56  ;;  %2105 = vmatprep.subr.bf16.mxu1 %v3063_v57  ;;  %v3141_v56 = vld [vmem:[%s4102_s0 + $0x360] ss:$8 sps:$4 sm:$0xff]  }
  0xa7   :  { %2277 = vmatprep.subr.bf16.mxu0 %v3066_v58  ;;  %v3144_v57 = vld [vmem:[%s4102_s0 + $0x760] ss:$8 sps:$4 sm:$0xff]   ;;  %v3149_v58 = vld [vmem:[%s4102_s0 + $0x374] ss:$8 sps:$4 sm:$0xff]  }
  0xa9   :  { %2106 = vmatpush1.bf16.msra.mxu1 %v3061_v59  ;;  %v3152_v59 = vld [vmem:[%s4102_s0 + $0x774] ss:$8 sps:$4 sm:$0xff]  }
  0xaa   :  { %2278 = vmatpush1.bf16.msra.mxu0 %v3064_v60  ;;  %2107 = vmatprep.subr.bf16.mxu1 %v3069_v61  ;;  %v3147_v60 = vld [vmem:[%s4102_s0 + $0x370] ss:$8 sps:$4 sm:$0xff]  }
  0xab   :  { %2279 = vmatprep.subr.bf16.mxu0 %v3072_v62  ;;  %v3150_v61 = vld [vmem:[%s4102_s0 + $0x770] ss:$8 sps:$4 sm:$0xff]   ;;  %v3155_v62 = vld [vmem:[%s4102_s0 + $0x384] ss:$8 sps:$4 sm:$0xff]  }
  0xad   :  { %2108 = vmatpush1.bf16.msra.mxu1 %v3067_v63  ;;  %v3158_v63 = vld [vmem:[%s4102_s0 + $0x784] ss:$8 sps:$4 sm:$0xff]  }
  0xae   :  { %2280 = vmatpush1.bf16.msra.mxu0 %v3070_v0  ;;  %2109 = vmatprep.subr.bf16.mxu1 %v3075_v1  ;;  %v3153_v0 = vld [vmem:[%s4102_s0 + $0x380] ss:$8 sps:$4 sm:$0xff]  }
  0xaf   :  { %2281 = vmatprep.subr.bf16.mxu0 %v3078_v2  ;;  %v3156_v1 = vld [vmem:[%s4102_s0 + $0x780] ss:$8 sps:$4 sm:$0xff]   ;;  %v3161_v2 = vld [vmem:[%s4102_s0 + $0x394] ss:$8 sps:$4 sm:$0xff]  }
  0xb1   :  { %2110 = vmatpush1.bf16.msra.mxu1 %v3073_v4  ;;  %v3164_v4 = vld [vmem:[%s4102_s0 + $0x794] ss:$8 sps:$4 sm:$0xff]  }
  0xb2   :  { %2282 = vmatpush1.bf16.msra.mxu0 %v3076_v5  ;;  %2111 = vmatprep.subr.bf16.mxu1 %v3081_v6  ;;  %v3159_v5 = vld [vmem:[%s4102_s0 + $0x390] ss:$8 sps:$4 sm:$0xff]  }
  0xb3   :  { %2283 = vmatprep.subr.bf16.mxu0 %v3084_v7  ;;  %v3162_v6 = vld [vmem:[%s4102_s0 + $0x790] ss:$8 sps:$4 sm:$0xff]   ;;  %v3167_v7 = vld [vmem:[%s4102_s0 + $0x3a4] ss:$8 sps:$4 sm:$0xff]  }
  0xb5   :  { %2112 = vmatpush1.bf16.msra.mxu1 %v3079_v8  ;;  %v3170_v8 = vld [vmem:[%s4102_s0 + $0x7a4] ss:$8 sps:$4 sm:$0xff]  }
  0xb6   :  { %2284 = vmatpush1.bf16.msra.mxu0 %v3082_v9  ;;  %2113 = vmatprep.subr.bf16.mxu1 %v3087_v10  ;;  %v3165_v9 = vld [vmem:[%s4102_s0 + $0x3a0] ss:$8 sps:$4 sm:$0xff]  }
  0xb7   :  { %2285 = vmatprep.subr.bf16.mxu0 %v3090_v11  ;;  %v3168_v10 = vld [vmem:[%s4102_s0 + $0x7a0] ss:$8 sps:$4 sm:$0xff]   ;;  %v3173_v11 = vld [vmem:[%s4102_s0 + $0x3b4] ss:$8 sps:$4 sm:$0xff]  }
  0xb9   :  { %2114 = vmatpush1.bf16.msra.mxu1 %v3085_v14  ;;  %v3176_v14 = vld [vmem:[%s4102_s0 + $0x7b4] ss:$8 sps:$4 sm:$0xff]  }
  0xba   :  { %2286 = vmatpush1.bf16.msra.mxu0 %v3088_v15  ;;  %2115 = vmatprep.subr.bf16.mxu1 %v3093_v16  ;;  %v3171_v15 = vld [vmem:[%s4102_s0 + $0x3b0] ss:$8 sps:$4 sm:$0xff]  }
  0xbb   :  { %2287 = vmatprep.subr.bf16.mxu0 %v3096_v17  ;;  %v3174_v16 = vld [vmem:[%s4102_s0 + $0x7b0] ss:$8 sps:$4 sm:$0xff]   ;;  %v3179_v17 = vld [vmem:[%s4102_s0 + $0x3c4] ss:$8 sps:$4 sm:$0xff]  }
  0xbd   :  { %2116 = vmatpush1.bf16.msra.mxu1 %v3091_v18  ;;  %v3182_v18 = vld [vmem:[%s4102_s0 + $0x7c4] ss:$8 sps:$4 sm:$0xff]  }
  0xbe   :  { %2288 = vmatpush1.bf16.msra.mxu0 %v3094_v19  ;;  %2117 = vmatprep.subr.bf16.mxu1 %v3099_v20  ;;  %v3177_v19 = vld [vmem:[%s4102_s0 + $0x3c0] ss:$8 sps:$4 sm:$0xff]  }
  0xbf   :  { %2289 = vmatprep.subr.bf16.mxu0 %v3102_v21  ;;  %v3180_v20 = vld [vmem:[%s4102_s0 + $0x7c0] ss:$8 sps:$4 sm:$0xff]   ;;  %v3185_v21 = vld [vmem:[%s4102_s0 + $0x3d4] ss:$8 sps:$4 sm:$0xff]  }
  0xc1   :  { %2118 = vmatpush1.bf16.msra.mxu1 %v3097_v22  ;;  %v3188_v22 = vld [vmem:[%s4102_s0 + $0x7d4] ss:$8 sps:$4 sm:$0xff]  }
  0xc2   :  { %2290 = vmatpush1.bf16.msra.mxu0 %v3100_v23  ;;  %2130 = vmatprep.subr.bf16.mxu1 %v3106_v24  ;;  %v3183_v23 = vld [vmem:[%s4102_s0 + $0x3d0] ss:$8 sps:$4 sm:$0xff]  }
  0xc3   :  { %2302 = vmatprep.subr.bf16.mxu0 %v3110_v25  ;;  %v3186_v24 = vld [vmem:[%s4102_s0 + $0x7d0] ss:$8 sps:$4 sm:$0xff]   ;;  %v3191_v25 = vld [vmem:[%s4102_s0 + $0x3e4] ss:$8 sps:$4 sm:$0xff]  }
  0xc4   :  { %2120 = vmatmul.mubr.bf16.vlgmr.msra.gmra.mrb[0].mxu1 %v2426_v28  ;;  %v3189_v28 = vld [vmem:[%s4102_s0 + $0x3e0] ss:$8 sps:$4 sm:$0xff]  }
  0xc5   :  { %2292 = vmatmul.mubr.bf16.vlgmr.msra.gmra.mrb[0].mxu0 %v2434_v29  ;;  %2131 = vmatpush1.bf16.msra.mxu1 %v3104_v33  ;;  %v3192_v29 = vld [vmem:[%s4102_s0 + $0x7e0] ss:$8 sps:$4 sm:$0xff]   ;;  %v3197_v33 = vld [vmem:[%s4102_s0 + $0x3f4] ss:$8 sps:$4 sm:$0xff]  }
  0xc6   :  { %2303 = vmatpush1.bf16.msra.mxu0 %v3108_v34  ;;  %2132 = vmatprep.subr.bf16.mxu1 %v3113_v26  ;;  %v3200_v34 = vld [vmem:[%s4102_s0 + $0x7f4] ss:$8 sps:$4 sm:$0xff]   ;;  %v3195_v26 = vld [vmem:[%s4102_s0 + $0x3f0] ss:$8 sps:$4 sm:$0xff]  }
  0xc7   :  { %2304 = vmatprep.subr.bf16.mxu0 %v3116_v30  ;;  %2162 = vmatprep.mubr.bf16.mxu1 %v2429_v35  ;;  %v3198_v30 = vld [vmem:[%s4102_s0 + $0x7f0] ss:$8 sps:$4 sm:$0xff]   ;;  %v2428_v35 = vcombine.low %v3838_v12, %v3883_v31 }
  0xc8   :  { %2334 = vmatprep.mubr.bf16.mxu0 %v2437_v36  ;;  %v2436_v36 = vcombine.low %v3843_v13, %v3885_v32 }
  0xc9   :  { %2133 = vmatpush1.bf16.msra.mxu1 %v3111_v3  ;;  %v631_v3 = vlaneseq }
  0xca   :  { %2305 = vmatpush1.bf16.msra.mxu0 %v3114_v37  ;;  %2134 = vmatprep.subr.bf16.mxu1 %v3119_v38 }
  0xcb   :  { %2306 = vmatprep.subr.bf16.mxu0 %v3122_v39  ;;  %v632_v37 = vshrl.u32 %v631_v3, 7  ;;  %v629_v39 = vld [vmem:[%s4103_s1] sm:$0x3] }
  0xcd   :  { %2135 = vmatpush1.bf16.msra.mxu1 %v3117_v40  ;;  %v633_v38 = vsub.s32 0, %v632_v37  ;;  %v637_v40 = vsub.s32 1, %v632_v37 }
  0xce   :  { %2307 = vmatpush1.bf16.msra.mxu0 %v3120_v41  ;;  %2136 = vmatprep.subr.bf16.mxu1 %v3125_v42 }
  0xcf   :  { %2308 = vmatprep.subr.bf16.mxu0 %v3128_v43  ;;  %v634_v41 = vrot.slane %v629_v39, %v633_v38  ;;  %v638_v42 = vrot.slane %v629_v39, %v637_v40 }
  0xd1   :  { %2137 = vmatpush1.bf16.msra.mxu1 %v3123_v44 }
  0xd2   :  { %2309 = vmatpush1.bf16.msra.mxu0 %v3126_v45  ;;  %2138 = vmatprep.subr.bf16.mxu1 %v3131_v46 }
  0xd3   :  { %2310 = vmatprep.subr.bf16.mxu0 %v3134_v47 }
  0xd5   :  { %2139 = vmatpush1.bf16.msra.mxu1 %v3129_v48 }
  0xd6   :  { %2311 = vmatpush1.bf16.msra.mxu0 %v3132_v49  ;;  %2140 = vmatprep.subr.bf16.mxu1 %v3137_v50 }
  0xd7   :  { %2312 = vmatprep.subr.bf16.mxu0 %v3140_v51 }
  0xd9   :  { %2141 = vmatpush1.bf16.msra.mxu1 %v3135_v52 }
  0xda   :  { %2313 = vmatpush1.bf16.msra.mxu0 %v3138_v53  ;;  %2142 = vmatprep.subr.bf16.mxu1 %v3143_v54 }
  0xdb   :  { %2314 = vmatprep.subr.bf16.mxu0 %v3146_v55 }
  0xdd   :  { %2143 = vmatpush1.bf16.msra.mxu1 %v3141_v56 }
  0xde   :  { %2315 = vmatpush1.bf16.msra.mxu0 %v3144_v57  ;;  %2144 = vmatprep.subr.bf16.mxu1 %v3149_v58 }
  0xdf   :  { %2316 = vmatprep.subr.bf16.mxu0 %v3152_v59 }
  0xe1   :  { %2145 = vmatpush1.bf16.msra.mxu1 %v3147_v60 }
  0xe2   :  { %2317 = vmatpush1.bf16.msra.mxu0 %v3150_v61  ;;  %2146 = vmatprep.subr.bf16.mxu1 %v3155_v62 }
  0xe3   :  { %2318 = vmatprep.subr.bf16.mxu0 %v3158_v63 }
  0xe5   :  { %2147 = vmatpush1.bf16.msra.mxu1 %v3153_v0 }
  0xe6   :  { %2319 = vmatpush1.bf16.msra.mxu0 %v3156_v1  ;;  %2148 = vmatprep.subr.bf16.mxu1 %v3161_v2 }
  0xe7   :  { %2320 = vmatprep.subr.bf16.mxu0 %v3164_v4 }
  0xe9   :  { %2149 = vmatpush1.bf16.msra.mxu1 %v3159_v5 }
  0xea   :  { %2321 = vmatpush1.bf16.msra.mxu0 %v3162_v6  ;;  %2150 = vmatprep.subr.bf16.mxu1 %v3167_v7 }
  0xeb   :  { %2322 = vmatprep.subr.bf16.mxu0 %v3170_v8 }
  0xed   :  { %2151 = vmatpush1.bf16.msra.mxu1 %v3165_v9 }
  0xee   :  { %2323 = vmatpush1.bf16.msra.mxu0 %v3168_v10  ;;  %2152 = vmatprep.subr.bf16.mxu1 %v3173_v11 }
  0xef   :  { %2324 = vmatprep.subr.bf16.mxu0 %v3176_v14 }
  0xf1   :  { %2153 = vmatpush1.bf16.msra.mxu1 %v3171_v15 }
  0xf2   :  { %2325 = vmatpush1.bf16.msra.mxu0 %v3174_v16  ;;  %2154 = vmatprep.subr.bf16.mxu1 %v3179_v17 }
  0xf3   :  { %2326 = vmatprep.subr.bf16.mxu0 %v3182_v18 }
  0xf5   :  { %2155 = vmatpush1.bf16.msra.mxu1 %v3177_v19 }
  0xf6   :  { %2327 = vmatpush1.bf16.msra.mxu0 %v3180_v20  ;;  %2156 = vmatprep.subr.bf16.mxu1 %v3185_v21 }
  0xf7   :  { %2328 = vmatprep.subr.bf16.mxu0 %v3188_v22 }
  0xf9   :  { %2157 = vmatpush1.bf16.msra.mxu1 %v3183_v23 }
  0xfa   :  { %2329 = vmatpush1.bf16.msra.mxu0 %v3186_v24  ;;  %2158 = vmatprep.subr.bf16.mxu1 %v3191_v25 }
  0xfb   :  { %2330 = vmatprep.subr.bf16.mxu0 %v3194_v27 }
  0xfd   :  { %2159 = vmatpush1.bf16.msra.mxu1 %v3189_v28 }
  0xfe   :  { %2331 = vmatpush1.bf16.msra.mxu0 %v3192_v29  ;;  %2160 = vmatprep.subr.bf16.mxu1 %v3197_v33 }
  0xff   :  { %2332 = vmatprep.subr.bf16.mxu0 %v3200_v34 }
 0x101   :  { %2161 = vmatpush1.bf16.msra.mxu1 %v3195_v26 }
 0x102   :  { %2333 = vmatpush1.bf16.msra.mxu0 %v3198_v30 }
 0x104   :  { %2163 = vmatmul.mubr.bf16.vlgmr.msra.gmra.mrb[0].mxu1 %v2428_v35 }
 0x105   :  { %2335 = vmatmul.mubr.bf16.vlgmr.msra.gmra.mrb[0].mxu0 %v2436_v36 }
 0x1d7   :  { %v2164_v43 = vpop.f32.mrb[0].mxu1 }
 0x1d8   :  { %v2336_v44 = vpop.f32.mrb[0].mxu0  ;;  %v2780_v12 = vadd.f32 %v2164_v43, %v634_v41  ;;  %v2166_v31 = vpop.f32.mrb[1].mxu1 }
 0x1d9   :  { %v2338_v45 = vpop.f32.mrb[1].mxu0  ;;  %v2782_v13 = vadd.f32 %v2166_v31, %v638_v42  ;;  %v2168_v32 = vpop.f32.mrb[2].mxu1 }
 0x1da   :  { %v2340_v46 = vpop.f32.mrb[2].mxu0  ;;  %v2781_v47 = vadd.f32 %v2780_v12, %v2336_v44  ;;  %v2784_v48 = vadd.f32 %v2168_v32, %v634_v41  ;;  %v2170_v49 = vpop.f32.mrb[3].mxu1 }
 0x1db   :  { %v2342_v50 = vpop.f32.mrb[3].mxu0  ;;  %v2783_v51 = vadd.f32 %v2782_v13, %v2338_v45  ;;  %v2786_v52 = vadd.f32 %v2170_v49, %v638_v42 }
 0x1dc   :  { %v2785_v53 = vadd.f32 %v2784_v48, %v2340_v46  ;;  %v2373_v56 = vmul.f32 %v2781_v47, %v2781_v47 }
 0x1dd   :  { %v2696_v54 = vpack.c.bf16 %v2783_v51, %v2781_v47  ;;  %v2787_v55 = vadd.f32 %v2786_v52, %v2342_v50  ;;  %v2374_v59 = vmul.f32 %v2783_v51, %v2783_v51 }
 0x1de   :  { %v2359_v57 = vadd.f32 %v2785_v53, %v2781_v47  ;;  %v2375_v58 = vmul.f32 %v2785_v53, %v2785_v53 }
 0x1df   :  { %2357 = vst [vmem:[%s4106_s4] sm:$0xff] %v2696_v54  ;;  %v2697_v60 = vpack.c.bf16 %v2787_v55, %v2785_v53  ;;  %v2366_v61 = vadd.f32 %v2787_v55, %v2783_v51  ;;  %v2376_v62 = vmul.f32 %v2787_v55, %v2787_v55 }
 0x1e0   :  { %v2360_v63 = vrot.slane %v2359_v57, 4  ;;  %v2377_v0 = vadd.f32 %v2375_v58, %v2373_v56 }
 0x1e1   :  { %2358 = vst [vmem:[%s4106_s4 + $0x8] sm:$0xff] %v2697_v60  ;;  %v2367_v1 = vrot.slane %v2366_v61, 4  ;;  %v2384_v2 = vadd.f32 %v2376_v62, %v2374_v59 }
 0x1e2   :  { %v2361_v4 = vadd.f32 %v2360_v63, %v2359_v57  ;;  %v2378_v5 = vrot.slane %v2377_v0, 4 }
 0x1e3   :  { %v2368_v6 = vadd.f32 %v2367_v1, %v2366_v61  ;;  %v2385_v7 = vrot.slane %v2384_v2, 4 }
 0x1e4   :  { %v2362_v8 = vrot.slane %v2361_v4, 2  ;;  %v2379_v9 = vadd.f32 %v2378_v5, %v2377_v0 }
 0x1e5   :  { %v2369_v10 = vrot.slane %v2368_v6, 2  ;;  %v2386_v11 = vadd.f32 %v2385_v7, %v2384_v2 }
 0x1e6   :  { %v2363_v14 = vadd.f32 %v2362_v8, %v2361_v4  ;;  %v2380_v15 = vrot.slane %v2379_v9, 2 }
 0x1e7   :  { %v2370_v16 = vadd.f32 %v2369_v10, %v2368_v6  ;;  %v2387_v17 = vrot.slane %v2386_v11, 2 }
 0x1e8   :  { %v2364_v18 = vrot.slane %v2363_v14, 1  ;;  %v2381_v19 = vadd.f32 %v2380_v15, %v2379_v9 }
 0x1e9   :  { %v2371_v20 = vrot.slane %v2370_v16, 1  ;;  %v2388_v21 = vadd.f32 %v2387_v17, %v2386_v11 }
 0x1ea   :  { %v2365_v22 = vadd.f32 %v2364_v18, %v2363_v14  ;;  %v2382_v23 = vrot.slane %v2381_v19, 1 }
 0x1eb   :  { %v2372_v24 = vadd.f32 %v2371_v20, %v2370_v16  ;;  %v2389_v25 = vrot.slane %v2388_v21, 1 }
 0x1ec   :  { %v2383_v27 = vadd.f32 %v2382_v23, %v2381_v19  ;;  %2391 = vst [vmem:[%s4107_s5] sm:$0xff] %v2365_v22 }
 0x1ed   :  { %v2390_v28 = vadd.f32 %v2389_v25, %v2388_v21  ;;  %2392 = vst [vmem:[%s4107_s5 + $0x8] sm:$0xff] %v2372_v24 }
 0x1ee   :  { %2393 = vst [vmem:[%s4108_s6] sm:$0xff] %v2383_v27 }
 0x1ef   :  { %2394 = vst [vmem:[%s4108_s6 + $0x8] sm:$0xff] %v2390_v28 }

// kernel: patch_discriminator_forward.8
= control target key start
LH: loop header
LB: loop body
LE: loop exit
PB: predicated region body
PF: predicated region fallthrough
CT: control target
= control target key end

     0   :  { %s2907_s17 = smov 0   ;;  %s2909_s18 = smov 0   ;;  %s3156_s0 = inlined_call_operand.vmem [shape: bf16[4096,128], index: 0, kind: input, shape index: {}]   ;;  %s3157_s1 = inlined_call_operand.vmem [shape: f32[1,128], index: 1, kind: input, shape index: {}]   ;;  %s3158_s2 = inlined_call_operand.vmem [shape: bf16[2,4096], index: 2, kind: input, shape index: {}]   ;;  %s3159_s3 = inlined_call_operand.<no memory space> [shape: bf16[], index: 3, kind: input, shape index: {}]   ;;  %s3160_s4 = inlined_call_operand.vmem [shape: f32[16,128], index: 4, kind: output, shape index: {}]  }
   0x1   :  { %v9_v0 = vstv %s3159_s3  ;;  %s2911_s19 = smov 0  }
   0x2   :  { %v2905_v1 = vunpack.i.l.bf16 %v9_v0 }
   0x3 LB: > { %s28_s3 = sadd.s32 1, %s2869_s18  ;;  %p2303_p0 = scmp.ge.s32.totalorder %s2873_s19, 1  ;;  %s2873_s19 = sphi %s2911_s19, %s19_s19   ;;  %s2869_s18 = sphi %s2909_s18, %s3162_s18   ;;  %s2865_s17 = sphi %s2907_s17, %s3161_s17  }
   0x4   : > { %p29_p1 = scmp.ge.s32.totalorder %s28_s3, 2  ;;  %p184_p2 = scmp.lt.s32.totalorder %s2873_s19, 3 }
   0x6   : > { %s3164_s3 = smov (%p29_p1, %s28_s3), 0  ;;  %p185_p3 = pnand %p2303_p0, %p184_p2 }
   0x8   : > { %188 = sbr.rel (%p185_p3) target bundleno = 430 (0x1ae), region = 32 }
   0xf   : > { %s2304_s20 = sshll.u32 %s2865_s17, 4  ;;  %s2305_s21 = sshll.u32 %s2865_s17, 8  ;;  %v270_v2 = vlaneseq  ;;  %v2476_v3 = vpack.c.bf16 %v2905_v1, %v2905_v1  ;;  %v2875_v22 = vmov 0.0  }
  0x10   : > { %p231_p4 = scmp.lt.s32.totalorder %s2304_s20, 31  ;;  %p244_p5 = scmp.lt.s32.totalorder %s2305_s21, 511 }
  0x11   : > { %v2931_v4 = vshrl.u32 %v270_v2, 7  ;;  %2477 = vst [vmem:[#allocation8 + $0x40] sm:$0xff] %v2476_v3   ;;  %2482 = vst [vmem:[#allocation8 + $0x48] sm:$0xff] %v2476_v3   ;;  %p2322_p6 = scmp.ne.s32.totalorder %s2865_s17, 0 }
  0x12   : > { %2487 = vst [vmem:[#allocation8 + $0x50] sm:$0xff] %v2476_v3   ;;  %2492 = vst [vmem:[#allocation8 + $0x58] sm:$0xff] %v2476_v3   ;;  %s3166_s20 = smov (!%p231_p4, %s2304_s20), 31  ;;  %s3168_s21 = smov (!%p244_p5, %s2305_s21), 511 }
  0x13   : > { %2497 = vst [vmem:[#allocation8 + $0x60] sm:$0xff] %v2476_v3   ;;  %2502 = vst [vmem:[#allocation8 + $0x68] sm:$0xff] %v2476_v3   ;;  %s2936_s24 = scalar_lea.vmem %s3158_s2, %s3166_s20  ;;  %s2306_s25 = sshll.u32 %s3168_s21, 2  ;;  %vm274_vm0 = vcmp.lt.s32.totalorder %v2931_v4, 2 }
  0x14   : > { %2507 = vst [vmem:[#allocation8 + $0x70] sm:$0xff] %v2476_v3   ;;  %2512 = vst [vmem:[#allocation8 + $0x78] sm:$0xff] %v2476_v3   ;;  %v262_v5 = vld [vmem:[%s2936_s24] sm:$0x1]  ;;  %v2307_v6 = vld [vmem:[%s2936_s24 + $0x1] sm:$0x1]  ;;  %s2944_s28 = scalar_lea.vmem %s3156_s0, %s2306_s25 }
  0x15   : > { %v263_v7 = vunpack.c.l.bf16 %v262_v5  ;;  %v288_v8 = vunpack.c.l.bf16 %v2307_v6  ;;  %v2308_v9 = vld [vmem:[%s2936_s24 + $0x2] sm:$0x1]  ;;  %v2309_v10 = vld [vmem:[%s2936_s24 + $0x3] sm:$0x1]  ;;  %v2310_v11 = vld [vmem:[%s2936_s24 + $0x4] sm:$0x1] }
  0x16   : > { %v314_v12 = vunpack.c.l.bf16 %v2308_v9  ;;  %v340_v13 = vunpack.c.l.bf16 %v2309_v10  ;;  %v366_v14 = vunpack.c.l.bf16 %v2310_v11  ;;  %v2311_v15 = vld [vmem:[%s2936_s24 + $0x5] sm:$0x1]  ;;  %v2312_v16 = vld [vmem:[%s2936_s24 + $0x6] sm:$0x1]  ;;  %v2313_v21 = vld [vmem:[%s2936_s24 + $0x7] sm:$0x1] }
  0x17   : > { %v275_v17 = vsel %vm274_vm0, %v263_v7, %v2905_v1  ;;  %v300_v18 = vsel %vm274_vm0, %v288_v8, %v2905_v1  ;;  %v392_v19 = vunpack.c.l.bf16 %v2311_v15  ;;  %v418_v20 = vunpack.c.l.bf16 %v2312_v16  ;;  %v2314_v27 = vld [vmem:[%s2936_s24 + $0x8] sm:$0x1]  ;;  %v2315_v28 = vld [vmem:[%s2936_s24 + $0x9] sm:$0x1]  ;;  %v2316_v29 = vld [vmem:[%s2936_s24 + $0xa] sm:$0x1] }
  0x18   : > { %v276_v23 = vpack.c.bf16 %v2875_v22, %v275_v17  ;;  %v302_v24 = vpack.c.bf16 %v2875_v22, %v300_v18  ;;  %v326_v25 = vsel %vm274_vm0, %v314_v12, %v2905_v1  ;;  %v352_v26 = vsel %vm274_vm0, %v340_v13, %v2905_v1  ;;  %v2317_v34 = vld [vmem:[%s2936_s24 + $0xb] sm:$0x1]  ;;  %v2318_v35 = vld [vmem:[%s2936_s24 + $0xc] sm:$0x1]  ;;  %v2319_v36 = vld [vmem:[%s2936_s24 + $0xd] sm:$0x1] }
  0x19   : > { %v328_v30 = vpack.c.bf16 %v2875_v22, %v326_v25  ;;  %v354_v31 = vpack.c.bf16 %v2875_v22, %v352_v26  ;;  %v378_v32 = vsel %vm274_vm0, %v366_v14, %v2905_v1  ;;  %v404_v33 = vsel %vm274_vm0, %v392_v19, %v2905_v1  ;;  %v2320_v49 = vld [vmem:[%s2936_s24 + $0xe] sm:$0x1]  ;;  %v2321_v54 = vld [vmem:[%s2936_s24 + $0xf] sm:$0x1] }
  0x1a   : > { %278 = vst [vmem:[#allocation8] sm:$0xf] %v276_v23  ;;  %304 = vst [vmem:[#allocation8 + $0x4] sm:$0xf] %v302_v24  ;;  %v380_v37 = vpack.c.bf16 %v2875_v22, %v378_v32  ;;  %v406_v38 = vpack.c.bf16 %v2875_v22, %v404_v33  ;;  %v430_v39 = vsel %vm274_vm0, %v418_v20, %v2905_v1  ;;  %v444_v40 = vunpack.c.l.bf16 %v2313_v21 }
  0x1b   : > { %330 = vst [vmem:[#allocation8 + $0x8] sm:$0xf] %v328_v30  ;;  %356 = vst [vmem:[#allocation8 + $0xc] sm:$0xf] %v354_v31  ;;  %v432_v41 = vpack.c.bf16 %v2875_v22, %v430_v39  ;;  %v470_v42 = vunpack.c.l.bf16 %v2314_v27  ;;  %v496_v43 = vunpack.c.l.bf16 %v2315_v28  ;;  %v522_v44 = vunpack.c.l.bf16 %v2316_v29 }
  0x1c   : > { %382 = vst [vmem:[#allocation8 + $0x10] sm:$0xf] %v380_v37  ;;  %408 = vst [vmem:[#allocation8 + $0x14] sm:$0xf] %v406_v38  ;;  %v456_v45 = vsel %vm274_vm0, %v444_v40, %v2905_v1  ;;  %v548_v46 = vunpack.c.l.bf16 %v2317_v34  ;;  %v574_v47 = vunpack.c.l.bf16 %v2318_v35  ;;  %v600_v48 = vunpack.c.l.bf16 %v2319_v36 }
  0x1d   : > { %434 = vst [vmem:[#allocation8 + $0x18] sm:$0xf] %v432_v41  ;;  %v458_v50 = vpack.c.bf16 %v2875_v22, %v456_v45  ;;  %v482_v51 = vsel %vm274_vm0, %v470_v42, %v2905_v1  ;;  %v508_v52 = vsel %vm274_vm0, %v496_v43, %v2905_v1  ;;  %v534_v53 = vsel %vm274_vm0, %v522_v44, %v2905_v1 }
  0x1e   : > { %v484_v55 = vpack.c.bf16 %v2875_v22, %v482_v51  ;;  %v510_v56 = vpack.c.bf16 %v2875_v22, %v508_v52  ;;  %v536_v57 = vpack.c.bf16 %v2875_v22, %v534_v53  ;;  %v560_v58 = vsel %vm274_vm0, %v548_v46, %v2905_v1 }
  0x1f   : > { %460 = vst [vmem:[#allocation8 + $0x1c] sm:$0xf] %v458_v50  ;;  %v562_v59 = vpack.c.bf16 %v2875_v22, %v560_v58  ;;  %v586_v60 = vsel %vm274_vm0, %v574_v47, %v2905_v1  ;;  %v612_v61 = vsel %vm274_vm0, %v600_v48, %v2905_v1  ;;  %v626_v62 = vunpack.c.l.bf16 %v2320_v49  ;;  %737 = sbr.rel (%p2322_p6) target bundleno = 38 (0x26), region = 36 }
  0x20   : > { %486 = vst [vmem:[#allocation8 + $0x20] sm:$0xf] %v484_v55  ;;  %512 = vst [vmem:[#allocation8 + $0x24] sm:$0xf] %v510_v56  ;;  %v588_v63 = vpack.c.bf16 %v2875_v22, %v586_v60  ;;  %v614_v0 = vpack.c.bf16 %v2875_v22, %v612_v61  ;;  %v652_v2 = vunpack.c.l.bf16 %v2321_v54  ;;  %v2876_v8 = vmov (!%p2322_p6), 0.0  }
  0x21   : > { %538 = vst [vmem:[#allocation8 + $0x28] sm:$0xf] %v536_v57  ;;  %564 = vst [vmem:[#allocation8 + $0x2c] sm:$0xf] %v562_v59  ;;  %v638_v3 = vsel %vm274_vm0, %v626_v62, %v2905_v1 }
  0x22   : > { %590 = vst [vmem:[#allocation8 + $0x30] sm:$0xf] %v588_v63  ;;  %616 = vst [vmem:[#allocation8 + $0x34] sm:$0xf] %v614_v0  ;;  %v640_v5 = vpack.c.bf16 %v2875_v22, %v638_v3  ;;  %v664_v6 = vsel %vm274_vm0, %v652_v2, %v2905_v1 }
  0x23   : > { %v666_v7 = vpack.c.bf16 %v2875_v22, %v664_v6  ;;  %738 = vst [vmem:[#allocation2] sm:$0xff] (!%p2322_p6), %v2876_v8  ;;  %739 = vst [vmem:[#allocation2 + $0x8] sm:$0xff] (!%p2322_p6), %v2876_v8 }
  0x24   : > { %642 = vst [vmem:[#allocation8 + $0x38] sm:$0xf] %v640_v5 }
  0x25   : > { %668 = vst [vmem:[#allocation8 + $0x3c] sm:$0xf] %v666_v7 }
  0x26 PF: > { %v2715_v4 = vld [vmem:[%s2944_s28 + $0x40] sm:$0xff]   ;;  %v2719_v12 = vld [vmem:[%s2944_s28 + $0x48] sm:$0xff]   ;;  %v2723_v16 = vld [vmem:[%s2944_s28 + $0x50] sm:$0xff]   ;;  %p2467_p7 = scmp.ne.s32.totalorder %s2865_s17, 1 }
  0x27   : > { %v2716_v9 = vld [vmem:[%s2944_s28 + $0xc0] sm:$0xff]   ;;  %2513 = vmatprep.subr.bf16.mxu0 %v2715_v4  ;;  %v2720_v13 = vld [vmem:[%s2944_s28 + $0xc8] sm:$0xff]   ;;  %v2724_v17 = vld [vmem:[%s2944_s28 + $0xd0] sm:$0xff]  }
  0x28   : > { %v2717_v10 = vld [vmem:[%s2944_s28] sm:$0xff]   ;;  %2535 = vmatprep.subr.bf16.mxu1 %v2716_v9  ;;  %v2721_v14 = vld [vmem:[%s2944_s28 + $0x8] sm:$0xff]   ;;  %v2725_v18 = vld [vmem:[%s2944_s28 + $0x10] sm:$0xff]  }
  0x29   : > { %v2718_v11 = vld [vmem:[%s2944_s28 + $0x80] sm:$0xff]   ;;  %2514 = vmatpush3.bf16.msra.mxu0 %v2717_v10  ;;  %v2722_v15 = vld [vmem:[%s2944_s28 + $0x88] sm:$0xff]   ;;  %v2726_v19 = vld [vmem:[%s2944_s28 + $0x90] sm:$0xff]  }
  0x2a   : > { %2536 = vmatpush3.bf16.msra.mxu1 %v2718_v11  ;;  %2515 = vmatprep.subr.bf16.mxu0 %v2719_v12  ;;  %v2727_v20 = vld [vmem:[%s2944_s28 + $0x58] sm:$0xff]   ;;  %v2731_v24 = vld [vmem:[%s2944_s28 + $0x60] sm:$0xff]   ;;  %v2735_v28 = vld [vmem:[%s2944_s28 + $0x68] sm:$0xff]  }
  0x2b   : > { %2537 = vmatprep.subr.bf16.mxu1 %v2720_v13  ;;  %v2728_v21 = vld [vmem:[%s2944_s28 + $0xd8] sm:$0xff]   ;;  %v2732_v25 = vld [vmem:[%s2944_s28 + $0xe0] sm:$0xff]   ;;  %v2736_v29 = vld [vmem:[%s2944_s28 + $0xe8] sm:$0xff]  }
  0x2c   : > { %v2729_v22 = vld [vmem:[%s2944_s28 + $0x18] sm:$0xff]   ;;  %v2733_v26 = vld [vmem:[%s2944_s28 + $0x20] sm:$0xff]   ;;  %v2737_v30 = vld [vmem:[%s2944_s28 + $0x28] sm:$0xff]  }
  0x2d   : > { %2516 = vmatpush3.bf16.msra.mxu0 %v2721_v14  ;;  %v2730_v23 = vld [vmem:[%s2944_s28 + $0x98] sm:$0xff]   ;;  %v2734_v27 = vld [vmem:[%s2944_s28 + $0xa0] sm:$0xff]   ;;  %v2738_v31 = vld [vmem:[%s2944_s28 + $0xa8] sm:$0xff]  }
  0x2e   : > { %2538 = vmatpush3.bf16.msra.mxu1 %v2722_v15  ;;  %2517 = vmatprep.subr.bf16.mxu0 %v2723_v16  ;;  %v2739_v32 = vld [vmem:[%s2944_s28 + $0x70] sm:$0xff]   ;;  %v2743_v36 = vld [vmem:[%s2944_s28 + $0x78] sm:$0xff]   ;;  %v2747_v48 = vld [vmem:[%s2944_s28 + $0x140] sm:$0xff]  }
  0x2f   : > { %2539 = vmatprep.subr.bf16.mxu1 %v2724_v17  ;;  %v2740_v33 = vld [vmem:[%s2944_s28 + $0xf0] sm:$0xff]   ;;  %v2744_v37 = vld [vmem:[%s2944_s28 + $0xf8] sm:$0xff]   ;;  %v2748_v49 = vld [vmem:[%s2944_s28 + $0x1c0] sm:$0xff]  }
  0x30   : > { %v2741_v34 = vld [vmem:[%s2944_s28 + $0x30] sm:$0xff]   ;;  %v2745_v38 = vld [vmem:[%s2944_s28 + $0x38] sm:$0xff]   ;;  %v2749_v50 = vld [vmem:[%s2944_s28 + $0x100] sm:$0xff]  }
  0x31   : > { %2518 = vmatpush3.bf16.msra.mxu0 %v2725_v18  ;;  %v2742_v35 = vld [vmem:[%s2944_s28 + $0xb0] sm:$0xff]   ;;  %v2746_v39 = vld [vmem:[%s2944_s28 + $0xb8] sm:$0xff]   ;;  %v2750_v51 = vld [vmem:[%s2944_s28 + $0x180] sm:$0xff]  }
  0x32   : > { %2540 = vmatpush3.bf16.msra.mxu1 %v2726_v19  ;;  %2519 = vmatprep.subr.bf16.mxu0 %v2727_v20  ;;  %v742_v40 = vld [vmem:[#allocation8] sm:$0xff]  ;;  %v743_v42 = vld [vmem:[#allocation8 + $0x8] sm:$0xff]  ;;  %v2751_v52 = vld [vmem:[%s2944_s28 + $0x148] sm:$0xff]  }
  0x33   : > { %2541 = vmatprep.subr.bf16.mxu1 %v2728_v21  ;;  %v750_v41 = vld [vmem:[#allocation8 + $0x40] sm:$0xff]  ;;  %v751_v45 = vld [vmem:[#allocation8 + $0x48] sm:$0xff]  ;;  %v2752_v53 = vld [vmem:[%s2944_s28 + $0x1c8] sm:$0xff]  }
  0x34   : > { %v2323_v43 = vcombine.low %v742_v40, %v750_v41  ;;  %v2324_v44 = vcombine.high %v742_v40, %v750_v41  ;;  %v2325_v46 = vcombine.low %v743_v42, %v751_v45  ;;  %v2326_v47 = vcombine.high %v743_v42, %v751_v45  ;;  %v2753_v54 = vld [vmem:[%s2944_s28 + $0x108] sm:$0xff]   ;;  %v2755_v56 = vld [vmem:[%s2944_s28 + $0x150] sm:$0xff]   ;;  %v2759_v60 = vld [vmem:[%s2944_s28 + $0x158] sm:$0xff]  }
  0x35   : > { %2520 = vmatpush3.bf16.msra.mxu0 %v2729_v22  ;;  %v2754_v55 = vld [vmem:[%s2944_s28 + $0x188] sm:$0xff]   ;;  %v2756_v57 = vld [vmem:[%s2944_s28 + $0x1d0] sm:$0xff]   ;;  %v2760_v61 = vld [vmem:[%s2944_s28 + $0x1d8] sm:$0xff]  }
  0x36   : > { %2542 = vmatpush3.bf16.msra.mxu1 %v2730_v23  ;;  %2521 = vmatprep.subr.bf16.mxu0 %v2731_v24  ;;  %v2757_v58 = vld [vmem:[%s2944_s28 + $0x110] sm:$0xff]   ;;  %v2761_v62 = vld [vmem:[%s2944_s28 + $0x118] sm:$0xff]   ;;  %v2763_v0 = vld [vmem:[%s2944_s28 + $0x160] sm:$0xff]  }
  0x37   : > { %2543 = vmatprep.subr.bf16.mxu1 %v2732_v25  ;;  %1894 = vmatprep.mubr.bf16.mxu0 %v2324_v44  ;;  %v2758_v59 = vld [vmem:[%s2944_s28 + $0x190] sm:$0xff]   ;;  %v2762_v63 = vld [vmem:[%s2944_s28 + $0x198] sm:$0xff]   ;;  %v2764_v2 = vld [vmem:[%s2944_s28 + $0x1e0] sm:$0xff]  }
  0x38   : > { %1935 = vmatprep.mubr.bf16.mxu1 %v2326_v47  ;;  %v2765_v3 = vld [vmem:[%s2944_s28 + $0x120] sm:$0xff]   ;;  %v2767_v6 = vld [vmem:[%s2944_s28 + $0x168] sm:$0xff]   ;;  %v2771_v9 = vld [vmem:[%s2944_s28 + $0x170] sm:$0xff]  }
  0x39   : > { %2522 = vmatpush3.bf16.msra.mxu0 %v2733_v26  ;;  %v2766_v5 = vld [vmem:[%s2944_s28 + $0x1a0] sm:$0xff]   ;;  %v2768_v7 = vld [vmem:[%s2944_s28 + $0x1e8] sm:$0xff]   ;;  %v2772_v10 = vld [vmem:[%s2944_s28 + $0x1f0] sm:$0xff]  }
  0x3a   : > { %2544 = vmatpush3.bf16.msra.mxu1 %v2734_v27  ;;  %2523 = vmatprep.subr.bf16.mxu0 %v2735_v28  ;;  %v2769_v8 = vld [vmem:[%s2944_s28 + $0x128] sm:$0xff]   ;;  %v2773_v11 = vld [vmem:[%s2944_s28 + $0x130] sm:$0xff]   ;;  %v2775_v13 = vld [vmem:[%s2944_s28 + $0x178] sm:$0xff]  }
  0x3b   : > { %2545 = vmatprep.subr.bf16.mxu1 %v2736_v29  ;;  %v2770_v4 = vld [vmem:[%s2944_s28 + $0x1a8] sm:$0xff]   ;;  %v2774_v12 = vld [vmem:[%s2944_s28 + $0x1b0] sm:$0xff]   ;;  %v2776_v14 = vld [vmem:[%s2944_s28 + $0x1f8] sm:$0xff]  }
  0x3c   : > { %v2777_v15 = vld [vmem:[%s2944_s28 + $0x138] sm:$0xff]   ;;  %v744_v17 = vld [vmem:[#allocation8 + $0x10] sm:$0xff]  ;;  %v745_v21 = vld [vmem:[#allocation8 + $0x18] sm:$0xff] }
  0x3d   : > { %2524 = vmatpush3.bf16.msra.mxu0 %v2737_v30  ;;  %v2778_v16 = vld [vmem:[%s2944_s28 + $0x1b8] sm:$0xff]   ;;  %v752_v18 = vld [vmem:[#allocation8 + $0x50] sm:$0xff]  ;;  %v753_v22 = vld [vmem:[#allocation8 + $0x58] sm:$0xff] }
  0x3e   : > { %2546 = vmatpush3.bf16.msra.mxu1 %v2738_v31  ;;  %2525 = vmatprep.subr.bf16.mxu0 %v2739_v32  ;;  %v2327_v19 = vcombine.low %v744_v17, %v752_v18  ;;  %v2328_v20 = vcombine.high %v744_v17, %v752_v18  ;;  %v2329_v23 = vcombine.low %v745_v21, %v753_v22  ;;  %v2779_v25 = vld [vmem:[%s2944_s28 + $0x240] sm:$0xff]   ;;  %v2783_v29 = vld [vmem:[%s2944_s28 + $0x248] sm:$0xff]   ;;  %v2794_v40 = vld [vmem:[%s2944_s28 + $0x298] sm:$0xff]  }
  0x3f   : > { %2547 = vmatprep.subr.bf16.mxu1 %v2740_v33  ;;  %v2330_v24 = vcombine.high %v745_v21, %v753_v22  ;;  %v2780_v26 = vld [vmem:[%s2944_s28 + $0x2c0] sm:$0xff]   ;;  %v2784_v30 = vld [vmem:[%s2944_s28 + $0x2c8] sm:$0xff]   ;;  %v2787_v33 = vld [vmem:[%s2944_s28 + $0x250] sm:$0xff]  }
  0x40   : > { %v2781_v27 = vld [vmem:[%s2944_s28 + $0x200] sm:$0xff]   ;;  %v2785_v31 = vld [vmem:[%s2944_s28 + $0x208] sm:$0xff]   ;;  %v2826_v17 = vld [vmem:[%s2944_s28 + $0x398] sm:$0xff]  }
  0x41   : > { %2526 = vmatpush3.bf16.msra.mxu0 %v2741_v34  ;;  %v2782_v28 = vld [vmem:[%s2944_s28 + $0x280] sm:$0xff]   ;;  %v2786_v32 = vld [vmem:[%s2944_s28 + $0x288] sm:$0xff]   ;;  %v2788_v34 = vld [vmem:[%s2944_s28 + $0x2d0] sm:$0xff]  }
  0x42   : > { %2548 = vmatpush3.bf16.msra.mxu1 %v2742_v35  ;;  %2527 = vmatprep.subr.bf16.mxu0 %v2743_v36  ;;  %v2789_v35 = vld [vmem:[%s2944_s28 + $0x210] sm:$0xff]   ;;  %v2795_v41 = vld [vmem:[%s2944_s28 + $0x260] sm:$0xff]   ;;  %v2799_v45 = vld [vmem:[%s2944_s28 + $0x268] sm:$0xff]  }
  0x43   : > { %2549 = vmatprep.subr.bf16.mxu1 %v2744_v37  ;;  %v2790_v36 = vld [vmem:[%s2944_s28 + $0x290] sm:$0xff]   ;;  %v2791_v37 = vld [vmem:[%s2944_s28 + $0x258] sm:$0xff]   ;;  %v2796_v42 = vld [vmem:[%s2944_s28 + $0x2e0] sm:$0xff]  }
  0x44   : > { %v2798_v44 = vld [vmem:[%s2944_s28 + $0x2a0] sm:$0xff]   ;;  %v2801_v47 = vld [vmem:[%s2944_s28 + $0x228] sm:$0xff]  }
  0x45   : > { %2528 = vmatpush3.bf16.msra.mxu0 %v2745_v38  ;;  %v2792_v38 = vld [vmem:[%s2944_s28 + $0x2d8] sm:$0xff]   ;;  %v2827_v18 = vld [vmem:[%s2944_s28 + $0x360] sm:$0xff]   ;;  %v2831_v22 = vld [vmem:[%s2944_s28 + $0x368] sm:$0xff]  }
  0x46   : > { %2550 = vmatpush3.bf16.msra.mxu1 %v2746_v39  ;;  %2557 = vmatprep.subr.bf16.mxu0 %v2747_v48  ;;  %v2793_v39 = vld [vmem:[%s2944_s28 + $0x218] sm:$0xff]   ;;  %v2802_v48 = vld [vmem:[%s2944_s28 + $0x2a8] sm:$0xff]   ;;  %v2830_v21 = vld [vmem:[%s2944_s28 + $0x3a0] sm:$0xff]  }
  0x47   : > { %2579 = vmatprep.subr.bf16.mxu1 %v2748_v49  ;;  %v2803_v49 = vld [vmem:[%s2944_s28 + $0x270] sm:$0xff]  }
  0x48   : > { %1895 = vmatmul.mubr.bf16.vlgmr.msra.gmra.mrb[0].mxu0 %v2323_v43  ;;  %v2797_v43 = vld [vmem:[%s2944_s28 + $0x220] sm:$0xff]  }
  0x49   : > { %1936 = vmatmul.mubr.bf16.vlgmr.msra.gmra.mrb[0].mxu1 %v2325_v46  ;;  %2558 = vmatpush3.bf16.msra.mxu0 %v2749_v50  ;;  %v2800_v46 = vld [vmem:[%s2944_s28 + $0x2e8] sm:$0xff]   ;;  %v2804_v50 = vld [vmem:[%s2944_s28 + $0x2f0] sm:$0xff]  }
  0x4a   : > { %2580 = vmatpush3.bf16.msra.mxu1 %v2750_v51  ;;  %2559 = vmatprep.subr.bf16.mxu0 %v2751_v52  ;;  %v2805_v51 = vld [vmem:[%s2944_s28 + $0x230] sm:$0xff]  }
  0x4b   : > { %2581 = vmatprep.subr.bf16.mxu1 %v2752_v53  ;;  %1976 = vmatprep.mubr.bf16.mxu0 %v2328_v20  ;;  %v2806_v52 = vld [vmem:[%s2944_s28 + $0x2b0] sm:$0xff]   ;;  %v2807_v53 = vld [vmem:[%s2944_s28 + $0x278] sm:$0xff]   ;;  %v2829_v20 = vld [vmem:[%s2944_s28 + $0x320] sm:$0xff]  }
  0x4c   : > { %2017 = vmatprep.mubr.bf16.mxu1 %v2330_v24  ;;  %v2833_v24 = vld [vmem:[%s2944_s28 + $0x328] sm:$0xff]  }
  0x4d   : > { %2560 = vmatpush3.bf16.msra.mxu0 %v2753_v54  ;;  %v2808_v54 = vld [vmem:[%s2944_s28 + $0x2f8] sm:$0xff]  }
  0x4e   : > { %2582 = vmatpush3.bf16.msra.mxu1 %v2754_v55  ;;  %2561 = vmatprep.subr.bf16.mxu0 %v2755_v56  ;;  %v2809_v55 = vld [vmem:[%s2944_s28 + $0x238] sm:$0xff]  }
  0x4f   : > { %2583 = vmatprep.subr.bf16.mxu1 %v2756_v57  ;;  %v2810_v56 = vld [vmem:[%s2944_s28 + $0x2b8] sm:$0xff]   ;;  %v746_v57 = vld [vmem:[#allocation8 + $0x20] sm:$0xff] }
  0x51   : > { %2562 = vmatpush3.bf16.msra.mxu0 %v2757_v58  ;;  %v754_v58 = vld [vmem:[#allocation8 + $0x60] sm:$0xff] }
  0x52   : > { %2584 = vmatpush3.bf16.msra.mxu1 %v2758_v59  ;;  %2563 = vmatprep.subr.bf16.mxu0 %v2759_v60  ;;  %v747_v59 = vld [vmem:[#allocation8 + $0x28] sm:$0xff] }
  0x53   : > { %2585 = vmatprep.subr.bf16.mxu1 %v2760_v61  ;;  %v755_v60 = vld [vmem:[#allocation8 + $0x68] sm:$0xff]  ;;  %v2331_v61 = vcombine.low %v746_v57, %v754_v58 }
  0x55   : > { %2564 = vmatpush3.bf16.msra.mxu0 %v2761_v62  ;;  %v2332_v62 = vcombine.high %v746_v57, %v754_v58 }
  0x56   : > { %2586 = vmatpush3.bf16.msra.mxu1 %v2762_v63  ;;  %2565 = vmatprep.subr.bf16.mxu0 %v2763_v0  ;;  %v2333_v63 = vcombine.low %v747_v59, %v755_v60  ;;  %v2334_v0 = vcombine.high %v747_v59, %v755_v60 }
  0x57   : > { %2587 = vmatprep.subr.bf16.mxu1 %v2764_v2  ;;  %v2811_v2 = vld [vmem:[%s2944_s28 + $0x340] sm:$0xff]  }
  0x59   : > { %2566 = vmatpush3.bf16.msra.mxu0 %v2765_v3  ;;  %v2812_v3 = vld [vmem:[%s2944_s28 + $0x3c0] sm:$0xff]  }
  0x5a   : > { %2588 = vmatpush3.bf16.msra.mxu1 %v2766_v5  ;;  %2567 = vmatprep.subr.bf16.mxu0 %v2767_v6  ;;  %v2813_v5 = vld [vmem:[%s2944_s28 + $0x300] sm:$0xff]  }
  0x5b   : > { %2589 = vmatprep.subr.bf16.mxu1 %v2768_v7  ;;  %v2814_v6 = vld [vmem:[%s2944_s28 + $0x380] sm:$0xff]   ;;  %v2815_v7 = vld [vmem:[%s2944_s28 + $0x348] sm:$0xff]  }
  0x5d   : > { %2568 = vmatpush3.bf16.msra.mxu0 %v2769_v8  ;;  %v2816_v8 = vld [vmem:[%s2944_s28 + $0x3c8] sm:$0xff]  }
  0x5e   : > { %2590 = vmatpush3.bf16.msra.mxu1 %v2770_v4  ;;  %2569 = vmatprep.subr.bf16.mxu0 %v2771_v9  ;;  %v2817_v4 = vld [vmem:[%s2944_s28 + $0x308] sm:$0xff]  }
  0x5f   : > { %2591 = vmatprep.subr.bf16.mxu1 %v2772_v10  ;;  %v2818_v9 = vld [vmem:[%s2944_s28 + $0x388] sm:$0xff]   ;;  %v2819_v10 = vld [vmem:[%s2944_s28 + $0x350] sm:$0xff]  }
  0x61   : > { %2570 = vmatpush3.bf16.msra.mxu0 %v2773_v11  ;;  %v2820_v11 = vld [vmem:[%s2944_s28 + $0x3d0] sm:$0xff]  }
  0x62   : > { %2592 = vmatpush3.bf16.msra.mxu1 %v2774_v12  ;;  %2571 = vmatprep.subr.bf16.mxu0 %v2775_v13  ;;  %v2821_v12 = vld [vmem:[%s2944_s28 + $0x310] sm:$0xff]  }
  0x63   : > { %2593 = vmatprep.subr.bf16.mxu1 %v2776_v14  ;;  %v2822_v13 = vld [vmem:[%s2944_s28 + $0x390] sm:$0xff]   ;;  %v2823_v14 = vld [vmem:[%s2944_s28 + $0x358] sm:$0xff]  }
  0x65   : > { %2572 = vmatpush3.bf16.msra.mxu0 %v2777_v15  ;;  %v2824_v15 = vld [vmem:[%s2944_s28 + $0x3d8] sm:$0xff]  }
  0x66   : > { %2594 = vmatpush3.bf16.msra.mxu1 %v2778_v16  ;;  %2601 = vmatprep.subr.bf16.mxu0 %v2779_v25  ;;  %v2825_v16 = vld [vmem:[%s2944_s28 + $0x318] sm:$0xff]   ;;  %v2834_v25 = vld [vmem:[%s2944_s28 + $0x3a8] sm:$0xff]  }
  0x67   : > { %2623 = vmatprep.subr.bf16.mxu1 %v2780_v26  ;;  %v2835_v26 = vld [vmem:[%s2944_s28 + $0x370] sm:$0xff]  }
  0x68   : > { %1977 = vmatmul.mubr.bf16.vlgmr.msra.gmra.mrb[4].mxu0 %v2327_v19  ;;  %v2828_v19 = vld [vmem:[%s2944_s28 + $0x3e0] sm:$0xff]  }
  0x69   : > { %2018 = vmatmul.mubr.bf16.vlgmr.msra.gmra.mrb[4].mxu1 %v2329_v23  ;;  %2602 = vmatpush3.bf16.msra.mxu0 %v2781_v27  ;;  %v2832_v23 = vld [vmem:[%s2944_s28 + $0x3e8] sm:$0xff]   ;;  %v2836_v27 = vld [vmem:[%s2944_s28 + $0x3f0] sm:$0xff]  }
  0x6a   : > { %2624 = vmatpush3.bf16.msra.mxu1 %v2782_v28  ;;  %2603 = vmatprep.subr.bf16.mxu0 %v2783_v29  ;;  %v2837_v28 = vld [vmem:[%s2944_s28 + $0x330] sm:$0xff]  }
  0x6b   : > { %2625 = vmatprep.subr.bf16.mxu1 %v2784_v30  ;;  %2058 = vmatprep.mubr.bf16.mxu0 %v2332_v62  ;;  %v2838_v29 = vld [vmem:[%s2944_s28 + $0x3b0] sm:$0xff]   ;;  %v2839_v30 = vld [vmem:[%s2944_s28 + $0x378] sm:$0xff]  }
  0x6c   : > { %2099 = vmatprep.mubr.bf16.mxu1 %v2334_v0 }
  0x6d   : > { %2604 = vmatpush3.bf16.msra.mxu0 %v2785_v31  ;;  %v2840_v31 = vld [vmem:[%s2944_s28 + $0x3f8] sm:$0xff]  }
  0x6e   : > { %2626 = vmatpush3.bf16.msra.mxu1 %v2786_v32  ;;  %2605 = vmatprep.subr.bf16.mxu0 %v2787_v33  ;;  %v2841_v32 = vld [vmem:[%s2944_s28 + $0x338] sm:$0xff]  }
  0x6f   : > { %2627 = vmatprep.subr.bf16.mxu1 %v2788_v34  ;;  %v2842_v33 = vld [vmem:[%s2944_s28 + $0x3b8] sm:$0xff]   ;;  %v748_v34 = vld [vmem:[#allocation8 + $0x30] sm:$0xff] }
  0x71   : > { %2606 = vmatpush3.bf16.msra.mxu0 %v2789_v35  ;;  %v756_v35 = vld [vmem:[#allocation8 + $0x70] sm:$0xff] }
  0x72   : > { %2628 = vmatpush3.bf16.msra.mxu1 %v2790_v36  ;;  %2607 = vmatprep.subr.bf16.mxu0 %v2791_v37  ;;  %v749_v36 = vld [vmem:[#allocation8 + $0x38] sm:$0xff]  ;;  %v2335_v37 = vcombine.low %v748_v34, %v756_v35 }
  0x73   : > { %2629 = vmatprep.subr.bf16.mxu1 %v2792_v38  ;;  %v2336_v38 = vcombine.high %v748_v34, %v756_v35 }
  0x75   : > { %2608 = vmatpush3.bf16.msra.mxu0 %v2793_v39  ;;  %v757_v39 = vld [vmem:[#allocation8 + $0x78] sm:$0xff] }
  0x76   : > { %2630 = vmatpush3.bf16.msra.mxu1 %v2794_v40  ;;  %2609 = vmatprep.subr.bf16.mxu0 %v2795_v41  ;;  %v2337_v40 = vcombine.low %v749_v36, %v757_v39  ;;  %v2338_v41 = vcombine.high %v749_v36, %v757_v39 }
  0x77   : > { %2631 = vmatprep.subr.bf16.mxu1 %v2796_v42 }
  0x79   : > { %2610 = vmatpush3.bf16.msra.mxu0 %v2797_v43 }
  0x7a   : > { %2632 = vmatpush3.bf16.msra.mxu1 %v2798_v44  ;;  %2611 = vmatprep.subr.bf16.mxu0 %v2799_v45 }
  0x7b   : > { %2633 = vmatprep.subr.bf16.mxu1 %v2800_v46 }
  0x7d   : > { %2612 = vmatpush3.bf16.msra.mxu0 %v2801_v47 }
  0x7e   : > { %2634 = vmatpush3.bf16.msra.mxu1 %v2802_v48  ;;  %2613 = vmatprep.subr.bf16.mxu0 %v2803_v49 }
  0x7f   : > { %2635 = vmatprep.subr.bf16.mxu1 %v2804_v50 }
  0x81   : > { %2614 = vmatpush3.bf16.msra.mxu0 %v2805_v51 }
  0x82   : > { %2636 = vmatpush3.bf16.msra.mxu1 %v2806_v52  ;;  %2615 = vmatprep.subr.bf16.mxu0 %v2807_v53 }
  0x83   : > { %2637 = vmatprep.subr.bf16.mxu1 %v2808_v54 }
  0x85   : > { %2616 = vmatpush3.bf16.msra.mxu0 %v2809_v55 }
  0x86   : > { %2638 = vmatpush3.bf16.msra.mxu1 %v2810_v56  ;;  %2645 = vmatprep.subr.bf16.mxu0 %v2811_v2 }
  0x87   : > { %2667 = vmatprep.subr.bf16.mxu1 %v2812_v3 }
  0x88   : > { %2059 = vmatmul.mubr.bf16.vlgmr.msra.gmra.mrb[8].mxu0 %v2331_v61 }
  0x89   : > { %2100 = vmatmul.mubr.bf16.vlgmr.msra.gmra.mrb[8].mxu1 %v2333_v63  ;;  %2646 = vmatpush3.bf16.msra.mxu0 %v2813_v5 }
  0x8a   : > { %2668 = vmatpush3.bf16.msra.mxu1 %v2814_v6  ;;  %2647 = vmatprep.subr.bf16.mxu0 %v2815_v7 }
  0x8b   : > { %2669 = vmatprep.subr.bf16.mxu1 %v2816_v8  ;;  %2140 = vmatprep.mubr.bf16.mxu0 %v2336_v38 }
  0x8c   : > { %2181 = vmatprep.mubr.bf16.mxu1 %v2338_v41  ;;  %v741_v41 = vld [vmem:[#allocation2 + $0x8] sm:$0xff] }
  0x8d   : > { %2648 = vmatpush3.bf16.msra.mxu0 %v2817_v4 }
  0x8e   : > { %2670 = vmatpush3.bf16.msra.mxu1 %v2818_v9  ;;  %2649 = vmatprep.subr.bf16.mxu0 %v2819_v10 }
  0x8f   : > { %2671 = vmatprep.subr.bf16.mxu1 %v2820_v11 }
  0x91   : > { %2650 = vmatpush3.bf16.msra.mxu0 %v2821_v12 }
  0x92   : > { %2672 = vmatpush3.bf16.msra.mxu1 %v2822_v13  ;;  %2651 = vmatprep.subr.bf16.mxu0 %v2823_v14 }
  0x93   : > { %2673 = vmatprep.subr.bf16.mxu1 %v2824_v15 }
  0x95   : > { %2652 = vmatpush3.bf16.msra.mxu0 %v2825_v16 }
  0x96   : > { %2674 = vmatpush3.bf16.msra.mxu1 %v2826_v17  ;;  %2653 = vmatprep.subr.bf16.mxu0 %v2827_v18 }
  0x97   : > { %2675 = vmatprep.subr.bf16.mxu1 %v2828_v19 }
  0x99   : > { %2654 = vmatpush3.bf16.msra.mxu0 %v2829_v20 }
  0x9a   : > { %2676 = vmatpush3.bf16.msra.mxu1 %v2830_v21  ;;  %2655 = vmatprep.subr.bf16.mxu0 %v2831_v22 }
  0x9b   : > { %2677 = vmatprep.subr.bf16.mxu1 %v2832_v23 }
  0x9d   : > { %2656 = vmatpush3.bf16.msra.mxu0 %v2833_v24 }
  0x9e   : > { %2678 = vmatpush3.bf16.msra.mxu1 %v2834_v25  ;;  %2657 = vmatprep.subr.bf16.mxu0 %v2835_v26 }
  0x9f   : > { %2679 = vmatprep.subr.bf16.mxu1 %v2836_v27 }
  0xa1   : > { %2658 = vmatpush3.bf16.msra.mxu0 %v2837_v28 }
  0xa2   : > { %2680 = vmatpush3.bf16.msra.mxu1 %v2838_v29  ;;  %2659 = vmatprep.subr.bf16.mxu0 %v2839_v30 }
  0xa3   : > { %2681 = vmatprep.subr.bf16.mxu1 %v2840_v31 }
  0xa5   : > { %2660 = vmatpush3.bf16.msra.mxu0 %v2841_v32 }
  0xa6   : > { %2682 = vmatpush3.bf16.msra.mxu1 %v2842_v33 }
  0xa8   : > { %2141 = vmatmul.mubr.bf16.vlgmr.msra.gmra.mrb[12].mxu0 %v2335_v37  ;;  %v740_v37 = vld [vmem:[#allocation2] sm:$0xff] }
  0xa9   : > { %2182 = vmatmul.mubr.bf16.vlgmr.msra.gmra.mrb[12].mxu1 %v2337_v40 }
 0x11b   : > { %v2529_v42 = vpop.f32.mrb[0].mxu0 }
 0x11c   : > { %v2551_v43 = vpop.f32.mrb[0].mxu1  ;;  %v2530_v44 = vpop.f32.mrb[1].mxu0 }
 0x11d   : > { %v2531_v45 = vadd.f32 %v2530_v44, %v2529_v42  ;;  %v2552_v46 = vpop.f32.mrb[1].mxu1  ;;  %v2532_v47 = vpop.f32.mrb[2].mxu0 }
 0x11e   : > { %v2553_v48 = vadd.f32 %v2552_v46, %v2551_v43  ;;  %v2554_v49 = vpop.f32.mrb[2].mxu1  ;;  %v2533_v50 = vpop.f32.mrb[3].mxu0 }
 0x11f   : > { %v2534_v51 = vadd.f32 %v2533_v50, %v2532_v47  ;;  %v2555_v52 = vpop.f32.mrb[3].mxu1  ;;  %v2468_v47 = vld [vmem:[%s3157_s1] ss:$0 sm:$0xff] (!%p2467_p7) }
 0x120   : > { %v1938_v53 = vadd.f32 %v2553_v48, %v2531_v45  ;;  %v2556_v54 = vadd.f32 %v2555_v52, %v2554_v49 }
 0x122   : > { %v1941_v55 = vadd.f32 %v2556_v54, %v2534_v51 }
 0x13b   : > { %v2573_v56 = vpop.f32.mrb[4].mxu0 }
 0x13c   : > { %v2595_v57 = vpop.f32.mrb[4].mxu1  ;;  %v2574_v58 = vpop.f32.mrb[5].mxu0 }
 0x13d   : > { %v2575_v59 = vadd.f32 %v2574_v58, %v2573_v56  ;;  %v2596_v60 = vpop.f32.mrb[5].mxu1  ;;  %v2576_v61 = vpop.f32.mrb[6].mxu0 }
 0x13e   : > { %v2597_v62 = vadd.f32 %v2596_v60, %v2595_v57  ;;  %v2598_v63 = vpop.f32.mrb[6].mxu1  ;;  %v2577_v0 = vpop.f32.mrb[7].mxu0 }
 0x13f   : > { %v1979_v2 = vadd.f32 %v2575_v59, %v1938_v53  ;;  %v2578_v3 = vadd.f32 %v2577_v0, %v2576_v61  ;;  %v2599_v5 = vpop.f32.mrb[7].mxu1 }
 0x140   : > { %v2600_v6 = vadd.f32 %v2599_v5, %v2598_v63 }
 0x141   : > { %v2020_v7 = vadd.f32 %v2597_v62, %v1979_v2  ;;  %v1982_v8 = vadd.f32 %v2578_v3, %v1941_v55 }
 0x143   : > { %v2023_v4 = vadd.f32 %v2600_v6, %v1982_v8 }
 0x15b   : > { %v2617_v9 = vpop.f32.mrb[8].mxu0 }
 0x15c   : > { %v2639_v10 = vpop.f32.mrb[8].mxu1  ;;  %v2618_v11 = vpop.f32.mrb[9].mxu0 }
 0x15d   : > { %v2640_v12 = vpop.f32.mrb[9].mxu1  ;;  %v2619_v13 = vadd.f32 %v2618_v11, %v2617_v9  ;;  %v2620_v15 = vpop.f32.mrb[10].mxu0 }
 0x15e   : > { %v2641_v14 = vadd.f32 %v2640_v12, %v2639_v10  ;;  %v2642_v16 = vpop.f32.mrb[10].mxu1  ;;  %v2621_v17 = vpop.f32.mrb[11].mxu0 }
 0x15f   : > { %v2643_v18 = vpop.f32.mrb[11].mxu1  ;;  %v2061_v19 = vadd.f32 %v2619_v13, %v2020_v7  ;;  %v2622_v20 = vadd.f32 %v2621_v17, %v2620_v15 }
 0x160   : > { %v2644_v21 = vadd.f32 %v2643_v18, %v2642_v16 }
 0x161   : > { %v2102_v22 = vadd.f32 %v2641_v14, %v2061_v19  ;;  %v2064_v23 = vadd.f32 %v2622_v20, %v2023_v4 }
 0x163   : > { %v2105_v24 = vadd.f32 %v2644_v21, %v2064_v23 }
 0x17b   : > { %v2661_v25 = vpop.f32.mrb[12].mxu0 }
 0x17c   : > { %v2683_v26 = vpop.f32.mrb[12].mxu1  ;;  %v2662_v27 = vpop.f32.mrb[13].mxu0 }
 0x17d   : > { %v2663_v28 = vadd.f32 %v2662_v27, %v2661_v25  ;;  %v2684_v29 = vpop.f32.mrb[13].mxu1  ;;  %v2664_v30 = vpop.f32.mrb[14].mxu0 }
 0x17e   : > { %v2685_v31 = vadd.f32 %v2684_v29, %v2683_v26  ;;  %v2686_v32 = vpop.f32.mrb[14].mxu1  ;;  %v2665_v33 = vpop.f32.mrb[15].mxu0 }
 0x17f   : > { %v2143_v34 = vadd.f32 %v2663_v28, %v2102_v22  ;;  %v2666_v35 = vadd.f32 %v2665_v33, %v2664_v30  ;;  %v2687_v36 = vpop.f32.mrb[15].mxu1 }
 0x180   : > { %v2688_v38 = vadd.f32 %v2687_v36, %v2686_v32 }
 0x181   : > { %v2184_v39 = vadd.f32 %v2685_v31, %v2143_v34  ;;  %v2146_v40 = vadd.f32 %v2666_v35, %v2105_v24  ;;  %2197 = sbr.rel (%p2467_p7) target bundleno = 430 (0x1ae), region = 40 }
 0x183   : > { %v2190_v42 = vadd.f32 %v2184_v39, %v740_v37  ;;  %v2187_v43 = vadd.f32 %v2688_v38, %v2146_v40 }
 0x185   : > { %2192 = vst [vmem:[#allocation2] sm:$0xff] %v2190_v42  ;;  %v2191_v44 = vadd.f32 %v2187_v43, %v741_v41 }
 0x187   : > { %2193 = vst [vmem:[#allocation2 + $0x8] sm:$0xff] %v2191_v44 }
 0x18c   : > { %v2198_v45 = vld [vmem:[#allocation2] sm:$0xff] }
 0x18d   : > { %v2207_v48 = vadd.f32 %v2468_v47, %v2198_v45 }
 0x18e   : > { %v2199_v46 = vld [vmem:[#allocation2 + $0x8] sm:$0xff] }
 0x18f   : > { %v2208_v49 = vadd.f32 %v2468_v47, %v2199_v46  ;;  %v2209_v50 = vsub.f32 0.0, %v2207_v48 }
 0x191   : > { %v2210_v51 = vsub.f32 0.0, %v2208_v49  ;;  %v2211_v52 = vmul.f32 1.442695, %v2209_v50 }
 0x193   : > { %v2213_v53 = vmul.f32 1.442695, %v2210_v51  ;;  %2843 = vpow2.f32 %v2211_v52 }
 0x195   : > { %2845 = vpow2.f32 %v2213_v53 }
 0x19d   : > { %v2844_v54 = vpop.eup %2843 }
 0x19e   : > { %v2215_v56 = vadd.f32 1.0, %v2844_v54 }
 0x19f   : > { %v2846_v55 = vpop.eup %2845 }
 0x1a0   : > { %v2216_v57 = vadd.f32 1.0, %v2846_v55  ;;  %2847 = vrcp.f32 %v2215_v56 }
 0x1a2   : > { %2849 = vrcp.f32 %v2216_v57 }
 0x1aa   : > { %v2848_v58 = vpop.eup %2847 }
 0x1ab   : > { %2221 = vst [vmem:[%s3160_s4] sm:$0xff] %v2848_v58 }
 0x1ac   : > { %v2850_v59 = vpop.eup %2849 }
 0x1ad   : > { %2222 = vst [vmem:[%s3160_s4 + $0x8] sm:$0xff] %v2850_v59 }
 0x1ae PF: > { %s19_s19 = sadd.s32 1, %s2873_s19   ;;  %s3161_s17 = smov %s2869_s18 }
 0x1af   : > { %p16_p8 = scmp.ge.s32.totalorder %s19_s19, 4   ;;  %s3162_s18 = smov %s3164_s3 }
 0x1b1   :  { %18 = sbr.rel (!%p16_p8) target bundleno = 3 (0x3), region = 119 }

</bundles_post_ra>
